<compile_context>
chip_gen: v7x
topology: tpu7x:2x2x1
jax: 0.10.0
libtpu: 0.0.40
codegen_flags: <defaults>
</compile_context>

<pallas_src>
import functools

import jax
import jax.numpy as jnp
import numpy as np
from jax.experimental import pallas as pl
from jax.experimental.pallas import tpu as pltpu

BN_EPS = 1e-5


# ----------------------------------------------------------------------------
# Fused Pallas kernel: the whole forward pass, one grid step per image group.
# ----------------------------------------------------------------------------
def _fused_kernel(x_ref, mask_ref, w_ref, b_ref, out_ref, *, plan, img_w, hwt):
    """
    x_ref   : (1, Cin_pad, HWT) f32   input, channel-major, b_tile*H*W flattened on lanes
    mask_ref: (8, HWT)          f32   border masks for the 8 non-center taps
    w_ref   : (sum Cout_pad, 9*max Cin_pad) bf16  packed, BN-scale-folded conv weights
    b_ref   : (sum Cout_pad, 1) f32   packed, folded BN shifts
    out_ref : (1, 1, HWT)       f32
    plan    : static tuple of (row_offset, cout_rows, cin_pad) per conv layer (11 layers)
    img_w   : image width W (static)
    hwt     : total lane extent b_tile*H*W (static)
    """
    masks = mask_ref[...]
    mask_rows = [masks[i:i + 1, :] for i in range(8)]   # hoisted, reused by all 11 layers

    def conv_bn_act(x, idx, relu):
        # x: (cin_pad, HWT) f32.  3x3 'same' conv + folded BN shift (+ optional ReLU).
        row0, cout, cin = plan[idx]
        w = w_ref[pl.ds(row0, cout), pl.ds(0, 9 * cin)]     # (cout, 9*cin) bf16
        b = b_ref[pl.ds(row0, cout), :]                     # (cout, 1)     f32
        taps = []
        m = 0
        for k in range(9):
            dy, dx = k // 3 - 1, k % 3 - 1
            if dy == 0 and dx == 0:
                taps.append(x)                              # center tap: identity
            else:
                # output lane p needs input lane p + dy*W + dx  ->  roll by the negative
                shift = (-(dy * img_w + dx)) % hwt
                rolled = pltpu.roll(x, shift=shift, axis=1)  # XLU lane rotation
                taps.append(rolled * mask_rows[m])           # zero 'same'-padding border
                m += 1
        patch = jnp.concatenate(taps, axis=0).astype(jnp.bfloat16)   # (9*cin, HWT)
        y = jnp.dot(w, patch, preferred_element_type=jnp.float32) + b
        if relu:
            y = jnp.maximum(y, 0.0)
        return y

    f = conv_bn_act(x_ref[0], 0, relu=True)                 # conv1 + bn1 + ReLU
    li = 1
    for _ in range(2):                                      # ResBlock_1 (two blocks)
        h = conv_bn_act(f, li, relu=True)
        f = conv_bn_act(h, li + 1, relu=False) + f          # residual add, no final ReLU
        li += 2
    f = conv_bn_act(f, li, relu=True)                       # conv2 + bn2 + ReLU
    li += 1
    for _ in range(2):                                      # ResBlock_2 (two blocks)
        h = conv_bn_act(f, li, relu=True)
        f = conv_bn_act(h, li + 1, relu=False) + f
        li += 2
    y = conv_bn_act(f, li, relu=False)                      # conv3: only the real row (1, HWT)
    out_ref[0] = y


# ----------------------------------------------------------------------------
# Border masks for the 8 non-center taps (tiled over b_tile images on the lane axis).
# ----------------------------------------------------------------------------
def _make_masks(H, W, b_tile):
    HW = H * W
    p = np.arange(HW)
    y = p // W
    x = p % W
    rows = []
    for k in range(9):
        dy, dx = k // 3 - 1, k % 3 - 1
        if dy == 0 and dx == 0:
            continue
        valid = ((y + dy >= 0) & (y + dy < H) & (x + dx >= 0) & (x + dx < W))
        rows.append(np.tile(valid.astype(np.float32), b_tile))
    return jnp.asarray(np.stack(rows, axis=0))              # (8, b_tile*HW)


# ----------------------------------------------------------------------------
# Wrapper: NCHW in / NCHW out, single pallas_call.
# ----------------------------------------------------------------------------
def decoder_heat_forward(w_all, b_all, x_nchw, *, plan, b_tile=1):
    N, cin, H, W = x_nchw.shape
    HW = H * W
    assert N % b_tile == 0, "batch must be divisible by b_tile"
    HWT = b_tile * HW
    assert HWT % 128 == 0, "flattened spatial dim must fill TPU lanes"
    cin_pad = plan[0][2]
    G = N // b_tile

    # Channel-major, batch-in-lanes layout: (G, cin_pad, b_tile*HW).  Zero-pad channels
    # 1 -> 8 (matching weight columns are zero, numerics unchanged).  No spatial padding.
    x_f = x_nchw.reshape(G, b_tile, cin, HW).transpose(0, 2, 1, 3).reshape(G, cin, HWT)
    x_in = jnp.pad(x_f.astype(jnp.float32), ((0, 0), (0, cin_pad - cin), (0, 0)))

    masks = _make_masks(H, W, b_tile)

    kernel = functools.partial(_fused_kernel, plan=plan, img_w=W, hwt=HWT)

    out = pl.pallas_call(
        kernel,
        out_shape=jax.ShapeDtypeStruct((G, 1, HWT), jnp.float32),
        grid=(G,),
        in_specs=[
            pl.BlockSpec((1, cin_pad, HWT), lambda n: (n, 0, 0)),
            pl.BlockSpec(masks.shape, lambda n: (0, 0)),     # resident across the grid
            pl.BlockSpec(w_all.shape, lambda n: (0, 0)),
            pl.BlockSpec(b_all.shape, lambda n: (0, 0)),
        ],
        out_specs=pl.BlockSpec((1, 1, HWT), lambda n: (n, 0, 0)),
        compiler_params=pltpu.CompilerParams(
            dimension_semantics=("parallel",)),   # v7x: two TensorCores split the grid
    )(x_in, masks, w_all, b_all)

    # lanes are ordered (image-in-tile, pixel) -> flat order equals (n, pixel)
    return out.reshape(N, 1, H, W)


# ----------------------------------------------------------------------------
# Parameter construction (deterministic, synthetic) + BN folding + weight packing.
# ----------------------------------------------------------------------------
def _fold_bn(gamma, beta, mean, var):
    scale = gamma / jnp.sqrt(var + BN_EPS)
    shift = beta - mean * scale
    return scale, shift


def _synth_bn(key, c):
    k1, k2, k3, k4 = jax.random.split(key, 4)
    gamma = 1.0 + 0.1 * jax.random.normal(k1, (c,), jnp.float32)
    beta = 0.1 * jax.random.normal(k2, (c,), jnp.float32)
    mean = 0.1 * jax.random.normal(k3, (c,), jnp.float32)
    var = 1.0 + 0.1 * jax.random.uniform(k4, (c,), jnp.float32)
    return _fold_bn(gamma, beta, mean, var)


def _conv_layer(key, cin, cout, cin_pad, cout_pad, with_bn):
    kw, kb = jax.random.split(key)
    w = jax.random.normal(kw, (cout, cin, 3, 3), jnp.float32) * 0.1   # OIHW, like PyTorch
    if with_bn:
        scale, shift = _synth_bn(kb, cout)
    else:
        scale = jnp.ones((cout,), jnp.float32)
        shift = jnp.zeros((cout,), jnp.float32)
    w_folded = w * scale[:, None, None, None]          # fold BN scale into the conv weights
    w_bf16 = w_folded.astype(jnp.bfloat16)             # bf16 MXU operands
    w_pad = jnp.pad(w_bf16, ((0, cout_pad - cout), (0, cin_pad - cin), (0, 0), (0, 0)))
    # (cout_pad, 9*cin_pad); column order (ky, kx, ci) matches the kernel's patch rows.
    w2 = jnp.transpose(w_pad, (0, 2, 3, 1)).reshape(cout_pad, 9 * cin_pad)
    b2 = jnp.pad(shift, (0, cout_pad - cout)).reshape(cout_pad, 1)
    return w2, b2, {"w_bf16": w_bf16, "shift": shift}


def make_params(key, conv_channel):
    c2, c4 = conv_channel * 2, conv_channel * 4
    assert c2 % 8 == 0 and c4 % 8 == 0, "channel counts must be multiples of 8 on TPU"
    # (cin, cout, cin_pad, cout_pad, with_bn) per conv layer, in forward order
    cfg = [(1, c2, 8, c2, True)]           # conv1 + bn1 (real cin=1, padded to 8)
    cfg += [(c2, c2, c2, c2, True)] * 4    # ResBlock_1: 2 blocks x 2 convs
    cfg += [(c2, c4, c2, c4, True)]        # conv2 + bn2
    cfg += [(c4, c4, c4, c4, True)] * 4    # ResBlock_2
    cfg += [(c4, 1, c4, 8, False)]         # conv3 (no BN, bias=False; rows padded to 8)

    k_max = 9 * max(c[2] for c in cfg)
    keys = jax.random.split(key, len(cfg))
    w_rows, b_rows, ref_layers, plan = [], [], [], []
    row = 0
    for k, (cin, cout, cin_p, cout_p, with_bn) in zip(keys, cfg):
        w2, b2, ref = _conv_layer(k, cin, cout, cin_p, cout_p, with_bn)
        w_rows.append(jnp.pad(w2, ((0, 0), (0, k_max - w2.shape[1]))))
        b_rows.append(b2)
        ref_layers.append(ref)
        # plan stores the number of rows actually computed: real cout (1 for conv3,
        # which equals the padded count for all other layers here).
        plan.append((row, cout, cin_p))
        row += cout_p
    w_all = jnp.concatenate(w_rows, axis=0)   # (sum cout_pad, 9*max cin_pad) == (128, 144) bf16
    b_all = jnp.concatenate(b_rows, axis=0)   # (128, 1) f32
    return w_all, b_all, tuple(plan), ref_layers


# ----------------------------------------------------------------------------
# Pure-JAX reference (same folded-BN, same bf16 weights / bf16 conv inputs, f32 accumulation)
# for the correctness check.
# ----------------------------------------------------------------------------
def _conv_ref(x, w_bf16, shift, relu=False, residual=None):
    y = jax.lax.conv_general_dilated(
        x.astype(jnp.bfloat16), w_bf16, window_strides=(1, 1), padding="SAME",
        dimension_numbers=("NCHW", "OIHW", "NCHW"),
        preferred_element_type=jnp.float32)
    y = y + shift.reshape(1, -1, 1, 1)
    if residual is not None:
        y = y + residual
    if relu:
        y = jnp.maximum(y, 0.0)
    return y


def decoder_heat_ref(ref_layers, x_nchw):
    L = ref_layers
    f = _conv_ref(x_nchw, L[0]["w_bf16"], L[0]["shift"], relu=True)
    li = 1
    for _ in range(2):
        h = _conv_ref(f, L[li]["w_bf16"], L[li]["shift"], relu=True)
        f = _conv_ref(h, L[li + 1]["w_bf16"], L[li + 1]["shift"], residual=f)
        li += 2
    f = _conv_ref(f, L[li]["w_bf16"], L[li]["shift"], relu=True)
    li += 1
    for _ in range(2):
        h = _conv_ref(f, L[li]["w_bf16"], L[li]["shift"], relu=True)
        f = _conv_ref(h, L[li + 1]["w_bf16"], L[li + 1]["shift"], residual=f)
        li += 2
    return _conv_ref(f, L[li]["w_bf16"], L[li]["shift"])


# ----------------------------------------------------------------------------
if __name__ == "__main__":
    # get_parameters() is not available; conv_channel=4 gives the module's channel
    # progression 1 -> 8 -> 16 -> 1 at small, TPU-friendly sizes.
    conv_channel = 4
    N, H, W = 2, 16, 16

    key = jax.random.PRNGKey(0)
    kx, kp = jax.random.split(key)
    x = jax.random.normal(kx, (N, 1, H, W), jnp.float32)    # NCHW, like PyTorch
    w_all, b_all, plan, ref_layers = make_params(kp, conv_channel)

    ref = jax.block_until_ready(decoder_heat_ref(ref_layers, x))

    # b_tile=1: 2 grid steps, so v7x's two TensorCores can split the batch.
    fwd1 = jax.jit(functools.partial(decoder_heat_forward, plan=plan, b_tile=1))
    out1 = jax.block_until_ready(fwd1(w_all, b_all, x))
    assert out1.shape == (N, 1, H, W)
    np.testing.assert_allclose(np.asarray(out1), np.asarray(ref), rtol=3e-3, atol=3e-3)

    # b_tile=2: both images flattened onto the lane axis in a single grid step
    # (validates the roll-spill-over-image-boundary masking and the lane-batched path).
    fwd2 = jax.jit(functools.partial(decoder_heat_forward, plan=plan, b_tile=2))
    out2 = jax.block_until_ready(fwd2(w_all, b_all, x))
    assert out2.shape == (N, 1, H, W)
    np.testing.assert_allclose(np.asarray(out2), np.asarray(ref), rtol=3e-3, atol=3e-3)

    print("KERNEL_OK")
</pallas_src>

<mosaic_0001>
module attributes {stable_mosaic.version = 11 : i64} {
  func.func @_fused_kernel(%arg0: i32, %arg1: memref<1x8x256xf32, #tpu.memory_space<vmem>>, %arg2: memref<8x256xf32, #tpu.memory_space<vmem>>, %arg3: memref<128x144xbf16, #tpu.memory_space<vmem>>, %arg4: memref<128x1xf32, #tpu.memory_space<vmem>>, %arg5: memref<1x1x256xf32, #tpu.memory_space<vmem>>) attributes {dimension_semantics = [#tpu.dimension_semantics<parallel>], iteration_bounds = array<i64: 2>, scalar_prefetch = 0 : i64, scratch_operands = 0 : i64, tpu.core_type = #tpu.core_type<tc>, window_params = [{transform_indices = @transform_0, window_bounds = array<i64: 1, 8, 256>}, {pipeline_mode = #tpu.pipeline_mode<synchronous>, transform_indices = @transform_1, window_bounds = array<i64: 8, 256>}, {pipeline_mode = #tpu.pipeline_mode<synchronous>, transform_indices = @transform_2, window_bounds = array<i64: 128, 144>}, {pipeline_mode = #tpu.pipeline_mode<synchronous>, transform_indices = @transform_3, window_bounds = array<i64: 128, 1>}, {transform_indices = @transform_4, window_bounds = array<i64: 1, 1, 256>}]} {
    %c0 = arith.constant 0 : index
    %c0_0 = arith.constant 0 : index
    %0 = vector.load %arg2[%c0, %c0_0] : memref<8x256xf32, #tpu.memory_space<vmem>>, vector<8x256xf32>
    %1 = vector.extract_strided_slice %0 {offsets = [0, 0], sizes = [1, 256], strides = [1, 1]} : vector<8x256xf32> to vector<1x256xf32>
    %2 = vector.extract_strided_slice %0 {offsets = [1, 0], sizes = [1, 256], strides = [1, 1]} : vector<8x256xf32> to vector<1x256xf32>
    %3 = vector.extract_strided_slice %0 {offsets = [2, 0], sizes = [1, 256], strides = [1, 1]} : vector<8x256xf32> to vector<1x256xf32>
    %4 = vector.extract_strided_slice %0 {offsets = [3, 0], sizes = [1, 256], strides = [1, 1]} : vector<8x256xf32> to vector<1x256xf32>
    %5 = vector.extract_strided_slice %0 {offsets = [4, 0], sizes = [1, 256], strides = [1, 1]} : vector<8x256xf32> to vector<1x256xf32>
    %6 = vector.extract_strided_slice %0 {offsets = [5, 0], sizes = [1, 256], strides = [1, 1]} : vector<8x256xf32> to vector<1x256xf32>
    %7 = vector.extract_strided_slice %0 {offsets = [6, 0], sizes = [1, 256], strides = [1, 1]} : vector<8x256xf32> to vector<1x256xf32>
    %8 = vector.extract_strided_slice %0 {offsets = [7, 0], sizes = [1, 256], strides = [1, 1]} : vector<8x256xf32> to vector<1x256xf32>
    %c0_1 = arith.constant 0 : index
    %c0_2 = arith.constant 0 : index
    %c0_3 = arith.constant 0 : index
    %9 = vector.load %arg1[%c0_1, %c0_2, %c0_3] : memref<1x8x256xf32, #tpu.memory_space<vmem>>, vector<1x8x256xf32>
    %10 = vector.shape_cast %9 : vector<1x8x256xf32> to vector<8x256xf32>
    %c0_4 = arith.constant 0 : index
    %c0_5 = arith.constant 0 : index
    %11 = vector.load %arg3[%c0_4, %c0_5] : memref<128x144xbf16, #tpu.memory_space<vmem>>, vector<8x72xbf16>
    %c0_6 = arith.constant 0 : index
    %c0_7 = arith.constant 0 : index
    %12 = vector.load %arg4[%c0_6, %c0_7] : memref<128x1xf32, #tpu.memory_space<vmem>>, vector<8x1xf32>
    %c17_i32 = arith.constant 17 : i32
    %13 = tpu.dynamic_rotate %10 by %c17_i32 dim 1 : vector<8x256xf32>, i32 -> vector<8x256xf32>
    %14 = vector.broadcast %1 : vector<1x256xf32> to vector<8x256xf32>
    %15 = arith.mulf %13, %14 : vector<8x256xf32>
    %c16_i32 = arith.constant 16 : i32
    %16 = tpu.dynamic_rotate %10 by %c16_i32 dim 1 : vector<8x256xf32>, i32 -> vector<8x256xf32>
    %17 = vector.broadcast %2 : vector<1x256xf32> to vector<8x256xf32>
    %18 = arith.mulf %16, %17 : vector<8x256xf32>
    %c15_i32 = arith.constant 15 : i32
    %19 = tpu.dynamic_rotate %10 by %c15_i32 dim 1 : vector<8x256xf32>, i32 -> vector<8x256xf32>
    %20 = vector.broadcast %3 : vector<1x256xf32> to vector<8x256xf32>
    %21 = arith.mulf %19, %20 : vector<8x256xf32>
    %c1_i32 = arith.constant 1 : i32
    %22 = tpu.dynamic_rotate %10 by %c1_i32 dim 1 : vector<8x256xf32>, i32 -> vector<8x256xf32>
    %23 = vector.broadcast %4 : vector<1x256xf32> to vector<8x256xf32>
    %24 = arith.mulf %22, %23 : vector<8x256xf32>
    %c255_i32 = arith.constant 255 : i32
    %25 = tpu.dynamic_rotate %10 by %c255_i32 dim 1 : vector<8x256xf32>, i32 -> vector<8x256xf32>
    %26 = vector.broadcast %5 : vector<1x256xf32> to vector<8x256xf32>
    %27 = arith.mulf %25, %26 : vector<8x256xf32>
    %c241_i32 = arith.constant 241 : i32
    %28 = tpu.dynamic_rotate %10 by %c241_i32 dim 1 : vector<8x256xf32>, i32 -> vector<8x256xf32>
    %29 = vector.broadcast %6 : vector<1x256xf32> to vector<8x256xf32>
    %30 = arith.mulf %28, %29 : vector<8x256xf32>
    %c240_i32 = arith.constant 240 : i32
    %31 = tpu.dynamic_rotate %10 by %c240_i32 dim 1 : vector<8x256xf32>, i32 -> vector<8x256xf32>
    %32 = vector.broadcast %7 : vector<1x256xf32> to vector<8x256xf32>
    %33 = arith.mulf %31, %32 : vector<8x256xf32>
    %c239_i32 = arith.constant 239 : i32
    %34 = tpu.dynamic_rotate %10 by %c239_i32 dim 1 : vector<8x256xf32>, i32 -> vector<8x256xf32>
    %35 = vector.broadcast %8 : vector<1x256xf32> to vector<8x256xf32>
    %36 = arith.mulf %34, %35 : vector<8x256xf32>
    %37 = tpu.concatenate %15, %18, %21, %24, %10, %27, %30, %33, %36 in 0 : vector<8x256xf32>, vector<8x256xf32>, vector<8x256xf32>, vector<8x256xf32>, vector<8x256xf32>, vector<8x256xf32>, vector<8x256xf32>, vector<8x256xf32>, vector<8x256xf32> -> vector<72x256xf32>
    %38 = arith.truncf %37 : vector<72x256xf32> to vector<72x256xbf16>
    %cst = arith.constant dense<0.000000e+00> : vector<8x256xf32>
    %39 = tpu.matmul %11, %38, %cst {dimension_numbers = #tpu.dot_dimension_numbers<[1], [0], [0], [1], [0, 0, 1, 1], [], []>} : vector<8x72xbf16>, vector<72x256xbf16>, vector<8x256xf32> -> vector<8x256xf32>
    %40 = vector.broadcast %12 : vector<8x1xf32> to vector<8x256xf32>
    %41 = arith.addf %39, %40 : vector<8x256xf32>
    %cst_8 = arith.constant 0.000000e+00 : f32
    %42 = vector.broadcast %cst_8 : f32 to vector<8x256xf32>
    %43 = arith.maximumf %41, %42 : vector<8x256xf32>
    %c8 = arith.constant 8 : index
    %c0_9 = arith.constant 0 : index
    %44 = vector.load %arg3[%c8, %c0_9] : memref<128x144xbf16, #tpu.memory_space<vmem>>, vector<8x72xbf16>
    %c8_10 = arith.constant 8 : index
    %c0_11 = arith.constant 0 : index
    %45 = vector.load %arg4[%c8_10, %c0_11] : memref<128x1xf32, #tpu.memory_space<vmem>>, vector<8x1xf32>
    %c17_i32_12 = arith.constant 17 : i32
    %46 = tpu.dynamic_rotate %43 by %c17_i32_12 dim 1 : vector<8x256xf32>, i32 -> vector<8x256xf32>
    %47 = vector.broadcast %1 : vector<1x256xf32> to vector<8x256xf32>
    %48 = arith.mulf %46, %47 : vector<8x256xf32>
    %c16_i32_13 = arith.constant 16 : i32
    %49 = tpu.dynamic_rotate %43 by %c16_i32_13 dim 1 : vector<8x256xf32>, i32 -> vector<8x256xf32>
    %50 = vector.broadcast %2 : vector<1x256xf32> to vector<8x256xf32>
    %51 = arith.mulf %49, %50 : vector<8x256xf32>
    %c15_i32_14 = arith.constant 15 : i32
    %52 = tpu.dynamic_rotate %43 by %c15_i32_14 dim 1 : vector<8x256xf32>, i32 -> vector<8x256xf32>
    %53 = vector.broadcast %3 : vector<1x256xf32> to vector<8x256xf32>
    %54 = arith.mulf %52, %53 : vector<8x256xf32>
    %c1_i32_15 = arith.constant 1 : i32
    %55 = tpu.dynamic_rotate %43 by %c1_i32_15 dim 1 : vector<8x256xf32>, i32 -> vector<8x256xf32>
    %56 = vector.broadcast %4 : vector<1x256xf32> to vector<8x256xf32>
    %57 = arith.mulf %55, %56 : vector<8x256xf32>
    %c255_i32_16 = arith.constant 255 : i32
    %58 = tpu.dynamic_rotate %43 by %c255_i32_16 dim 1 : vector<8x256xf32>, i32 -> vector<8x256xf32>
    %59 = vector.broadcast %5 : vector<1x256xf32> to vector<8x256xf32>
    %60 = arith.mulf %58, %59 : vector<8x256xf32>
    %c241_i32_17 = arith.constant 241 : i32
    %61 = tpu.dynamic_rotate %43 by %c241_i32_17 dim 1 : vector<8x256xf32>, i32 -> vector<8x256xf32>
    %62 = vector.broadcast %6 : vector<1x256xf32> to vector<8x256xf32>
    %63 = arith.mulf %61, %62 : vector<8x256xf32>
    %c240_i32_18 = arith.constant 240 : i32
    %64 = tpu.dynamic_rotate %43 by %c240_i32_18 dim 1 : vector<8x256xf32>, i32 -> vector<8x256xf32>
    %65 = vector.broadcast %7 : vector<1x256xf32> to vector<8x256xf32>
    %66 = arith.mulf %64, %65 : vector<8x256xf32>
    %c239_i32_19 = arith.constant 239 : i32
    %67 = tpu.dynamic_rotate %43 by %c239_i32_19 dim 1 : vector<8x256xf32>, i32 -> vector<8x256xf32>
    %68 = vector.broadcast %8 : vector<1x256xf32> to vector<8x256xf32>
    %69 = arith.mulf %67, %68 : vector<8x256xf32>
    %70 = tpu.concatenate %48, %51, %54, %57, %43, %60, %63, %66, %69 in 0 : vector<8x256xf32>, vector<8x256xf32>, vector<8x256xf32>, vector<8x256xf32>, vector<8x256xf32>, vector<8x256xf32>, vector<8x256xf32>, vector<8x256xf32>, vector<8x256xf32> -> vector<72x256xf32>
    %71 = arith.truncf %70 : vector<72x256xf32> to vector<72x256xbf16>
    %cst_20 = arith.constant dense<0.000000e+00> : vector<8x256xf32>
    %72 = tpu.matmul %44, %71, %cst_20 {dimension_numbers = #tpu.dot_dimension_numbers<[1], [0], [0], [1], [0, 0, 1, 1], [], []>} : vector<8x72xbf16>, vector<72x256xbf16>, vector<8x256xf32> -> vector<8x256xf32>
    %73 = vector.broadcast %45 : vector<8x1xf32> to vector<8x256xf32>
    %74 = arith.addf %72, %73 : vector<8x256xf32>
    %cst_21 = arith.constant 0.000000e+00 : f32
    %75 = vector.broadcast %cst_21 : f32 to vector<8x256xf32>
    %76 = arith.maximumf %74, %75 : vector<8x256xf32>
    %c16 = arith.constant 16 : index
    %c0_22 = arith.constant 0 : index
    %77 = vector.load %arg3[%c16, %c0_22] : memref<128x144xbf16, #tpu.memory_space<vmem>>, vector<8x72xbf16>
    %c16_23 = arith.constant 16 : index
    %c0_24 = arith.constant 0 : index
    %78 = vector.load %arg4[%c16_23, %c0_24] : memref<128x1xf32, #tpu.memory_space<vmem>>, vector<8x1xf32>
    %c17_i32_25 = arith.constant 17 : i32
    %79 = tpu.dynamic_rotate %76 by %c17_i32_25 dim 1 : vector<8x256xf32>, i32 -> vector<8x256xf32>
    %80 = vector.broadcast %1 : vector<1x256xf32> to vector<8x256xf32>
    %81 = arith.mulf %79, %80 : vector<8x256xf32>
    %c16_i32_26 = arith.constant 16 : i32
    %82 = tpu.dynamic_rotate %76 by %c16_i32_26 dim 1 : vector<8x256xf32>, i32 -> vector<8x256xf32>
    %83 = vector.broadcast %2 : vector<1x256xf32> to vector<8x256xf32>
    %84 = arith.mulf %82, %83 : vector<8x256xf32>
    %c15_i32_27 = arith.constant 15 : i32
    %85 = tpu.dynamic_rotate %76 by %c15_i32_27 dim 1 : vector<8x256xf32>, i32 -> vector<8x256xf32>
    %86 = vector.broadcast %3 : vector<1x256xf32> to vector<8x256xf32>
    %87 = arith.mulf %85, %86 : vector<8x256xf32>
    %c1_i32_28 = arith.constant 1 : i32
    %88 = tpu.dynamic_rotate %76 by %c1_i32_28 dim 1 : vector<8x256xf32>, i32 -> vector<8x256xf32>
    %89 = vector.broadcast %4 : vector<1x256xf32> to vector<8x256xf32>
    %90 = arith.mulf %88, %89 : vector<8x256xf32>
    %c255_i32_29 = arith.constant 255 : i32
    %91 = tpu.dynamic_rotate %76 by %c255_i32_29 dim 1 : vector<8x256xf32>, i32 -> vector<8x256xf32>
    %92 = vector.broadcast %5 : vector<1x256xf32> to vector<8x256xf32>
    %93 = arith.mulf %91, %92 : vector<8x256xf32>
    %c241_i32_30 = arith.constant 241 : i32
    %94 = tpu.dynamic_rotate %76 by %c241_i32_30 dim 1 : vector<8x256xf32>, i32 -> vector<8x256xf32>
    %95 = vector.broadcast %6 : vector<1x256xf32> to vector<8x256xf32>
    %96 = arith.mulf %94, %95 : vector<8x256xf32>
    %c240_i32_31 = arith.constant 240 : i32
    %97 = tpu.dynamic_rotate %76 by %c240_i32_31 dim 1 : vector<8x256xf32>, i32 -> vector<8x256xf32>
    %98 = vector.broadcast %7 : vector<1x256xf32> to vector<8x256xf32>
    %99 = arith.mulf %97, %98 : vector<8x256xf32>
    %c239_i32_32 = arith.constant 239 : i32
    %100 = tpu.dynamic_rotate %76 by %c239_i32_32 dim 1 : vector<8x256xf32>, i32 -> vector<8x256xf32>
    %101 = vector.broadcast %8 : vector<1x256xf32> to vector<8x256xf32>
    %102 = arith.mulf %100, %101 : vector<8x256xf32>
    %103 = tpu.concatenate %81, %84, %87, %90, %76, %93, %96, %99, %102 in 0 : vector<8x256xf32>, vector<8x256xf32>, vector<8x256xf32>, vector<8x256xf32>, vector<8x256xf32>, vector<8x256xf32>, vector<8x256xf32>, vector<8x256xf32>, vector<8x256xf32> -> vector<72x256xf32>
    %104 = arith.truncf %103 : vector<72x256xf32> to vector<72x256xbf16>
    %cst_33 = arith.constant dense<0.000000e+00> : vector<8x256xf32>
    %105 = tpu.matmul %77, %104, %cst_33 {dimension_numbers = #tpu.dot_dimension_numbers<[1], [0], [0], [1], [0, 0, 1, 1], [], []>} : vector<8x72xbf16>, vector<72x256xbf16>, vector<8x256xf32> -> vector<8x256xf32>
    %106 = vector.broadcast %78 : vector<8x1xf32> to vector<8x256xf32>
    %107 = arith.addf %105, %106 : vector<8x256xf32>
    %108 = arith.addf %107, %43 : vector<8x256xf32>
    %c24 = arith.constant 24 : index
    %c0_34 = arith.constant 0 : index
    %109 = vector.load %arg3[%c24, %c0_34] : memref<128x144xbf16, #tpu.memory_space<vmem>>, vector<8x72xbf16>
    %c24_35 = arith.constant 24 : index
    %c0_36 = arith.constant 0 : index
    %110 = vector.load %arg4[%c24_35, %c0_36] : memref<128x1xf32, #tpu.memory_space<vmem>>, vector<8x1xf32>
    %c17_i32_37 = arith.constant 17 : i32
    %111 = tpu.dynamic_rotate %108 by %c17_i32_37 dim 1 : vector<8x256xf32>, i32 -> vector<8x256xf32>
    %112 = vector.broadcast %1 : vector<1x256xf32> to vector<8x256xf32>
    %113 = arith.mulf %111, %112 : vector<8x256xf32>
    %c16_i32_38 = arith.constant 16 : i32
    %114 = tpu.dynamic_rotate %108 by %c16_i32_38 dim 1 : vector<8x256xf32>, i32 -> vector<8x256xf32>
    %115 = vector.broadcast %2 : vector<1x256xf32> to vector<8x256xf32>
    %116 = arith.mulf %114, %115 : vector<8x256xf32>
    %c15_i32_39 = arith.constant 15 : i32
    %117 = tpu.dynamic_rotate %108 by %c15_i32_39 dim 1 : vector<8x256xf32>, i32 -> vector<8x256xf32>
    %118 = vector.broadcast %3 : vector<1x256xf32> to vector<8x256xf32>
    %119 = arith.mulf %117, %118 : vector<8x256xf32>
    %c1_i32_40 = arith.constant 1 : i32
    %120 = tpu.dynamic_rotate %108 by %c1_i32_40 dim 1 : vector<8x256xf32>, i32 -> vector<8x256xf32>
    %121 = vector.broadcast %4 : vector<1x256xf32> to vector<8x256xf32>
    %122 = arith.mulf %120, %121 : vector<8x256xf32>
    %c255_i32_41 = arith.constant 255 : i32
    %123 = tpu.dynamic_rotate %108 by %c255_i32_41 dim 1 : vector<8x256xf32>, i32 -> vector<8x256xf32>
    %124 = vector.broadcast %5 : vector<1x256xf32> to vector<8x256xf32>
    %125 = arith.mulf %123, %124 : vector<8x256xf32>
    %c241_i32_42 = arith.constant 241 : i32
    %126 = tpu.dynamic_rotate %108 by %c241_i32_42 dim 1 : vector<8x256xf32>, i32 -> vector<8x256xf32>
    %127 = vector.broadcast %6 : vector<1x256xf32> to vector<8x256xf32>
    %128 = arith.mulf %126, %127 : vector<8x256xf32>
    %c240_i32_43 = arith.constant 240 : i32
    %129 = tpu.dynamic_rotate %108 by %c240_i32_43 dim 1 : vector<8x256xf32>, i32 -> vector<8x256xf32>
    %130 = vector.broadcast %7 : vector<1x256xf32> to vector<8x256xf32>
    %131 = arith.mulf %129, %130 : vector<8x256xf32>
    %c239_i32_44 = arith.constant 239 : i32
    %132 = tpu.dynamic_rotate %108 by %c239_i32_44 dim 1 : vector<8x256xf32>, i32 -> vector<8x256xf32>
    %133 = vector.broadcast %8 : vector<1x256xf32> to vector<8x256xf32>
    %134 = arith.mulf %132, %133 : vector<8x256xf32>
    %135 = tpu.concatenate %113, %116, %119, %122, %108, %125, %128, %131, %134 in 0 : vector<8x256xf32>, vector<8x256xf32>, vector<8x256xf32>, vector<8x256xf32>, vector<8x256xf32>, vector<8x256xf32>, vector<8x256xf32>, vector<8x256xf32>, vector<8x256xf32> -> vector<72x256xf32>
    %136 = arith.truncf %135 : vector<72x256xf32> to vector<72x256xbf16>
    %cst_45 = arith.constant dense<0.000000e+00> : vector<8x256xf32>
    %137 = tpu.matmul %109, %136, %cst_45 {dimension_numbers = #tpu.dot_dimension_numbers<[1], [0], [0], [1], [0, 0, 1, 1], [], []>} : vector<8x72xbf16>, vector<72x256xbf16>, vector<8x256xf32> -> vector<8x256xf32>
    %138 = vector.broadcast %110 : vector<8x1xf32> to vector<8x256xf32>
    %139 = arith.addf %137, %138 : vector<8x256xf32>
    %cst_46 = arith.constant 0.000000e+00 : f32
    %140 = vector.broadcast %cst_46 : f32 to vector<8x256xf32>
    %141 = arith.maximumf %139, %140 : vector<8x256xf32>
    %c32 = arith.constant 32 : index
    %c0_47 = arith.constant 0 : index
    %142 = vector.load %arg3[%c32, %c0_47] : memref<128x144xbf16, #tpu.memory_space<vmem>>, vector<8x72xbf16>
    %c32_48 = arith.constant 32 : index
    %c0_49 = arith.constant 0 : index
    %143 = vector.load %arg4[%c32_48, %c0_49] : memref<128x1xf32, #tpu.memory_space<vmem>>, vector<8x1xf32>
    %c17_i32_50 = arith.constant 17 : i32
    %144 = tpu.dynamic_rotate %141 by %c17_i32_50 dim 1 : vector<8x256xf32>, i32 -> vector<8x256xf32>
    %145 = vector.broadcast %1 : vector<1x256xf32> to vector<8x256xf32>
    %146 = arith.mulf %144, %145 : vector<8x256xf32>
    %c16_i32_51 = arith.constant 16 : i32
    %147 = tpu.dynamic_rotate %141 by %c16_i32_51 dim 1 : vector<8x256xf32>, i32 -> vector<8x256xf32>
    %148 = vector.broadcast %2 : vector<1x256xf32> to vector<8x256xf32>
    %149 = arith.mulf %147, %148 : vector<8x256xf32>
    %c15_i32_52 = arith.constant 15 : i32
    %150 = tpu.dynamic_rotate %141 by %c15_i32_52 dim 1 : vector<8x256xf32>, i32 -> vector<8x256xf32>
    %151 = vector.broadcast %3 : vector<1x256xf32> to vector<8x256xf32>
    %152 = arith.mulf %150, %151 : vector<8x256xf32>
    %c1_i32_53 = arith.constant 1 : i32
    %153 = tpu.dynamic_rotate %141 by %c1_i32_53 dim 1 : vector<8x256xf32>, i32 -> vector<8x256xf32>
    %154 = vector.broadcast %4 : vector<1x256xf32> to vector<8x256xf32>
    %155 = arith.mulf %153, %154 : vector<8x256xf32>
    %c255_i32_54 = arith.constant 255 : i32
    %156 = tpu.dynamic_rotate %141 by %c255_i32_54 dim 1 : vector<8x256xf32>, i32 -> vector<8x256xf32>
    %157 = vector.broadcast %5 : vector<1x256xf32> to vector<8x256xf32>
    %158 = arith.mulf %156, %157 : vector<8x256xf32>
    %c241_i32_55 = arith.constant 241 : i32
    %159 = tpu.dynamic_rotate %141 by %c241_i32_55 dim 1 : vector<8x256xf32>, i32 -> vector<8x256xf32>
    %160 = vector.broadcast %6 : vector<1x256xf32> to vector<8x256xf32>
    %161 = arith.mulf %159, %160 : vector<8x256xf32>
    %c240_i32_56 = arith.constant 240 : i32
    %162 = tpu.dynamic_rotate %141 by %c240_i32_56 dim 1 : vector<8x256xf32>, i32 -> vector<8x256xf32>
    %163 = vector.broadcast %7 : vector<1x256xf32> to vector<8x256xf32>
    %164 = arith.mulf %162, %163 : vector<8x256xf32>
    %c239_i32_57 = arith.constant 239 : i32
    %165 = tpu.dynamic_rotate %141 by %c239_i32_57 dim 1 : vector<8x256xf32>, i32 -> vector<8x256xf32>
    %166 = vector.broadcast %8 : vector<1x256xf32> to vector<8x256xf32>
    %167 = arith.mulf %165, %166 : vector<8x256xf32>
    %168 = tpu.concatenate %146, %149, %152, %155, %141, %158, %161, %164, %167 in 0 : vector<8x256xf32>, vector<8x256xf32>, vector<8x256xf32>, vector<8x256xf32>, vector<8x256xf32>, vector<8x256xf32>, vector<8x256xf32>, vector<8x256xf32>, vector<8x256xf32> -> vector<72x256xf32>
    %169 = arith.truncf %168 : vector<72x256xf32> to vector<72x256xbf16>
    %cst_58 = arith.constant dense<0.000000e+00> : vector<8x256xf32>
    %170 = tpu.matmul %142, %169, %cst_58 {dimension_numbers = #tpu.dot_dimension_numbers<[1], [0], [0], [1], [0, 0, 1, 1], [], []>} : vector<8x72xbf16>, vector<72x256xbf16>, vector<8x256xf32> -> vector<8x256xf32>
    %171 = vector.broadcast %143 : vector<8x1xf32> to vector<8x256xf32>
    %172 = arith.addf %170, %171 : vector<8x256xf32>
    %173 = arith.addf %172, %108 : vector<8x256xf32>
    %c40 = arith.constant 40 : index
    %c0_59 = arith.constant 0 : index
    %174 = vector.load %arg3[%c40, %c0_59] : memref<128x144xbf16, #tpu.memory_space<vmem>>, vector<16x72xbf16>
    %c40_60 = arith.constant 40 : index
    %c0_61 = arith.constant 0 : index
    %175 = vector.load %arg4[%c40_60, %c0_61] : memref<128x1xf32, #tpu.memory_space<vmem>>, vector<16x1xf32>
    %c17_i32_62 = arith.constant 17 : i32
    %176 = tpu.dynamic_rotate %173 by %c17_i32_62 dim 1 : vector<8x256xf32>, i32 -> vector<8x256xf32>
    %177 = vector.broadcast %1 : vector<1x256xf32> to vector<8x256xf32>
    %178 = arith.mulf %176, %177 : vector<8x256xf32>
    %c16_i32_63 = arith.constant 16 : i32
    %179 = tpu.dynamic_rotate %173 by %c16_i32_63 dim 1 : vector<8x256xf32>, i32 -> vector<8x256xf32>
    %180 = vector.broadcast %2 : vector<1x256xf32> to vector<8x256xf32>
    %181 = arith.mulf %179, %180 : vector<8x256xf32>
    %c15_i32_64 = arith.constant 15 : i32
    %182 = tpu.dynamic_rotate %173 by %c15_i32_64 dim 1 : vector<8x256xf32>, i32 -> vector<8x256xf32>
    %183 = vector.broadcast %3 : vector<1x256xf32> to vector<8x256xf32>
    %184 = arith.mulf %182, %183 : vector<8x256xf32>
    %c1_i32_65 = arith.constant 1 : i32
    %185 = tpu.dynamic_rotate %173 by %c1_i32_65 dim 1 : vector<8x256xf32>, i32 -> vector<8x256xf32>
    %186 = vector.broadcast %4 : vector<1x256xf32> to vector<8x256xf32>
    %187 = arith.mulf %185, %186 : vector<8x256xf32>
    %c255_i32_66 = arith.constant 255 : i32
    %188 = tpu.dynamic_rotate %173 by %c255_i32_66 dim 1 : vector<8x256xf32>, i32 -> vector<8x256xf32>
    %189 = vector.broadcast %5 : vector<1x256xf32> to vector<8x256xf32>
    %190 = arith.mulf %188, %189 : vector<8x256xf32>
    %c241_i32_67 = arith.constant 241 : i32
    %191 = tpu.dynamic_rotate %173 by %c241_i32_67 dim 1 : vector<8x256xf32>, i32 -> vector<8x256xf32>
    %192 = vector.broadcast %6 : vector<1x256xf32> to vector<8x256xf32>
    %193 = arith.mulf %191, %192 : vector<8x256xf32>
    %c240_i32_68 = arith.constant 240 : i32
    %194 = tpu.dynamic_rotate %173 by %c240_i32_68 dim 1 : vector<8x256xf32>, i32 -> vector<8x256xf32>
    %195 = vector.broadcast %7 : vector<1x256xf32> to vector<8x256xf32>
    %196 = arith.mulf %194, %195 : vector<8x256xf32>
    %c239_i32_69 = arith.constant 239 : i32
    %197 = tpu.dynamic_rotate %173 by %c239_i32_69 dim 1 : vector<8x256xf32>, i32 -> vector<8x256xf32>
    %198 = vector.broadcast %8 : vector<1x256xf32> to vector<8x256xf32>
    %199 = arith.mulf %197, %198 : vector<8x256xf32>
    %200 = tpu.concatenate %178, %181, %184, %187, %173, %190, %193, %196, %199 in 0 : vector<8x256xf32>, vector<8x256xf32>, vector<8x256xf32>, vector<8x256xf32>, vector<8x256xf32>, vector<8x256xf32>, vector<8x256xf32>, vector<8x256xf32>, vector<8x256xf32> -> vector<72x256xf32>
    %201 = arith.truncf %200 : vector<72x256xf32> to vector<72x256xbf16>
    %cst_70 = arith.constant dense<0.000000e+00> : vector<16x256xf32>
    %202 = tpu.matmul %174, %201, %cst_70 {dimension_numbers = #tpu.dot_dimension_numbers<[1], [0], [0], [1], [0, 0, 1, 1], [], []>} : vector<16x72xbf16>, vector<72x256xbf16>, vector<16x256xf32> -> vector<16x256xf32>
    %203 = vector.broadcast %175 : vector<16x1xf32> to vector<16x256xf32>
    %204 = arith.addf %202, %203 : vector<16x256xf32>
    %cst_71 = arith.constant 0.000000e+00 : f32
    %205 = vector.broadcast %cst_71 : f32 to vector<16x256xf32>
    %206 = arith.maximumf %204, %205 : vector<16x256xf32>
    %c56 = arith.constant 56 : index
    %c0_72 = arith.constant 0 : index
    %207 = vector.load %arg3[%c56, %c0_72] : memref<128x144xbf16, #tpu.memory_space<vmem>>, vector<16x144xbf16>
    %c56_73 = arith.constant 56 : index
    %c0_74 = arith.constant 0 : index
    %208 = vector.load %arg4[%c56_73, %c0_74] : memref<128x1xf32, #tpu.memory_space<vmem>>, vector<16x1xf32>
    %c17_i32_75 = arith.constant 17 : i32
    %209 = tpu.dynamic_rotate %206 by %c17_i32_75 dim 1 : vector<16x256xf32>, i32 -> vector<16x256xf32>
    %210 = vector.broadcast %1 : vector<1x256xf32> to vector<16x256xf32>
    %211 = arith.mulf %209, %210 : vector<16x256xf32>
    %c16_i32_76 = arith.constant 16 : i32
    %212 = tpu.dynamic_rotate %206 by %c16_i32_76 dim 1 : vector<16x256xf32>, i32 -> vector<16x256xf32>
    %213 = vector.broadcast %2 : vector<1x256xf32> to vector<16x256xf32>
    %214 = arith.mulf %212, %213 : vector<16x256xf32>
    %c15_i32_77 = arith.constant 15 : i32
    %215 = tpu.dynamic_rotate %206 by %c15_i32_77 dim 1 : vector<16x256xf32>, i32 -> vector<16x256xf32>
    %216 = vector.broadcast %3 : vector<1x256xf32> to vector<16x256xf32>
    %217 = arith.mulf %215, %216 : vector<16x256xf32>
    %c1_i32_78 = arith.constant 1 : i32
    %218 = tpu.dynamic_rotate %206 by %c1_i32_78 dim 1 : vector<16x256xf32>, i32 -> vector<16x256xf32>
    %219 = vector.broadcast %4 : vector<1x256xf32> to vector<16x256xf32>
    %220 = arith.mulf %218, %219 : vector<16x256xf32>
    %c255_i32_79 = arith.constant 255 : i32
    %221 = tpu.dynamic_rotate %206 by %c255_i32_79 dim 1 : vector<16x256xf32>, i32 -> vector<16x256xf32>
    %222 = vector.broadcast %5 : vector<1x256xf32> to vector<16x256xf32>
    %223 = arith.mulf %221, %222 : vector<16x256xf32>
    %c241_i32_80 = arith.constant 241 : i32
    %224 = tpu.dynamic_rotate %206 by %c241_i32_80 dim 1 : vector<16x256xf32>, i32 -> vector<16x256xf32>
    %225 = vector.broadcast %6 : vector<1x256xf32> to vector<16x256xf32>
    %226 = arith.mulf %224, %225 : vector<16x256xf32>
    %c240_i32_81 = arith.constant 240 : i32
    %227 = tpu.dynamic_rotate %206 by %c240_i32_81 dim 1 : vector<16x256xf32>, i32 -> vector<16x256xf32>
    %228 = vector.broadcast %7 : vector<1x256xf32> to vector<16x256xf32>
    %229 = arith.mulf %227, %228 : vector<16x256xf32>
    %c239_i32_82 = arith.constant 239 : i32
    %230 = tpu.dynamic_rotate %206 by %c239_i32_82 dim 1 : vector<16x256xf32>, i32 -> vector<16x256xf32>
    %231 = vector.broadcast %8 : vector<1x256xf32> to vector<16x256xf32>
    %232 = arith.mulf %230, %231 : vector<16x256xf32>
    %233 = tpu.concatenate %211, %214, %217, %220, %206, %223, %226, %229, %232 in 0 : vector<16x256xf32>, vector<16x256xf32>, vector<16x256xf32>, vector<16x256xf32>, vector<16x256xf32>, vector<16x256xf32>, vector<16x256xf32>, vector<16x256xf32>, vector<16x256xf32> -> vector<144x256xf32>
    %234 = arith.truncf %233 : vector<144x256xf32> to vector<144x256xbf16>
    %cst_83 = arith.constant dense<0.000000e+00> : vector<16x256xf32>
    %235 = tpu.matmul %207, %234, %cst_83 {dimension_numbers = #tpu.dot_dimension_numbers<[1], [0], [0], [1], [0, 0, 1, 1], [], []>} : vector<16x144xbf16>, vector<144x256xbf16>, vector<16x256xf32> -> vector<16x256xf32>
    %236 = vector.broadcast %208 : vector<16x1xf32> to vector<16x256xf32>
    %237 = arith.addf %235, %236 : vector<16x256xf32>
    %cst_84 = arith.constant 0.000000e+00 : f32
    %238 = vector.broadcast %cst_84 : f32 to vector<16x256xf32>
    %239 = arith.maximumf %237, %238 : vector<16x256xf32>
    %c72 = arith.constant 72 : index
    %c0_85 = arith.constant 0 : index
    %240 = vector.load %arg3[%c72, %c0_85] : memref<128x144xbf16, #tpu.memory_space<vmem>>, vector<16x144xbf16>
    %c72_86 = arith.constant 72 : index
    %c0_87 = arith.constant 0 : index
    %241 = vector.load %arg4[%c72_86, %c0_87] : memref<128x1xf32, #tpu.memory_space<vmem>>, vector<16x1xf32>
    %c17_i32_88 = arith.constant 17 : i32
    %242 = tpu.dynamic_rotate %239 by %c17_i32_88 dim 1 : vector<16x256xf32>, i32 -> vector<16x256xf32>
    %243 = vector.broadcast %1 : vector<1x256xf32> to vector<16x256xf32>
    %244 = arith.mulf %242, %243 : vector<16x256xf32>
    %c16_i32_89 = arith.constant 16 : i32
    %245 = tpu.dynamic_rotate %239 by %c16_i32_89 dim 1 : vector<16x256xf32>, i32 -> vector<16x256xf32>
    %246 = vector.broadcast %2 : vector<1x256xf32> to vector<16x256xf32>
    %247 = arith.mulf %245, %246 : vector<16x256xf32>
    %c15_i32_90 = arith.constant 15 : i32
    %248 = tpu.dynamic_rotate %239 by %c15_i32_90 dim 1 : vector<16x256xf32>, i32 -> vector<16x256xf32>
    %249 = vector.broadcast %3 : vector<1x256xf32> to vector<16x256xf32>
    %250 = arith.mulf %248, %249 : vector<16x256xf32>
    %c1_i32_91 = arith.constant 1 : i32
    %251 = tpu.dynamic_rotate %239 by %c1_i32_91 dim 1 : vector<16x256xf32>, i32 -> vector<16x256xf32>
    %252 = vector.broadcast %4 : vector<1x256xf32> to vector<16x256xf32>
    %253 = arith.mulf %251, %252 : vector<16x256xf32>
    %c255_i32_92 = arith.constant 255 : i32
    %254 = tpu.dynamic_rotate %239 by %c255_i32_92 dim 1 : vector<16x256xf32>, i32 -> vector<16x256xf32>
    %255 = vector.broadcast %5 : vector<1x256xf32> to vector<16x256xf32>
    %256 = arith.mulf %254, %255 : vector<16x256xf32>
    %c241_i32_93 = arith.constant 241 : i32
    %257 = tpu.dynamic_rotate %239 by %c241_i32_93 dim 1 : vector<16x256xf32>, i32 -> vector<16x256xf32>
    %258 = vector.broadcast %6 : vector<1x256xf32> to vector<16x256xf32>
    %259 = arith.mulf %257, %258 : vector<16x256xf32>
    %c240_i32_94 = arith.constant 240 : i32
    %260 = tpu.dynamic_rotate %239 by %c240_i32_94 dim 1 : vector<16x256xf32>, i32 -> vector<16x256xf32>
    %261 = vector.broadcast %7 : vector<1x256xf32> to vector<16x256xf32>
    %262 = arith.mulf %260, %261 : vector<16x256xf32>
    %c239_i32_95 = arith.constant 239 : i32
    %263 = tpu.dynamic_rotate %239 by %c239_i32_95 dim 1 : vector<16x256xf32>, i32 -> vector<16x256xf32>
    %264 = vector.broadcast %8 : vector<1x256xf32> to vector<16x256xf32>
    %265 = arith.mulf %263, %264 : vector<16x256xf32>
    %266 = tpu.concatenate %244, %247, %250, %253, %239, %256, %259, %262, %265 in 0 : vector<16x256xf32>, vector<16x256xf32>, vector<16x256xf32>, vector<16x256xf32>, vector<16x256xf32>, vector<16x256xf32>, vector<16x256xf32>, vector<16x256xf32>, vector<16x256xf32> -> vector<144x256xf32>
    %267 = arith.truncf %266 : vector<144x256xf32> to vector<144x256xbf16>
    %cst_96 = arith.constant dense<0.000000e+00> : vector<16x256xf32>
    %268 = tpu.matmul %240, %267, %cst_96 {dimension_numbers = #tpu.dot_dimension_numbers<[1], [0], [0], [1], [0, 0, 1, 1], [], []>} : vector<16x144xbf16>, vector<144x256xbf16>, vector<16x256xf32> -> vector<16x256xf32>
    %269 = vector.broadcast %241 : vector<16x1xf32> to vector<16x256xf32>
    %270 = arith.addf %268, %269 : vector<16x256xf32>
    %271 = arith.addf %270, %206 : vector<16x256xf32>
    %c88 = arith.constant 88 : index
    %c0_97 = arith.constant 0 : index
    %272 = vector.load %arg3[%c88, %c0_97] : memref<128x144xbf16, #tpu.memory_space<vmem>>, vector<16x144xbf16>
    %c88_98 = arith.constant 88 : index
    %c0_99 = arith.constant 0 : index
    %273 = vector.load %arg4[%c88_98, %c0_99] : memref<128x1xf32, #tpu.memory_space<vmem>>, vector<16x1xf32>
    %c17_i32_100 = arith.constant 17 : i32
    %274 = tpu.dynamic_rotate %271 by %c17_i32_100 dim 1 : vector<16x256xf32>, i32 -> vector<16x256xf32>
    %275 = vector.broadcast %1 : vector<1x256xf32> to vector<16x256xf32>
    %276 = arith.mulf %274, %275 : vector<16x256xf32>
    %c16_i32_101 = arith.constant 16 : i32
    %277 = tpu.dynamic_rotate %271 by %c16_i32_101 dim 1 : vector<16x256xf32>, i32 -> vector<16x256xf32>
    %278 = vector.broadcast %2 : vector<1x256xf32> to vector<16x256xf32>
    %279 = arith.mulf %277, %278 : vector<16x256xf32>
    %c15_i32_102 = arith.constant 15 : i32
    %280 = tpu.dynamic_rotate %271 by %c15_i32_102 dim 1 : vector<16x256xf32>, i32 -> vector<16x256xf32>
    %281 = vector.broadcast %3 : vector<1x256xf32> to vector<16x256xf32>
    %282 = arith.mulf %280, %281 : vector<16x256xf32>
    %c1_i32_103 = arith.constant 1 : i32
    %283 = tpu.dynamic_rotate %271 by %c1_i32_103 dim 1 : vector<16x256xf32>, i32 -> vector<16x256xf32>
    %284 = vector.broadcast %4 : vector<1x256xf32> to vector<16x256xf32>
    %285 = arith.mulf %283, %284 : vector<16x256xf32>
    %c255_i32_104 = arith.constant 255 : i32
    %286 = tpu.dynamic_rotate %271 by %c255_i32_104 dim 1 : vector<16x256xf32>, i32 -> vector<16x256xf32>
    %287 = vector.broadcast %5 : vector<1x256xf32> to vector<16x256xf32>
    %288 = arith.mulf %286, %287 : vector<16x256xf32>
    %c241_i32_105 = arith.constant 241 : i32
    %289 = tpu.dynamic_rotate %271 by %c241_i32_105 dim 1 : vector<16x256xf32>, i32 -> vector<16x256xf32>
    %290 = vector.broadcast %6 : vector<1x256xf32> to vector<16x256xf32>
    %291 = arith.mulf %289, %290 : vector<16x256xf32>
    %c240_i32_106 = arith.constant 240 : i32
    %292 = tpu.dynamic_rotate %271 by %c240_i32_106 dim 1 : vector<16x256xf32>, i32 -> vector<16x256xf32>
    %293 = vector.broadcast %7 : vector<1x256xf32> to vector<16x256xf32>
    %294 = arith.mulf %292, %293 : vector<16x256xf32>
    %c239_i32_107 = arith.constant 239 : i32
    %295 = tpu.dynamic_rotate %271 by %c239_i32_107 dim 1 : vector<16x256xf32>, i32 -> vector<16x256xf32>
    %296 = vector.broadcast %8 : vector<1x256xf32> to vector<16x256xf32>
    %297 = arith.mulf %295, %296 : vector<16x256xf32>
    %298 = tpu.concatenate %276, %279, %282, %285, %271, %288, %291, %294, %297 in 0 : vector<16x256xf32>, vector<16x256xf32>, vector<16x256xf32>, vector<16x256xf32>, vector<16x256xf32>, vector<16x256xf32>, vector<16x256xf32>, vector<16x256xf32>, vector<16x256xf32> -> vector<144x256xf32>
    %299 = arith.truncf %298 : vector<144x256xf32> to vector<144x256xbf16>
    %cst_108 = arith.constant dense<0.000000e+00> : vector<16x256xf32>
    %300 = tpu.matmul %272, %299, %cst_108 {dimension_numbers = #tpu.dot_dimension_numbers<[1], [0], [0], [1], [0, 0, 1, 1], [], []>} : vector<16x144xbf16>, vector<144x256xbf16>, vector<16x256xf32> -> vector<16x256xf32>
    %301 = vector.broadcast %273 : vector<16x1xf32> to vector<16x256xf32>
    %302 = arith.addf %300, %301 : vector<16x256xf32>
    %cst_109 = arith.constant 0.000000e+00 : f32
    %303 = vector.broadcast %cst_109 : f32 to vector<16x256xf32>
    %304 = arith.maximumf %302, %303 : vector<16x256xf32>
    %c104 = arith.constant 104 : index
    %c0_110 = arith.constant 0 : index
    %305 = vector.load %arg3[%c104, %c0_110] : memref<128x144xbf16, #tpu.memory_space<vmem>>, vector<16x144xbf16>
    %c104_111 = arith.constant 104 : index
    %c0_112 = arith.constant 0 : index
    %306 = vector.load %arg4[%c104_111, %c0_112] : memref<128x1xf32, #tpu.memory_space<vmem>>, vector<16x1xf32>
    %c17_i32_113 = arith.constant 17 : i32
    %307 = tpu.dynamic_rotate %304 by %c17_i32_113 dim 1 : vector<16x256xf32>, i32 -> vector<16x256xf32>
    %308 = vector.broadcast %1 : vector<1x256xf32> to vector<16x256xf32>
    %309 = arith.mulf %307, %308 : vector<16x256xf32>
    %c16_i32_114 = arith.constant 16 : i32
    %310 = tpu.dynamic_rotate %304 by %c16_i32_114 dim 1 : vector<16x256xf32>, i32 -> vector<16x256xf32>
    %311 = vector.broadcast %2 : vector<1x256xf32> to vector<16x256xf32>
    %312 = arith.mulf %310, %311 : vector<16x256xf32>
    %c15_i32_115 = arith.constant 15 : i32
    %313 = tpu.dynamic_rotate %304 by %c15_i32_115 dim 1 : vector<16x256xf32>, i32 -> vector<16x256xf32>
    %314 = vector.broadcast %3 : vector<1x256xf32> to vector<16x256xf32>
    %315 = arith.mulf %313, %314 : vector<16x256xf32>
    %c1_i32_116 = arith.constant 1 : i32
    %316 = tpu.dynamic_rotate %304 by %c1_i32_116 dim 1 : vector<16x256xf32>, i32 -> vector<16x256xf32>
    %317 = vector.broadcast %4 : vector<1x256xf32> to vector<16x256xf32>
    %318 = arith.mulf %316, %317 : vector<16x256xf32>
    %c255_i32_117 = arith.constant 255 : i32
    %319 = tpu.dynamic_rotate %304 by %c255_i32_117 dim 1 : vector<16x256xf32>, i32 -> vector<16x256xf32>
    %320 = vector.broadcast %5 : vector<1x256xf32> to vector<16x256xf32>
    %321 = arith.mulf %319, %320 : vector<16x256xf32>
    %c241_i32_118 = arith.constant 241 : i32
    %322 = tpu.dynamic_rotate %304 by %c241_i32_118 dim 1 : vector<16x256xf32>, i32 -> vector<16x256xf32>
    %323 = vector.broadcast %6 : vector<1x256xf32> to vector<16x256xf32>
    %324 = arith.mulf %322, %323 : vector<16x256xf32>
    %c240_i32_119 = arith.constant 240 : i32
    %325 = tpu.dynamic_rotate %304 by %c240_i32_119 dim 1 : vector<16x256xf32>, i32 -> vector<16x256xf32>
    %326 = vector.broadcast %7 : vector<1x256xf32> to vector<16x256xf32>
    %327 = arith.mulf %325, %326 : vector<16x256xf32>
    %c239_i32_120 = arith.constant 239 : i32
    %328 = tpu.dynamic_rotate %304 by %c239_i32_120 dim 1 : vector<16x256xf32>, i32 -> vector<16x256xf32>
    %329 = vector.broadcast %8 : vector<1x256xf32> to vector<16x256xf32>
    %330 = arith.mulf %328, %329 : vector<16x256xf32>
    %331 = tpu.concatenate %309, %312, %315, %318, %304, %321, %324, %327, %330 in 0 : vector<16x256xf32>, vector<16x256xf32>, vector<16x256xf32>, vector<16x256xf32>, vector<16x256xf32>, vector<16x256xf32>, vector<16x256xf32>, vector<16x256xf32>, vector<16x256xf32> -> vector<144x256xf32>
    %332 = arith.truncf %331 : vector<144x256xf32> to vector<144x256xbf16>
    %cst_121 = arith.constant dense<0.000000e+00> : vector<16x256xf32>
    %333 = tpu.matmul %305, %332, %cst_121 {dimension_numbers = #tpu.dot_dimension_numbers<[1], [0], [0], [1], [0, 0, 1, 1], [], []>} : vector<16x144xbf16>, vector<144x256xbf16>, vector<16x256xf32> -> vector<16x256xf32>
    %334 = vector.broadcast %306 : vector<16x1xf32> to vector<16x256xf32>
    %335 = arith.addf %333, %334 : vector<16x256xf32>
    %336 = arith.addf %335, %271 : vector<16x256xf32>
    %c120 = arith.constant 120 : index
    %c0_122 = arith.constant 0 : index
    %337 = vector.load %arg3[%c120, %c0_122] : memref<128x144xbf16, #tpu.memory_space<vmem>>, vector<1x144xbf16>
    %c120_123 = arith.constant 120 : index
    %c0_124 = arith.constant 0 : index
    %338 = vector.load %arg4[%c120_123, %c0_124] : memref<128x1xf32, #tpu.memory_space<vmem>>, vector<1x1xf32>
    %c17_i32_125 = arith.constant 17 : i32
    %339 = tpu.dynamic_rotate %336 by %c17_i32_125 dim 1 : vector<16x256xf32>, i32 -> vector<16x256xf32>
    %340 = vector.broadcast %1 : vector<1x256xf32> to vector<16x256xf32>
    %341 = arith.mulf %339, %340 : vector<16x256xf32>
    %c16_i32_126 = arith.constant 16 : i32
    %342 = tpu.dynamic_rotate %336 by %c16_i32_126 dim 1 : vector<16x256xf32>, i32 -> vector<16x256xf32>
    %343 = vector.broadcast %2 : vector<1x256xf32> to vector<16x256xf32>
    %344 = arith.mulf %342, %343 : vector<16x256xf32>
    %c15_i32_127 = arith.constant 15 : i32
    %345 = tpu.dynamic_rotate %336 by %c15_i32_127 dim 1 : vector<16x256xf32>, i32 -> vector<16x256xf32>
    %346 = vector.broadcast %3 : vector<1x256xf32> to vector<16x256xf32>
    %347 = arith.mulf %345, %346 : vector<16x256xf32>
    %c1_i32_128 = arith.constant 1 : i32
    %348 = tpu.dynamic_rotate %336 by %c1_i32_128 dim 1 : vector<16x256xf32>, i32 -> vector<16x256xf32>
    %349 = vector.broadcast %4 : vector<1x256xf32> to vector<16x256xf32>
    %350 = arith.mulf %348, %349 : vector<16x256xf32>
    %c255_i32_129 = arith.constant 255 : i32
    %351 = tpu.dynamic_rotate %336 by %c255_i32_129 dim 1 : vector<16x256xf32>, i32 -> vector<16x256xf32>
    %352 = vector.broadcast %5 : vector<1x256xf32> to vector<16x256xf32>
    %353 = arith.mulf %351, %352 : vector<16x256xf32>
    %c241_i32_130 = arith.constant 241 : i32
    %354 = tpu.dynamic_rotate %336 by %c241_i32_130 dim 1 : vector<16x256xf32>, i32 -> vector<16x256xf32>
    %355 = vector.broadcast %6 : vector<1x256xf32> to vector<16x256xf32>
    %356 = arith.mulf %354, %355 : vector<16x256xf32>
    %c240_i32_131 = arith.constant 240 : i32
    %357 = tpu.dynamic_rotate %336 by %c240_i32_131 dim 1 : vector<16x256xf32>, i32 -> vector<16x256xf32>
    %358 = vector.broadcast %7 : vector<1x256xf32> to vector<16x256xf32>
    %359 = arith.mulf %357, %358 : vector<16x256xf32>
    %c239_i32_132 = arith.constant 239 : i32
    %360 = tpu.dynamic_rotate %336 by %c239_i32_132 dim 1 : vector<16x256xf32>, i32 -> vector<16x256xf32>
    %361 = vector.broadcast %8 : vector<1x256xf32> to vector<16x256xf32>
    %362 = arith.mulf %360, %361 : vector<16x256xf32>
    %363 = tpu.concatenate %341, %344, %347, %350, %336, %353, %356, %359, %362 in 0 : vector<16x256xf32>, vector<16x256xf32>, vector<16x256xf32>, vector<16x256xf32>, vector<16x256xf32>, vector<16x256xf32>, vector<16x256xf32>, vector<16x256xf32>, vector<16x256xf32> -> vector<144x256xf32>
    %364 = arith.truncf %363 : vector<144x256xf32> to vector<144x256xbf16>
    %cst_133 = arith.constant dense<0.000000e+00> : vector<1x256xf32>
    %365 = tpu.matmul %337, %364, %cst_133 {dimension_numbers = #tpu.dot_dimension_numbers<[1], [0], [0], [1], [0, 0, 1, 1], [], []>} : vector<1x144xbf16>, vector<144x256xbf16>, vector<1x256xf32> -> vector<1x256xf32>
    %366 = vector.broadcast %338 : vector<1x1xf32> to vector<1x256xf32>
    %367 = arith.addf %365, %366 : vector<1x256xf32>
    %c0_134 = arith.constant 0 : index
    %c0_135 = arith.constant 0 : index
    %c0_136 = arith.constant 0 : index
    %368 = vector.load %arg5[%c0_134, %c0_135, %c0_136] : memref<1x1x256xf32, #tpu.memory_space<vmem>>, vector<1x1x256xf32>
    %369 = vector.shape_cast %368 : vector<1x1x256xf32> to vector<1x256xf32>
    %370 = vector.shape_cast %367 : vector<1x256xf32> to vector<1x1x256xf32>
    tpu.vector_store %arg5[%c0_134, %c0_135, %c0_136], %370 {strides = array<i32>} : memref<1x1x256xf32, #tpu.memory_space<vmem>>, vector<1x1x256xf32>,
    return
  }
  func.func @transform_0(%arg0: i32) -> (i32, i32, i32) {
    %c0_i32 = arith.constant 0 : i32
    %c0_i32_0 = arith.constant 0 : i32
    %c0_i32_1 = arith.constant 0 : i32
    return %arg0, %c0_i32, %c0_i32_0 : i32, i32, i32
  }
  func.func @transform_1(%arg0: i32) -> (i32, i32) {
    %c0_i32 = arith.constant 0 : i32
    %c0_i32_0 = arith.constant 0 : i32
    %c0_i32_1 = arith.constant 0 : i32
    return %c0_i32, %c0_i32_0 : i32, i32
  }
  func.func @transform_2(%arg0: i32) -> (i32, i32) {
    %c0_i32 = arith.constant 0 : i32
    %c0_i32_0 = arith.constant 0 : i32
    %c0_i32_1 = arith.constant 0 : i32
    return %c0_i32, %c0_i32_0 : i32, i32
  }
  func.func @transform_3(%arg0: i32) -> (i32, i32) {
    %c0_i32 = arith.constant 0 : i32
    %c0_i32_0 = arith.constant 0 : i32
    %c0_i32_1 = arith.constant 0 : i32
    return %c0_i32, %c0_i32_0 : i32, i32
  }
  func.func @transform_4(%arg0: i32) -> (i32, i32, i32) {
    %c0_i32 = arith.constant 0 : i32
    %c0_i32_0 = arith.constant 0 : i32
    %c0_i32_1 = arith.constant 0 : i32
    return %arg0, %c0_i32, %c0_i32_0 : i32, i32, i32
  }
}

</mosaic_0001>

<bundles_post_ra>
// kernel: decoder_heat_forward.1
= control target key start
LH: loop header
LB: loop body
LE: loop exit
PB: predicated region body
PF: predicated region fallthrough
CT: control target
= control target key end

     0   :  { %s2364_s15 = smov 0   ;;  %s4101_s0 = inlined_call_operand.vmem [shape: f32[2,8,256], index: 0, kind: input, shape index: {}]   ;;  %s4102_s1 = inlined_call_operand.vmem [shape: f32[8,256], index: 1, kind: input, shape index: {}]   ;;  %s4103_s2 = inlined_call_operand.vmem [shape: bf16[128,144], index: 2, kind: input, shape index: {}]   ;;  %s4104_s3 = inlined_call_operand.vmem [shape: f32[128,1], index: 3, kind: input, shape index: {}]   ;;  %s4105_s4 = inlined_call_operand.vmem [shape: f32[2,1,256], index: 4, kind: output, shape index: {}]  }
   0x1 LB: > { %s2247_s16 = sadd.s32 4294967295, %s2327_s15   ;;  %p2251_p0 = scmp.ge.s32.totalorder %s2327_s15, 1  ;;  %s2327_s15 = sphi %s2364_s15, %s14_s15  }
   0x2   : > { %p162_p1 = scmp.lt.s32.totalorder %s2327_s15, 3 }
   0x4   : > { %p163_p2 = pnand %p2251_p0, %p162_p1 }
   0x5   : > { %p187_p3 = scmp.lt.s32.totalorder (!%p163_p2), %s2247_s16, 1  ;;  %s2329_s21 = smov (!%p163_p2), 16   ;;  %v2335_v2 = vmov (!%p163_p2), 0   ;;  %v202_v3 = vld [vmem:[%s4104_s3] sm:$0xff] (!%p163_p2)  ;;  %v207_v4 = vlaneseq (!%p163_p2)  ;;  %v2437_v10 = vld [vmem:[%s4102_s1 + $0x8] sm:$0xff] (!%p163_p2)  ;;  %vm360_vm8 = vcmask (!%p163_p2), 1043456  }
   0x6   : > { %166 = sbr.rel (%p163_p2) target bundleno = 4249 (0x1099), region = 36  ;;  %s2330_s22 = smov (!%p163_p2), 17   ;;  %399 = vmatprep.mubr.bf16.mxu1 (!%p163_p2), %v2335_v2  ;;  %2304 = vset.pattern.permute.xlu0 (!%p163_p2), %v2335_v2  ;;  %v2432_v9 = vld [vmem:[%s4102_s1] sm:$0xff] (!%p163_p2)  ;;  %vm356_vm9 = vcmask (!%p163_p2), 588800   ;;  %vm1260_vm10 = vcmask (!%p163_p2), 130048  }
   0x7   : > { %s2331_s23 = smov (!%p163_p2), 15   ;;  %s2332_s24 = smov (!%p163_p2), 1   ;;  %665 = vmatprep.mubr.bf16.mxu0 (!%p163_p2), %v2335_v2  ;;  %2305 = vset.pattern.permute.xlu1 (!%p163_p2), %v2335_v2  ;;  %v2422_v5 = vshrl.u32 (!%p163_p2), %v207_v4, 7  ;;  %v2425_v6 = vand.u32 (!%p163_p2), 127, %v207_v4  ;;  %vm2191_vm11 = vcmp.lt.s32.totalorder (!%p163_p2), %v207_v4, 256 }
   0x8   : > { %s2333_s25 = smov (!%p163_p2), 127   ;;  %s2334_s26 = smov (!%p163_p2), 113  }
   0x9   : > { %s2336_s27 = smov (!%p163_p2), 112   ;;  %s2337_s28 = smov (!%p163_p2), 111   ;;  %v214_v7 = vsub.s32 (!%p163_p2), 0, %v2422_v5  ;;  %v231_v8 = vsub.s32 (!%p163_p2), 1, %v2422_v5  ;;  %vm226_vm0 = vcmp.lt.s32.totalorder (!%p163_p2), %v2425_v6, 16  ;;  %vm209_vm1 = vcmp.lt.s32.totalorder (!%p163_p2), %v2425_v6, 17 }
   0xa   : > { %v248_v19 = vsub.s32 (!%p163_p2), 2, %v2422_v5  ;;  %v265_v20 = vsub.s32 (!%p163_p2), 3, %v2422_v5  ;;  %vm243_vm2 = vcmp.lt.s32.totalorder (!%p163_p2), %v2425_v6, 15  ;;  %vm260_vm3 = vcmp.lt.s32.totalorder (!%p163_p2), %v2425_v6, 1 }
   0xb   : > { %v2442_v13 = vrot.slane (!%p163_p2), %v2437_v10, %v214_v7  ;;  %v2445_v14 = vrot.slane (!%p163_p2), %v2437_v10, %v231_v8  ;;  %v2448_v15 = vrot.slane (!%p163_p2), %v2432_v9, %v214_v7  ;;  %v2451_v16 = vrot.slane (!%p163_p2), %v2432_v9, %v231_v8 }
   0xc   : > { %v282_v33 = vsub.s32 (!%p163_p2), 4, %v2422_v5  ;;  %v2471_v34 = vrot.slane (!%p163_p2), %v2432_v9, %v248_v19  ;;  %v2474_v35 = vrot.slane (!%p163_p2), %v2437_v10, %v248_v19  ;;  %v2477_v36 = vrot.slane (!%p163_p2), %v2432_v9, %v265_v20 }
   0xd   : > { %s4107_s16 = smov (!%p187_p3, %s2247_s16), 1  ;;  %v2480_v37 = vrot.slane %v2437_v10, %v265_v20  ;;  %vm277_vm4 = vcmp.lt.s32.totalorder %v2425_v6, 127  ;;  %v299_v58 = vsub.s32 5, %v2422_v5  ;;  %v316_v59 = vsub.s32 6, %v2422_v5 }
   0xe   : > { %s2285_s17 = sshll.u32 %s4107_s16, 4  ;;  %v2492_v44 = vrot.slane %v2432_v9, %v282_v33  ;;  %v2495_v45 = vrot.slane %v2437_v10, %v282_v33  ;;  %vm294_vm5 = vcmp.lt.s32.totalorder %v2425_v6, 113  ;;  %vm311_vm6 = vcmp.lt.s32.totalorder %v2425_v6, 112 }
   0xf   : > { %s191_s20 = scalar_lea.vmem %s4101_s0, %s2285_s17  ;;  %v2515_v7 = vrot.slane %v2432_v9, %v299_v58  ;;  %v2518_v8 = vrot.slane %v2437_v10, %v299_v58  ;;  %vm328_vm7 = vcmp.lt.s32.totalorder %v2425_v6, 111  ;;  %v2338_v6 = vmov 1966171168  }
  0x10   : > { %v2378_v0 = vld [vmem:[%s191_s20] sm:$0xff]  ;;  %v2384_v1 = vld [vmem:[%s191_s20 + $0x8] sm:$0xff] }
  0x11   : > { %222 = vrot.lane.b32.xlu1 %v2378_v0, %s2329_s21  ;;  %203 = vrot.lane.b32.xlu0 %v2378_v0, %s2330_s22 }
  0x15   : > { %224 = vrot.lane.b32.xlu1 %v2384_v1, %s2329_s21  ;;  %205 = vrot.lane.b32.xlu0 %v2384_v1, %s2330_s22 }
  0x19   : > { %241 = vrot.lane.b32.xlu1 %v2384_v1, %s2331_s23  ;;  %239 = vrot.lane.b32.xlu0 %v2378_v0, %s2331_s23 }
  0x1d   : > { %258 = vrot.lane.b32.xlu1 %v2384_v1, %s2332_s24  ;;  %256 = vrot.lane.b32.xlu0 %v2378_v0, %s2332_s24 }
  0x21   : > { %275 = vrot.lane.b32.xlu1 %v2384_v1, %s2333_s25  ;;  %273 = vrot.lane.b32.xlu0 %v2378_v0, %s2333_s25 }
  0x25   : > { %292 = vrot.lane.b32.xlu1 %v2384_v1, %s2334_s26  ;;  %290 = vrot.lane.b32.xlu0 %v2378_v0, %s2334_s26 }
  0x29   : > { %309 = vrot.lane.b32.xlu1 %v2384_v1, %s2336_s27  ;;  %307 = vrot.lane.b32.xlu0 %v2378_v0, %s2336_s27 }
  0x2d   : > { %326 = vrot.lane.b32.xlu1 %v2384_v1, %s2337_s28  ;;  %324 = vrot.lane.b32.xlu0 %v2378_v0, %s2337_s28 }
  0x31   : > { %353 = vperm.xlu0 %2304, %v202_v3   ;;  %v333_v3 = vsub.s32 7, %v2422_v5 }
  0x83   : > { %v223_v11 = vpop.permute.xlu1 %222  ;;  %v204_v12 = vpop.permute.xlu0 %203 }
  0x87   : > { %v225_v17 = vpop.permute.xlu1 %224  ;;  %v206_v18 = vpop.permute.xlu0 %205 }
  0x88   : > { %v228_v21 = vsel %vm226_vm0, %v225_v17, %v223_v11  ;;  %v211_v22 = vsel %vm209_vm1, %v206_v18, %v204_v12  ;;  %v210_v23 = vsel %vm209_vm1, %v204_v12, %v206_v18  ;;  %v227_v24 = vsel %vm226_vm0, %v223_v11, %v225_v17 }
  0x89   : > { %v221_v25 = vmul.f32 %v2442_v13, %v210_v23  ;;  %v238_v26 = vmul.f32 %v2445_v14, %v227_v24  ;;  %v220_v27 = vmul.f32 %v2448_v15, %v211_v22  ;;  %v237_v28 = vmul.f32 %v2451_v16, %v228_v21 }
  0x8a   : > { %v2521_v11 = vrot.slane %v2432_v9, %v316_v59  ;;  %v2524_v12 = vrot.slane %v2437_v10, %v316_v59  ;;  %v2536_v21 = vrot.slane %v2437_v10, %v333_v3  ;;  %v2539_v22 = vrot.slane %v2432_v9, %v333_v3 }
  0x8b   : > { %v242_v29 = vpop.permute.xlu1 %241  ;;  %v240_v30 = vpop.permute.xlu0 %239  ;;  %v342_v31 = vpack.c.bf16 %v238_v26, %v221_v25  ;;  %v341_v32 = vpack.c.bf16 %v237_v28, %v220_v27 }
  0x8c   : > { %v244_v38 = vsel %vm243_vm2, %v240_v30, %v242_v29  ;;  %v245_v39 = vsel %vm243_vm2, %v242_v29, %v240_v30 }
  0x8d   : > { %367 = vmatprep.subr.bf16.mxu1 %v342_v31  ;;  %v254_v46 = vmul.f32 %v2471_v34, %v245_v39  ;;  %v255_v47 = vmul.f32 %v2474_v35, %v244_v38 }
  0x8e   : > { %368 = vmatpush1.bf16.msra.mxu1 %v341_v32 }
  0x8f   : > { %v259_v40 = vpop.permute.xlu1 %258  ;;  %v257_v41 = vpop.permute.xlu0 %256 }
  0x90   : > { %v261_v42 = vsel %vm260_vm3, %v257_v41, %v259_v40  ;;  %v262_v43 = vsel %vm260_vm3, %v259_v40, %v257_v41  ;;  %v201_v40 = vld [vmem:[%s4103_s2] sm:$0xf] }
  0x91   : > { %v271_v48 = vmul.f32 %v2477_v36, %v262_v43  ;;  %v272_v49 = vmul.f32 %v2480_v37, %v261_v42 }
  0x93   : > { %v276_v50 = vpop.permute.xlu1 %275  ;;  %v274_v51 = vpop.permute.xlu0 %273  ;;  %v344_v52 = vpack.c.bf16 %v272_v49, %v255_v47  ;;  %v343_v53 = vpack.c.bf16 %v271_v48, %v254_v46 }
  0x94   : > { %v278_v54 = vsel %vm277_vm4, %v274_v51, %v276_v50  ;;  %v279_v55 = vsel %vm277_vm4, %v276_v50, %v274_v51 }
  0x95   : > { %v288_v56 = vmul.f32 %v2492_v44, %v278_v54  ;;  %v289_v57 = vmul.f32 %v2495_v45, %v279_v55  ;;  %369 = vmatprep.subr.bf16.mxu1 %v344_v52  ;;  %v411_v52 = vld [vmem:[%s4104_s3 + $0x8] sm:$0xff] }
  0x96   : > { %370 = vmatpush1.bf16.msra.mxu1 %v343_v53 }
  0x97   : > { %v293_v60 = vpop.permute.xlu1 %292  ;;  %v291_v61 = vpop.permute.xlu0 %290  ;;  %v346_v62 = vpack.c.bf16 %v289_v57, %v2384_v1  ;;  %v345_v63 = vpack.c.bf16 %v288_v56, %v2378_v0 }
  0x98   : > { %v295_v0 = vsel %vm294_vm5, %v291_v61, %v293_v60  ;;  %v296_v1 = vsel %vm294_vm5, %v293_v60, %v291_v61 }
  0x99   : > { %371 = vmatprep.subr.bf16.mxu1 %v346_v62  ;;  %v305_v23 = vmul.f32 %v2515_v7, %v295_v0  ;;  %v306_v24 = vmul.f32 %v2518_v8, %v296_v1 }
  0x9a   : > { %372 = vmatpush1.bf16.msra.mxu1 %v345_v63 }
  0x9b   : > { %v310_v17 = vpop.permute.xlu1 %309  ;;  %v308_v18 = vpop.permute.xlu0 %307 }
  0x9c   : > { %v312_v19 = vsel %vm311_vm6, %v308_v18, %v310_v17  ;;  %v313_v20 = vsel %vm311_vm6, %v310_v17, %v308_v18 }
  0x9d   : > { %v322_v25 = vmul.f32 %v2521_v11, %v312_v19  ;;  %v323_v26 = vmul.f32 %v2524_v12, %v313_v20 }
  0x9f   : > { %v327_v27 = vpop.permute.xlu1 %326  ;;  %v325_v28 = vpop.permute.xlu0 %324  ;;  %v348_v29 = vpack.c.bf16 %v323_v26, %v306_v24  ;;  %v347_v30 = vpack.c.bf16 %v322_v25, %v305_v23 }
  0xa0   : > { %v329_v31 = vsel %vm328_vm7, %v325_v28, %v327_v27  ;;  %v330_v10 = vsel %vm328_vm7, %v327_v27, %v325_v28 }
  0xa1   : > { %v340_v9 = vmul.f32 %v2536_v21, %v330_v10  ;;  %373 = vmatprep.subr.bf16.mxu1 %v348_v29  ;;  %v339_v32 = vmul.f32 %v2539_v22, %v329_v31 }
  0xa2   : > { %374 = vmatpush1.bf16.msra.mxu1 %v347_v30 }
  0xa3   : > { %v350_v33 = vpack.c.bf16 %v340_v9, %v340_v9  ;;  %v349_v38 = vpack.c.bf16 %v339_v32, %v339_v32 }
  0xa5   : > { %2255 = vmatprep.subr.msk.bf16.mxu1 %vm360_vm8, %v350_v33  ;;  %v362_v39 = vsel %vm360_vm8, %v349_v38, 0 }
  0xa6   : > { %376 = vmatpush1.bf16.msra.mxu1 %v362_v39 }
  0xa9   : > { %2256 = vmatmul.mubr.msk.bf16.vlgmr.msra.gmra.mrb[0].mxu1 %vm356_vm9, %v201_v40 }
  0xaa   : > { %532 = vmatprep.mubr.bf16.mxu1 %v2335_v2 }
  0xb0   : > { %v354_v41 = vpop.permute.xlu0 %353 }
 0x17c   : > { %v401_v42 = vpop.f32.mrb[0].mxu1 }
 0x17d   : > { %v402_v43 = vadd.f32 %v401_v42, %v354_v41  ;;  %v403_v46 = vpop.f32.mrb[1].mxu1 }
 0x17e   : > { %v405_v47 = vpop.f32.mrb[2].mxu1  ;;  %v404_v49 = vadd.f32 %v403_v46, %v354_v41 }
 0x17f   : > { %v2558_v48 = vmax.f32 %v402_v43, 0.0  ;;  %v406_v50 = vpop.f32.mrb[3].mxu1 }
 0x180   : > { %v2564_v51 = vmax.f32 %v404_v49, 0.0 }
 0x181   : > { %420 = vrot.lane.b32.xlu0 %v2558_v48, %s2329_s21  ;;  %412 = vrot.lane.b32.xlu1 %v2558_v48, %s2330_s22 }
 0x185   : > { %428 = vrot.lane.b32.xlu0 %v2558_v48, %s2331_s23  ;;  %414 = vrot.lane.b32.xlu1 %v2564_v51, %s2330_s22 }
 0x189   : > { %436 = vrot.lane.b32.xlu0 %v2558_v48, %s2332_s24  ;;  %422 = vrot.lane.b32.xlu1 %v2564_v51, %s2329_s21 }
 0x18d   : > { %444 = vrot.lane.b32.xlu0 %v2558_v48, %s2333_s25  ;;  %430 = vrot.lane.b32.xlu1 %v2564_v51, %s2331_s23 }
 0x191   : > { %452 = vrot.lane.b32.xlu0 %v2558_v48, %s2334_s26  ;;  %438 = vrot.lane.b32.xlu1 %v2564_v51, %s2332_s24 }
 0x195   : > { %460 = vrot.lane.b32.xlu0 %v2558_v48, %s2336_s27  ;;  %446 = vrot.lane.b32.xlu1 %v2564_v51, %s2333_s25 }
 0x199   : > { %468 = vrot.lane.b32.xlu0 %v2558_v48, %s2337_s28  ;;  %454 = vrot.lane.b32.xlu1 %v2564_v51, %s2334_s26 }
 0x19d   : > { %488 = vperm.xlu0 %2304, %v411_v52   ;;  %462 = vrot.lane.b32.xlu1 %v2564_v51, %s2336_s27 }
 0x1a1   : > { %470 = vrot.lane.b32.xlu1 %v2564_v51, %s2337_s28 }
 0x1f3   : > { %v421_v53 = vpop.permute.xlu0 %420  ;;  %v413_v54 = vpop.permute.xlu1 %412 }
 0x1f7   : > { %v429_v55 = vpop.permute.xlu0 %428  ;;  %v415_v56 = vpop.permute.xlu1 %414 }
 0x1f8   : > { %v416_v57 = vsel %vm209_vm1, %v413_v54, %v415_v56  ;;  %v417_v58 = vsel %vm209_vm1, %v415_v56, %v413_v54 }
 0x1f9   : > { %v418_v63 = vmul.f32 %v417_v58, %v2448_v15  ;;  %v419_v3 = vmul.f32 %v416_v57, %v2442_v13 }
 0x1fb   : > { %v437_v59 = vpop.permute.xlu0 %436  ;;  %v423_v60 = vpop.permute.xlu1 %422 }
 0x1fc   : > { %v424_v61 = vsel %vm226_vm0, %v421_v53, %v423_v60  ;;  %v425_v62 = vsel %vm226_vm0, %v423_v60, %v421_v53 }
 0x1fd   : > { %v426_v0 = vmul.f32 %v425_v62, %v2451_v16  ;;  %v427_v1 = vmul.f32 %v424_v61, %v2445_v14 }
 0x1ff   : > { %v476_v17 = vpack.c.bf16 %v426_v0, %v418_v63  ;;  %v431_v18 = vpop.permute.xlu1 %430  ;;  %v477_v19 = vpack.c.bf16 %v427_v1, %v419_v3  ;;  %v445_v20 = vpop.permute.xlu0 %444 }
 0x200   : > { %v432_v23 = vsel %vm243_vm2, %v429_v55, %v431_v18  ;;  %v433_v24 = vsel %vm243_vm2, %v431_v18, %v429_v55 }
 0x201   : > { %500 = vmatprep.subr.bf16.mxu1 %v477_v19  ;;  %v434_v28 = vmul.f32 %v433_v24, %v2471_v34  ;;  %v435_v29 = vmul.f32 %v432_v23, %v2474_v35 }
 0x202   : > { %501 = vmatpush1.bf16.msra.mxu1 %v476_v17 }
 0x203   : > { %v439_v25 = vpop.permute.xlu1 %438  ;;  %v453_v10 = vpop.permute.xlu0 %452 }
 0x204   : > { %v440_v26 = vsel %vm260_vm3, %v437_v59, %v439_v25  ;;  %v441_v27 = vsel %vm260_vm3, %v439_v25, %v437_v59 }
 0x205   : > { %v442_v30 = vmul.f32 %v441_v27, %v2477_v36  ;;  %v443_v31 = vmul.f32 %v440_v26, %v2480_v37 }
 0x207   : > { %v478_v9 = vpack.c.bf16 %v442_v30, %v434_v28  ;;  %v447_v32 = vpop.permute.xlu1 %446  ;;  %v479_v33 = vpack.c.bf16 %v443_v31, %v435_v29  ;;  %v461_v47 = vpop.permute.xlu0 %460 }
 0x208   : > { %v448_v38 = vsel %vm277_vm4, %v445_v20, %v447_v32  ;;  %v449_v39 = vsel %vm277_vm4, %v447_v32, %v445_v20  ;;  %v410_v20 = vld [vmem:[%s4103_s2 + $0x8] sm:$0xf] }
 0x209   : > { %v450_v40 = vmul.f32 %v448_v38, %v2492_v44  ;;  %v451_v41 = vmul.f32 %v449_v39, %v2495_v45  ;;  %502 = vmatprep.subr.bf16.mxu1 %v479_v33 }
 0x20a   : > { %503 = vmatpush1.bf16.msra.mxu1 %v478_v9 }
 0x20b   : > { %v480_v42 = vpack.c.bf16 %v450_v40, %v2558_v48  ;;  %v455_v43 = vpop.permute.xlu1 %454  ;;  %v481_v46 = vpack.c.bf16 %v451_v41, %v2564_v51  ;;  %v469_v59 = vpop.permute.xlu0 %468 }
 0x20c   : > { %v456_v49 = vsel %vm294_vm5, %v453_v10, %v455_v43  ;;  %v457_v50 = vsel %vm294_vm5, %v455_v43, %v453_v10  ;;  %v544_v10 = vld [vmem:[%s4104_s3 + $0x10] sm:$0xff] }
 0x20d   : > { %504 = vmatprep.subr.bf16.mxu1 %v481_v46  ;;  %v458_v55 = vmul.f32 %v456_v49, %v2515_v7  ;;  %v459_v56 = vmul.f32 %v457_v50, %v2518_v8 }
 0x20e   : > { %505 = vmatpush1.bf16.msra.mxu1 %v480_v42 }
 0x20f   : > { %v463_v52 = vpop.permute.xlu1 %462 }
 0x210   : > { %v464_v53 = vsel %vm311_vm6, %v461_v47, %v463_v52  ;;  %v465_v54 = vsel %vm311_vm6, %v463_v52, %v461_v47 }
 0x211   : > { %v466_v57 = vmul.f32 %v464_v53, %v2521_v11  ;;  %v467_v58 = vmul.f32 %v465_v54, %v2524_v12 }
 0x213   : > { %v482_v60 = vpack.c.bf16 %v466_v57, %v458_v55  ;;  %v471_v61 = vpop.permute.xlu1 %470  ;;  %v483_v62 = vpack.c.bf16 %v467_v58, %v459_v56 }
 0x214   : > { %v472_v63 = vsel %vm328_vm7, %v469_v59, %v471_v61  ;;  %v473_v3 = vsel %vm328_vm7, %v471_v61, %v469_v59 }
 0x215   : > { %v474_v0 = vmul.f32 %v472_v63, %v2539_v22  ;;  %v475_v1 = vmul.f32 %v473_v3, %v2536_v21  ;;  %506 = vmatprep.subr.bf16.mxu1 %v483_v62 }
 0x216   : > { %507 = vmatpush1.bf16.msra.mxu1 %v482_v60 }
 0x217   : > { %v484_v17 = vpack.c.bf16 %v474_v0, %v474_v0  ;;  %v485_v18 = vpack.c.bf16 %v475_v1, %v475_v1 }
 0x219   : > { %2257 = vmatprep.subr.msk.bf16.mxu1 %vm360_vm8, %v485_v18  ;;  %v495_v19 = vsel %vm360_vm8, %v484_v17, 0 }
 0x21a   : > { %509 = vmatpush1.bf16.msra.mxu1 %v495_v19 }
 0x21c   : > { %v489_v23 = vpop.permute.xlu0 %488 }
 0x21d   : > { %2258 = vmatmul.mubr.msk.bf16.vlgmr.msra.gmra.mrb[4].mxu1 %vm356_vm9, %v410_v20 }
 0x21e   : > { %798 = vmatprep.mubr.bf16.mxu1 %v2335_v2 }
 0x2f0   : > { %v534_v24 = vpop.f32.mrb[4].mxu1 }
 0x2f1   : > { %v535_v25 = vadd.f32 %v534_v24, %v489_v23  ;;  %v536_v26 = vpop.f32.mrb[5].mxu1 }
 0x2f2   : > { %v537_v27 = vadd.f32 %v536_v26, %v489_v23  ;;  %v538_v28 = vpop.f32.mrb[6].mxu1 }
 0x2f3   : > { %v2654_v29 = vmax.f32 %v535_v25, 0.0  ;;  %v539_v30 = vpop.f32.mrb[7].mxu1 }
 0x2f4   : > { %v542_v31 = vmax.f32 %v537_v27, 0.0 }
 0x2f5   : > { %545 = vrot.lane.b32.xlu1 %v2654_v29, %s2330_s22 }
 0x2f6   : > { %547 = vrot.lane.b32.xlu0 %v542_v31, %s2330_s22 }
 0x2f9   : > { %553 = vrot.lane.b32.xlu1 %v2654_v29, %s2329_s21 }
 0x2fa   : > { %555 = vrot.lane.b32.xlu0 %v542_v31, %s2329_s21 }
 0x2fd   : > { %561 = vrot.lane.b32.xlu1 %v2654_v29, %s2331_s23 }
 0x2fe   : > { %563 = vrot.lane.b32.xlu0 %v542_v31, %s2331_s23 }
 0x301   : > { %569 = vrot.lane.b32.xlu1 %v2654_v29, %s2332_s24 }
 0x302   : > { %571 = vrot.lane.b32.xlu0 %v542_v31, %s2332_s24 }
 0x305   : > { %577 = vrot.lane.b32.xlu1 %v2654_v29, %s2333_s25 }
 0x306   : > { %579 = vrot.lane.b32.xlu0 %v542_v31, %s2333_s25 }
 0x309   : > { %585 = vrot.lane.b32.xlu1 %v2654_v29, %s2334_s26 }
 0x30a   : > { %587 = vrot.lane.b32.xlu0 %v542_v31, %s2334_s26 }
 0x30d   : > { %593 = vrot.lane.b32.xlu1 %v2654_v29, %s2336_s27 }
 0x30e   : > { %595 = vrot.lane.b32.xlu0 %v542_v31, %s2336_s27 }
 0x311   : > { %601 = vrot.lane.b32.xlu1 %v2654_v29, %s2337_s28 }
 0x312   : > { %603 = vrot.lane.b32.xlu0 %v542_v31, %s2337_s28 }
 0x315   : > { %621 = vperm.xlu1 %2305, %v544_v10  }
 0x367   : > { %v546_v9 = vpop.permute.xlu1 %545 }
 0x368   : > { %v548_v32 = vpop.permute.xlu0 %547 }
 0x369   : > { %v550_v33 = vsel %vm209_vm1, %v548_v32, %v546_v9  ;;  %v549_v39 = vsel %vm209_vm1, %v546_v9, %v548_v32 }
 0x36a   : > { %v552_v43 = vmul.f32 %v549_v39, %v2442_v13  ;;  %v551_v47 = vmul.f32 %v550_v33, %v2448_v15 }
 0x36b   : > { %v554_v38 = vpop.permute.xlu1 %553 }
 0x36c   : > { %v556_v40 = vpop.permute.xlu0 %555 }
 0x36d   : > { %v558_v41 = vsel %vm226_vm0, %v556_v40, %v554_v38  ;;  %v557_v42 = vsel %vm226_vm0, %v554_v38, %v556_v40 }
 0x36e   : > { %v560_v46 = vmul.f32 %v557_v42, %v2445_v14  ;;  %v559_v49 = vmul.f32 %v558_v41, %v2451_v16 }
 0x36f   : > { %v562_v50 = vpop.permute.xlu1 %561 }
 0x370   : > { %v564_v52 = vpop.permute.xlu0 %563  ;;  %v610_v53 = vpack.c.bf16 %v560_v46, %v552_v43  ;;  %v609_v54 = vpack.c.bf16 %v559_v49, %v551_v47 }
 0x371   : > { %v565_v55 = vsel %vm243_vm2, %v562_v50, %v564_v52  ;;  %v566_v56 = vsel %vm243_vm2, %v564_v52, %v562_v50 }
 0x372   : > { %633 = vmatprep.subr.bf16.mxu0 %v610_v53  ;;  %v567_v61 = vmul.f32 %v566_v56, %v2471_v34  ;;  %v568_v62 = vmul.f32 %v565_v55, %v2474_v35  ;;  %v543_v56 = vld [vmem:[%s4103_s2 + $0x10] sm:$0xf] }
 0x373   : > { %634 = vmatpush1.bf16.msra.mxu0 %v609_v54  ;;  %v570_v57 = vpop.permute.xlu1 %569 }
 0x374   : > { %v572_v58 = vpop.permute.xlu0 %571 }
 0x375   : > { %v573_v59 = vsel %vm260_vm3, %v570_v57, %v572_v58  ;;  %v574_v60 = vsel %vm260_vm3, %v572_v58, %v570_v57 }
 0x376   : > { %v575_v63 = vmul.f32 %v574_v60, %v2477_v36  ;;  %v576_v3 = vmul.f32 %v573_v59, %v2480_v37 }
 0x377   : > { %v578_v0 = vpop.permute.xlu1 %577 }
 0x378   : > { %v580_v1 = vpop.permute.xlu0 %579  ;;  %v612_v17 = vpack.c.bf16 %v576_v3, %v568_v62  ;;  %v611_v18 = vpack.c.bf16 %v575_v63, %v567_v61 }
 0x379   : > { %v581_v19 = vsel %vm277_vm4, %v578_v0, %v580_v1  ;;  %v582_v20 = vsel %vm277_vm4, %v580_v1, %v578_v0 }
 0x37a   : > { %v583_v23 = vmul.f32 %v581_v19, %v2492_v44  ;;  %v584_v24 = vmul.f32 %v582_v20, %v2495_v45  ;;  %635 = vmatprep.subr.bf16.mxu0 %v612_v17 }
 0x37b   : > { %636 = vmatpush1.bf16.msra.mxu0 %v611_v18  ;;  %v586_v25 = vpop.permute.xlu1 %585 }
 0x37c   : > { %v588_v26 = vpop.permute.xlu0 %587  ;;  %v614_v27 = vpack.c.bf16 %v584_v24, %v542_v31  ;;  %v613_v28 = vpack.c.bf16 %v583_v23, %v2654_v29 }
 0x37d   : > { %v589_v30 = vsel %vm294_vm5, %v586_v25, %v588_v26  ;;  %v590_v10 = vsel %vm294_vm5, %v588_v26, %v586_v25 }
 0x37e   : > { %637 = vmatprep.subr.bf16.mxu0 %v614_v27  ;;  %v591_v31 = vmul.f32 %v589_v30, %v2515_v7  ;;  %v592_v29 = vmul.f32 %v590_v10, %v2518_v8 }
 0x37f   : > { %638 = vmatpush1.bf16.msra.mxu0 %v613_v28  ;;  %v594_v9 = vpop.permute.xlu1 %593 }
 0x380   : > { %v596_v32 = vpop.permute.xlu0 %595 }
 0x381   : > { %v597_v33 = vsel %vm311_vm6, %v594_v9, %v596_v32  ;;  %v598_v38 = vsel %vm311_vm6, %v596_v32, %v594_v9 }
 0x382   : > { %v599_v39 = vmul.f32 %v597_v33, %v2521_v11  ;;  %v600_v40 = vmul.f32 %v598_v38, %v2524_v12 }
 0x383   : > { %v602_v41 = vpop.permute.xlu1 %601 }
 0x384   : > { %v604_v42 = vpop.permute.xlu0 %603  ;;  %v616_v43 = vpack.c.bf16 %v600_v40, %v592_v29  ;;  %v615_v46 = vpack.c.bf16 %v599_v39, %v591_v31 }
 0x385   : > { %v605_v47 = vsel %vm328_vm7, %v602_v41, %v604_v42  ;;  %v606_v49 = vsel %vm328_vm7, %v604_v42, %v602_v41 }
 0x386   : > { %v608_v50 = vmul.f32 %v606_v49, %v2536_v21  ;;  %639 = vmatprep.subr.bf16.mxu0 %v616_v43  ;;  %v607_v52 = vmul.f32 %v605_v47, %v2539_v22 }
 0x387   : > { %640 = vmatpush1.bf16.msra.mxu0 %v615_v46 }
 0x388   : > { %v618_v53 = vpack.c.bf16 %v608_v50, %v608_v50  ;;  %v617_v54 = vpack.c.bf16 %v607_v52, %v607_v52 }
 0x38a   : > { %2259 = vmatprep.subr.msk.bf16.mxu0 %vm360_vm8, %v618_v53  ;;  %v628_v55 = vsel %vm360_vm8, %v617_v54, 0 }
 0x38b   : > { %642 = vmatpush1.bf16.msra.mxu0 %v628_v55 }
 0x38e   : > { %2260 = vmatmul.mubr.msk.bf16.vlgmr.msra.gmra.mrb[0].mxu0 %vm356_vm9, %v543_v56 }
 0x38f   : > { %931 = vmatprep.mubr.bf16.mxu0 %v2335_v2 }
 0x394   : > { %v622_v57 = vpop.permute.xlu1 %621 }
 0x461   : > { %v667_v58 = vpop.f32.mrb[0].mxu0 }
 0x462   : > { %v668_v59 = vadd.f32 %v667_v58, %v622_v57  ;;  %v669_v60 = vpop.f32.mrb[1].mxu0 }
 0x463   : > { %v670_v61 = vadd.f32 %v669_v60, %v622_v57  ;;  %v671_v62 = vpop.f32.mrb[2].mxu0 }
 0x464   : > { %v2740_v63 = vadd.f32 %v668_v59, %v2558_v48  ;;  %v672_v3 = vpop.f32.mrb[3].mxu0  ;;  %v677_v48 = vld [vmem:[%s4104_s3 + $0x18] sm:$0xff] }
 0x465   : > { %v2743_v0 = vadd.f32 %v670_v61, %v2564_v51 }
 0x466   : > { %678 = vrot.lane.b32.xlu0 %v2740_v63, %s2330_s22 }
 0x467   : > { %680 = vrot.lane.b32.xlu1 %v2743_v0, %s2330_s22 }
 0x46a   : > { %686 = vrot.lane.b32.xlu0 %v2740_v63, %s2329_s21 }
 0x46b   : > { %688 = vrot.lane.b32.xlu1 %v2743_v0, %s2329_s21 }
 0x46e   : > { %694 = vrot.lane.b32.xlu0 %v2740_v63, %s2331_s23 }
 0x46f   : > { %696 = vrot.lane.b32.xlu1 %v2743_v0, %s2331_s23 }
 0x472   : > { %702 = vrot.lane.b32.xlu0 %v2740_v63, %s2332_s24 }
 0x473   : > { %704 = vrot.lane.b32.xlu1 %v2743_v0, %s2332_s24 }
 0x476   : > { %710 = vrot.lane.b32.xlu0 %v2740_v63, %s2333_s25 }
 0x477   : > { %712 = vrot.lane.b32.xlu1 %v2743_v0, %s2333_s25 }
 0x47a   : > { %718 = vrot.lane.b32.xlu0 %v2740_v63, %s2334_s26 }
 0x47b   : > { %720 = vrot.lane.b32.xlu1 %v2743_v0, %s2334_s26 }
 0x47e   : > { %726 = vrot.lane.b32.xlu0 %v2740_v63, %s2336_s27 }
 0x47f   : > { %728 = vrot.lane.b32.xlu1 %v2743_v0, %s2336_s27 }
 0x482   : > { %734 = vrot.lane.b32.xlu0 %v2740_v63, %s2337_s28 }
 0x483   : > { %736 = vrot.lane.b32.xlu1 %v2743_v0, %s2337_s28 }
 0x486   : > { %754 = vperm.xlu0 %2304, %v677_v48  }
 0x4d8   : > { %v679_v51 = vpop.permute.xlu0 %678 }
 0x4d9   : > { %v681_v1 = vpop.permute.xlu1 %680 }
 0x4da   : > { %v682_v17 = vsel %vm209_vm1, %v679_v51, %v681_v1  ;;  %v683_v18 = vsel %vm209_vm1, %v681_v1, %v679_v51 }
 0x4db   : > { %v684_v25 = vmul.f32 %v683_v18, %v2448_v15  ;;  %v685_v26 = vmul.f32 %v682_v17, %v2442_v13 }
 0x4dc   : > { %v687_v19 = vpop.permute.xlu0 %686 }
 0x4dd   : > { %v689_v20 = vpop.permute.xlu1 %688 }
 0x4de   : > { %v690_v23 = vsel %vm226_vm0, %v687_v19, %v689_v20  ;;  %v691_v24 = vsel %vm226_vm0, %v689_v20, %v687_v19 }
 0x4df   : > { %v692_v27 = vmul.f32 %v691_v24, %v2451_v16  ;;  %v693_v28 = vmul.f32 %v690_v23, %v2445_v14 }
 0x4e0   : > { %v695_v30 = vpop.permute.xlu0 %694 }
 0x4e1   : > { %v742_v10 = vpack.c.bf16 %v692_v27, %v684_v25  ;;  %v697_v9 = vpop.permute.xlu1 %696  ;;  %v743_v32 = vpack.c.bf16 %v693_v28, %v685_v26 }
 0x4e2   : > { %v698_v33 = vsel %vm243_vm2, %v695_v30, %v697_v9  ;;  %v699_v38 = vsel %vm243_vm2, %v697_v9, %v695_v30 }
 0x4e3   : > { %766 = vmatprep.subr.bf16.mxu1 %v743_v32  ;;  %v700_v41 = vmul.f32 %v699_v38, %v2471_v34  ;;  %v701_v42 = vmul.f32 %v698_v33, %v2474_v35  ;;  %v676_v38 = vld [vmem:[%s4103_s2 + $0x18] sm:$0xf] }
 0x4e4   : > { %767 = vmatpush1.bf16.msra.mxu1 %v742_v10  ;;  %v703_v31 = vpop.permute.xlu0 %702 }
 0x4e5   : > { %v705_v29 = vpop.permute.xlu1 %704 }
 0x4e6   : > { %v706_v39 = vsel %vm260_vm3, %v703_v31, %v705_v29  ;;  %v707_v40 = vsel %vm260_vm3, %v705_v29, %v703_v31 }
 0x4e7   : > { %v708_v43 = vmul.f32 %v707_v40, %v2477_v36  ;;  %v709_v46 = vmul.f32 %v706_v39, %v2480_v37 }
 0x4e8   : > { %v711_v47 = vpop.permute.xlu0 %710 }
 0x4e9   : > { %v744_v49 = vpack.c.bf16 %v708_v43, %v700_v41  ;;  %v713_v50 = vpop.permute.xlu1 %712  ;;  %v745_v52 = vpack.c.bf16 %v709_v46, %v701_v42 }
 0x4ea   : > { %v714_v53 = vsel %vm277_vm4, %v711_v47, %v713_v50  ;;  %v715_v54 = vsel %vm277_vm4, %v713_v50, %v711_v47 }
 0x4eb   : > { %v716_v55 = vmul.f32 %v714_v53, %v2492_v44  ;;  %v717_v56 = vmul.f32 %v715_v54, %v2495_v45  ;;  %768 = vmatprep.subr.bf16.mxu1 %v745_v52 }
 0x4ec   : > { %769 = vmatpush1.bf16.msra.mxu1 %v744_v49  ;;  %v719_v57 = vpop.permute.xlu0 %718 }
 0x4ed   : > { %v746_v58 = vpack.c.bf16 %v716_v55, %v2740_v63  ;;  %v721_v59 = vpop.permute.xlu1 %720  ;;  %v747_v60 = vpack.c.bf16 %v717_v56, %v2743_v0 }
 0x4ee   : > { %v722_v61 = vsel %vm294_vm5, %v719_v57, %v721_v59  ;;  %v723_v62 = vsel %vm294_vm5, %v721_v59, %v719_v57 }
 0x4ef   : > { %770 = vmatprep.subr.bf16.mxu1 %v747_v60  ;;  %v724_v17 = vmul.f32 %v722_v61, %v2515_v7  ;;  %v725_v18 = vmul.f32 %v723_v62, %v2518_v8 }
 0x4f0   : > { %771 = vmatpush1.bf16.msra.mxu1 %v746_v58  ;;  %v727_v3 = vpop.permute.xlu0 %726 }
 0x4f1   : > { %v729_v48 = vpop.permute.xlu1 %728 }
 0x4f2   : > { %v730_v51 = vsel %vm311_vm6, %v727_v3, %v729_v48  ;;  %v731_v1 = vsel %vm311_vm6, %v729_v48, %v727_v3 }
 0x4f3   : > { %v732_v19 = vmul.f32 %v730_v51, %v2521_v11  ;;  %v733_v20 = vmul.f32 %v731_v1, %v2524_v12 }
 0x4f4   : > { %v735_v23 = vpop.permute.xlu0 %734 }
 0x4f5   : > { %v748_v24 = vpack.c.bf16 %v732_v19, %v724_v17  ;;  %v737_v25 = vpop.permute.xlu1 %736  ;;  %v749_v26 = vpack.c.bf16 %v733_v20, %v725_v18 }
 0x4f6   : > { %v738_v27 = vsel %vm328_vm7, %v735_v23, %v737_v25  ;;  %v739_v28 = vsel %vm328_vm7, %v737_v25, %v735_v23 }
 0x4f7   : > { %v740_v30 = vmul.f32 %v738_v27, %v2539_v22  ;;  %v741_v10 = vmul.f32 %v739_v28, %v2536_v21  ;;  %772 = vmatprep.subr.bf16.mxu1 %v749_v26 }
 0x4f8   : > { %773 = vmatpush1.bf16.msra.mxu1 %v748_v24 }
 0x4f9   : > { %v750_v9 = vpack.c.bf16 %v740_v30, %v740_v30  ;;  %v751_v32 = vpack.c.bf16 %v741_v10, %v741_v10 }
 0x4fb   : > { %2261 = vmatprep.subr.msk.bf16.mxu1 %vm360_vm8, %v751_v32  ;;  %v761_v33 = vsel %vm360_vm8, %v750_v9, 0 }
 0x4fc   : > { %775 = vmatpush1.bf16.msra.mxu1 %v761_v33 }
 0x4ff   : > { %2262 = vmatmul.mubr.msk.bf16.vlgmr.msra.gmra.mrb[8].mxu1 %vm356_vm9, %v676_v38 }
 0x500   : > { %1076 = vmatprep.mubr.bf16.mxu1 %v2335_v2  ;;  %v810_v2 = vld [vmem:[%s4104_s3 + $0x20] sm:$0xff] }
 0x505   : > { %v755_v31 = vpop.permute.xlu0 %754 }
 0x5d2   : > { %v800_v29 = vpop.f32.mrb[8].mxu1 }
 0x5d3   : > { %v801_v39 = vadd.f32 %v800_v29, %v755_v31  ;;  %v802_v40 = vpop.f32.mrb[9].mxu1 }
 0x5d4   : > { %v803_v41 = vadd.f32 %v802_v40, %v755_v31  ;;  %v804_v42 = vpop.f32.mrb[10].mxu1 }
 0x5d5   : > { %v2837_v43 = vmax.f32 %v801_v39, 0.0  ;;  %v805_v46 = vpop.f32.mrb[11].mxu1 }
 0x5d6   : > { %v808_v47 = vmax.f32 %v803_v41, 0.0 }
 0x5d7   : > { %811 = vrot.lane.b32.xlu1 %v2837_v43, %s2330_s22 }
 0x5d8   : > { %813 = vrot.lane.b32.xlu0 %v808_v47, %s2330_s22 }
 0x5db   : > { %819 = vrot.lane.b32.xlu1 %v2837_v43, %s2329_s21 }
 0x5dc   : > { %821 = vrot.lane.b32.xlu0 %v808_v47, %s2329_s21 }
 0x5df   : > { %827 = vrot.lane.b32.xlu1 %v2837_v43, %s2331_s23 }
 0x5e0   : > { %829 = vrot.lane.b32.xlu0 %v808_v47, %s2331_s23 }
 0x5e3   : > { %835 = vrot.lane.b32.xlu1 %v2837_v43, %s2332_s24 }
 0x5e4   : > { %837 = vrot.lane.b32.xlu0 %v808_v47, %s2332_s24 }
 0x5e7   : > { %843 = vrot.lane.b32.xlu1 %v2837_v43, %s2333_s25 }
 0x5e8   : > { %845 = vrot.lane.b32.xlu0 %v808_v47, %s2333_s25 }
 0x5eb   : > { %851 = vrot.lane.b32.xlu1 %v2837_v43, %s2334_s26 }
 0x5ec   : > { %853 = vrot.lane.b32.xlu0 %v808_v47, %s2334_s26 }
 0x5ef   : > { %859 = vrot.lane.b32.xlu1 %v2837_v43, %s2336_s27 }
 0x5f0   : > { %861 = vrot.lane.b32.xlu0 %v808_v47, %s2336_s27 }
 0x5f3   : > { %867 = vrot.lane.b32.xlu1 %v2837_v43, %s2337_s28 }
 0x5f4   : > { %869 = vrot.lane.b32.xlu0 %v808_v47, %s2337_s28 }
 0x5f7   : > { %887 = vperm.xlu1 %2305, %v810_v2  }
 0x649   : > { %v812_v49 = vpop.permute.xlu1 %811 }
 0x64a   : > { %v814_v50 = vpop.permute.xlu0 %813 }
 0x64b   : > { %v815_v52 = vsel %vm209_vm1, %v812_v49, %v814_v50  ;;  %v816_v53 = vsel %vm209_vm1, %v814_v50, %v812_v49 }
 0x64c   : > { %v817_v58 = vmul.f32 %v816_v53, %v2448_v15  ;;  %v818_v59 = vmul.f32 %v815_v52, %v2442_v13 }
 0x64d   : > { %v820_v54 = vpop.permute.xlu1 %819 }
 0x64e   : > { %v822_v55 = vpop.permute.xlu0 %821 }
 0x64f   : > { %v823_v56 = vsel %vm226_vm0, %v820_v54, %v822_v55  ;;  %v824_v57 = vsel %vm226_vm0, %v822_v55, %v820_v54 }
 0x650   : > { %v825_v60 = vmul.f32 %v824_v57, %v2451_v16  ;;  %v826_v61 = vmul.f32 %v823_v56, %v2445_v14 }
 0x651   : > { %v828_v62 = vpop.permute.xlu1 %827 }
 0x652   : > { %v875_v3 = vpack.c.bf16 %v825_v60, %v817_v58  ;;  %v830_v48 = vpop.permute.xlu0 %829  ;;  %v876_v51 = vpack.c.bf16 %v826_v61, %v818_v59 }
 0x653   : > { %v831_v1 = vsel %vm243_vm2, %v828_v62, %v830_v48  ;;  %v832_v17 = vsel %vm243_vm2, %v830_v48, %v828_v62 }
 0x654   : > { %899 = vmatprep.subr.bf16.mxu0 %v876_v51  ;;  %v833_v24 = vmul.f32 %v832_v17, %v2471_v34  ;;  %v834_v25 = vmul.f32 %v831_v1, %v2474_v35  ;;  %v809_v1 = vld [vmem:[%s4103_s2 + $0x20] sm:$0xf] }
 0x655   : > { %900 = vmatpush1.bf16.msra.mxu0 %v875_v3  ;;  %v836_v18 = vpop.permute.xlu1 %835 }
 0x656   : > { %v838_v19 = vpop.permute.xlu0 %837 }
 0x657   : > { %v839_v20 = vsel %vm260_vm3, %v836_v18, %v838_v19  ;;  %v840_v23 = vsel %vm260_vm3, %v838_v19, %v836_v18 }
 0x658   : > { %v841_v26 = vmul.f32 %v840_v23, %v2477_v36  ;;  %v842_v27 = vmul.f32 %v839_v20, %v2480_v37 }
 0x659   : > { %v844_v28 = vpop.permute.xlu1 %843 }
 0x65a   : > { %v877_v30 = vpack.c.bf16 %v841_v26, %v833_v24  ;;  %v846_v10 = vpop.permute.xlu0 %845  ;;  %v878_v9 = vpack.c.bf16 %v842_v27, %v834_v25 }
 0x65b   : > { %v847_v32 = vsel %vm277_vm4, %v844_v28, %v846_v10  ;;  %v848_v33 = vsel %vm277_vm4, %v846_v10, %v844_v28 }
 0x65c   : > { %v849_v38 = vmul.f32 %v847_v32, %v2492_v44  ;;  %v850_v31 = vmul.f32 %v848_v33, %v2495_v45  ;;  %901 = vmatprep.subr.bf16.mxu0 %v878_v9 }
 0x65d   : > { %902 = vmatpush1.bf16.msra.mxu0 %v877_v30  ;;  %v852_v29 = vpop.permute.xlu1 %851 }
 0x65e   : > { %v879_v39 = vpack.c.bf16 %v849_v38, %v2837_v43  ;;  %v854_v40 = vpop.permute.xlu0 %853  ;;  %v880_v41 = vpack.c.bf16 %v850_v31, %v808_v47 }
 0x65f   : > { %v855_v42 = vsel %vm294_vm5, %v852_v29, %v854_v40  ;;  %v856_v46 = vsel %vm294_vm5, %v854_v40, %v852_v29 }
 0x660   : > { %903 = vmatprep.subr.bf16.mxu0 %v880_v41  ;;  %v857_v43 = vmul.f32 %v855_v42, %v2515_v7  ;;  %v858_v47 = vmul.f32 %v856_v46, %v2518_v8 }
 0x661   : > { %904 = vmatpush1.bf16.msra.mxu0 %v879_v39  ;;  %v860_v2 = vpop.permute.xlu1 %859 }
 0x662   : > { %v862_v49 = vpop.permute.xlu0 %861 }
 0x663   : > { %v863_v50 = vsel %vm311_vm6, %v860_v2, %v862_v49  ;;  %v864_v52 = vsel %vm311_vm6, %v862_v49, %v860_v2 }
 0x664   : > { %v865_v53 = vmul.f32 %v863_v50, %v2521_v11  ;;  %v866_v54 = vmul.f32 %v864_v52, %v2524_v12 }
 0x665   : > { %v868_v55 = vpop.permute.xlu1 %867 }
 0x666   : > { %v881_v56 = vpack.c.bf16 %v865_v53, %v857_v43  ;;  %v870_v57 = vpop.permute.xlu0 %869  ;;  %v882_v58 = vpack.c.bf16 %v866_v54, %v858_v47 }
 0x667   : > { %v871_v59 = vsel %vm328_vm7, %v868_v55, %v870_v57  ;;  %v872_v60 = vsel %vm328_vm7, %v870_v57, %v868_v55 }
 0x668   : > { %v873_v61 = vmul.f32 %v871_v59, %v2539_v22  ;;  %v874_v62 = vmul.f32 %v872_v60, %v2536_v21  ;;  %905 = vmatprep.subr.bf16.mxu0 %v882_v58 }
 0x669   : > { %906 = vmatpush1.bf16.msra.mxu0 %v881_v56 }
 0x66a   : > { %v883_v3 = vpack.c.bf16 %v873_v61, %v873_v61  ;;  %v884_v48 = vpack.c.bf16 %v874_v62, %v874_v62 }
 0x66c   : > { %2263 = vmatprep.subr.msk.bf16.mxu0 %vm360_vm8, %v884_v48  ;;  %v894_v51 = vsel %vm360_vm8, %v883_v3, 0 }
 0x66d   : > { %908 = vmatpush1.bf16.msra.mxu0 %v894_v51 }
 0x670   : > { %2264 = vmatmul.mubr.msk.bf16.vlgmr.msra.gmra.mrb[4].mxu0 %vm356_vm9, %v809_v1 }
 0x676   : > { %v888_v17 = vpop.permute.xlu1 %887 }
 0x743   : > { %v933_v18 = vpop.f32.mrb[4].mxu0 }
 0x744   : > { %v934_v19 = vadd.f32 %v933_v18, %v888_v17  ;;  %v935_v20 = vpop.f32.mrb[5].mxu0 }
 0x745   : > { %v936_v23 = vadd.f32 %v935_v20, %v888_v17  ;;  %v937_v24 = vpop.f32.mrb[6].mxu0 }
 0x746   : > { %v2922_v25 = vadd.f32 %v934_v19, %v2740_v63  ;;  %v938_v26 = vpop.f32.mrb[7].mxu0  ;;  %v944_v63 = vld [vmem:[%s4104_s3 + $0x28] sm:$0xff] }
 0x747   : > { %v2925_v27 = vadd.f32 %v936_v23, %v2743_v0  ;;  %v945_v0 = vld [vmem:[%s4104_s3 + $0x30] sm:$0xff] }
 0x748   : > { %946 = vrot.lane.b32.xlu0 %v2922_v25, %s2330_s22 }
 0x749   : > { %948 = vrot.lane.b32.xlu1 %v2925_v27, %s2330_s22 }
 0x74c   : > { %954 = vrot.lane.b32.xlu0 %v2922_v25, %s2329_s21 }
 0x74d   : > { %956 = vrot.lane.b32.xlu1 %v2925_v27, %s2329_s21 }
 0x750   : > { %962 = vrot.lane.b32.xlu0 %v2922_v25, %s2331_s23 }
 0x751   : > { %964 = vrot.lane.b32.xlu1 %v2925_v27, %s2331_s23 }
 0x754   : > { %970 = vrot.lane.b32.xlu0 %v2922_v25, %s2332_s24 }
 0x755   : > { %972 = vrot.lane.b32.xlu1 %v2925_v27, %s2332_s24 }
 0x758   : > { %978 = vrot.lane.b32.xlu0 %v2922_v25, %s2333_s25 }
 0x759   : > { %980 = vrot.lane.b32.xlu1 %v2925_v27, %s2333_s25 }
 0x75c   : > { %986 = vrot.lane.b32.xlu0 %v2922_v25, %s2334_s26 }
 0x75d   : > { %988 = vrot.lane.b32.xlu1 %v2925_v27, %s2334_s26 }
 0x760   : > { %994 = vrot.lane.b32.xlu0 %v2922_v25, %s2336_s27 }
 0x761   : > { %996 = vrot.lane.b32.xlu1 %v2925_v27, %s2336_s27 }
 0x764   : > { %1002 = vrot.lane.b32.xlu0 %v2922_v25, %s2337_s28 }
 0x765   : > { %1004 = vrot.lane.b32.xlu1 %v2925_v27, %s2337_s28 }
 0x768   : > { %1022 = vperm.xlu0 %2304, %v944_v63  }
 0x769   : > { %1027 = vperm.xlu1 %2305, %v945_v0  }
 0x7ba   : > { %v947_v28 = vpop.permute.xlu0 %946 }
 0x7bb   : > { %v949_v30 = vpop.permute.xlu1 %948 }
 0x7bc   : > { %v950_v10 = vsel %vm209_vm1, %v947_v28, %v949_v30  ;;  %v951_v9 = vsel %vm209_vm1, %v949_v30, %v947_v28 }
 0x7bd   : > { %v952_v29 = vmul.f32 %v951_v9, %v2448_v15  ;;  %v953_v39 = vmul.f32 %v950_v10, %v2442_v13 }
 0x7be   : > { %v955_v32 = vpop.permute.xlu0 %954 }
 0x7bf   : > { %v957_v33 = vpop.permute.xlu1 %956 }
 0x7c0   : > { %v958_v38 = vsel %vm226_vm0, %v955_v32, %v957_v33  ;;  %v959_v31 = vsel %vm226_vm0, %v957_v33, %v955_v32 }
 0x7c1   : > { %v960_v40 = vmul.f32 %v959_v31, %v2451_v16  ;;  %v961_v41 = vmul.f32 %v958_v38, %v2445_v14 }
 0x7c2   : > { %v963_v42 = vpop.permute.xlu0 %962 }
 0x7c3   : > { %v1010_v46 = vpack.c.bf16 %v960_v40, %v952_v29  ;;  %v965_v2 = vpop.permute.xlu1 %964  ;;  %v1011_v49 = vpack.c.bf16 %v961_v41, %v953_v39 }
 0x7c4   : > { %v966_v50 = vsel %vm243_vm2, %v963_v42, %v965_v2  ;;  %v967_v52 = vsel %vm243_vm2, %v965_v2, %v963_v42  ;;  %v2306_v2 = vld [vmem:[%s4103_s2 + $0x28] ss:$8 sps:$4 sm:$0xff]  }
 0x7c5   : > { %1044 = vmatprep.subr.bf16.mxu1 %v1011_v49  ;;  %v968_v55 = vmul.f32 %v967_v52, %v2471_v34  ;;  %v969_v56 = vmul.f32 %v966_v50, %v2474_v35 }
 0x7c6   : > { %1045 = vmatpush1.bf16.msra.mxu1 %v1010_v46  ;;  %v971_v43 = vpop.permute.xlu0 %970 }
 0x7c7   : > { %v973_v47 = vpop.permute.xlu1 %972 }
 0x7c8   : > { %v974_v53 = vsel %vm260_vm3, %v971_v43, %v973_v47  ;;  %v975_v54 = vsel %vm260_vm3, %v973_v47, %v971_v43 }
 0x7c9   : > { %v976_v57 = vmul.f32 %v975_v54, %v2477_v36  ;;  %v977_v58 = vmul.f32 %v974_v53, %v2480_v37 }
 0x7ca   : > { %v979_v59 = vpop.permute.xlu0 %978 }
 0x7cb   : > { %v1012_v60 = vpack.c.bf16 %v976_v57, %v968_v55  ;;  %v981_v61 = vpop.permute.xlu1 %980  ;;  %v1013_v62 = vpack.c.bf16 %v977_v58, %v969_v56 }
 0x7cc   : > { %v982_v3 = vsel %vm277_vm4, %v979_v59, %v981_v61  ;;  %v983_v48 = vsel %vm277_vm4, %v981_v61, %v979_v59 }
 0x7cd   : > { %v984_v51 = vmul.f32 %v982_v3, %v2492_v44  ;;  %v985_v1 = vmul.f32 %v983_v48, %v2495_v45  ;;  %1046 = vmatprep.subr.bf16.mxu1 %v1013_v62  ;;  %v2307_v62 = vld [vmem:[%s4103_s2 + $0x3c] ss:$8 sps:$4 sm:$0xff]  }
 0x7ce   : > { %1047 = vmatpush1.bf16.msra.mxu1 %v1012_v60  ;;  %v987_v17 = vpop.permute.xlu0 %986  ;;  %2270 = vmatprep.mubr.msk.bf16.mxu0 %vm1260_vm10, %v2307_v62  ;;  %v1093_v3 = vld [vmem:[%s4104_s3 + $0x38] sm:$0xff]  ;;  %v1094_v48 = vld [vmem:[%s4104_s3 + $0x40] sm:$0xff] }
 0x7cf   : > { %v1014_v18 = vpack.c.bf16 %v984_v51, %v2922_v25  ;;  %v989_v19 = vpop.permute.xlu1 %988  ;;  %v1015_v20 = vpack.c.bf16 %v985_v1, %v2925_v27 }
 0x7d0   : > { %v990_v23 = vsel %vm294_vm5, %v987_v17, %v989_v19  ;;  %v991_v24 = vsel %vm294_vm5, %v989_v19, %v987_v17 }
 0x7d1   : > { %1048 = vmatprep.subr.bf16.mxu1 %v1015_v20  ;;  %v992_v25 = vmul.f32 %v990_v23, %v2515_v7  ;;  %v993_v27 = vmul.f32 %v991_v24, %v2518_v8 }
 0x7d2   : > { %1049 = vmatpush1.bf16.msra.mxu1 %v1014_v18  ;;  %v995_v26 = vpop.permute.xlu0 %994 }
 0x7d3   : > { %v997_v63 = vpop.permute.xlu1 %996 }
 0x7d4   : > { %v998_v0 = vsel %vm311_vm6, %v995_v26, %v997_v63  ;;  %v999_v28 = vsel %vm311_vm6, %v997_v63, %v995_v26 }
 0x7d5   : > { %v1000_v30 = vmul.f32 %v998_v0, %v2521_v11  ;;  %v1001_v10 = vmul.f32 %v999_v28, %v2524_v12 }
 0x7d6   : > { %v1003_v9 = vpop.permute.xlu0 %1002 }
 0x7d7   : > { %v1016_v32 = vpack.c.bf16 %v1000_v30, %v992_v25  ;;  %v1005_v33 = vpop.permute.xlu1 %1004  ;;  %v1017_v38 = vpack.c.bf16 %v1001_v10, %v993_v27 }
 0x7d8   : > { %v1006_v31 = vsel %vm328_vm7, %v1003_v9, %v1005_v33  ;;  %v1007_v29 = vsel %vm328_vm7, %v1005_v33, %v1003_v9 }
 0x7d9   : > { %v1008_v39 = vmul.f32 %v1006_v31, %v2539_v22  ;;  %v1009_v40 = vmul.f32 %v1007_v29, %v2536_v21  ;;  %1050 = vmatprep.subr.bf16.mxu1 %v1017_v38 }
 0x7da   : > { %1051 = vmatpush1.bf16.msra.mxu1 %v1016_v32 }
 0x7db   : > { %v1018_v41 = vpack.c.bf16 %v1008_v39, %v1008_v39  ;;  %v1019_v42 = vpack.c.bf16 %v1009_v40, %v1009_v40 }
 0x7dd   : > { %2266 = vmatprep.subr.msk.bf16.mxu1 %vm360_vm8, %v1019_v42  ;;  %v1039_v46 = vsel %vm360_vm8, %v1018_v41, 0 }
 0x7de   : > { %1053 = vmatpush1.bf16.msra.mxu1 %v1039_v46 }
 0x7e1   : > { %2267 = vmatmul.mubr.msk.bf16.vlgmr.msra.gmra.mrb[12].mxu1 %vm356_vm9, %v2306_v2 }
 0x7e7   : > { %v1023_v49 = vpop.permute.xlu0 %1022 }
 0x7e8   : > { %v1028_v47 = vpop.permute.xlu1 %1027 }
 0x8b4   : > { %v1078_v50 = vpop.f32.mrb[12].mxu1 }
 0x8b5   : > { %v1079_v52 = vadd.f32 %v1078_v50, %v1023_v49  ;;  %v1080_v43 = vpop.f32.mrb[13].mxu1 }
 0x8b6   : > { %v1082_v53 = vpop.f32.mrb[14].mxu1  ;;  %v1081_v58 = vadd.f32 %v1080_v43, %v1023_v49 }
 0x8b7   : > { %v3021_v54 = vmax.f32 %v1079_v52, 0.0  ;;  %v1083_v55 = vadd.f32 %v1082_v53, %v1028_v47  ;;  %v1084_v56 = vpop.f32.mrb[15].mxu1 }
 0x8b8   : > { %v1085_v59 = vadd.f32 %v1084_v56, %v1028_v47  ;;  %v3051_v60 = vmax.f32 %v1081_v58, 0.0 }
 0x8b9   : > { %v3023_v57 = vmax.f32 %v1083_v55, 0.0  ;;  %1095 = vrot.lane.b32.xlu0 %v3021_v54, %s2330_s22 }
 0x8ba   : > { %v3055_v61 = vmax.f32 %v1085_v59, 0.0 }
 0x8bb   : > { %1097 = vrot.lane.b32.xlu1 %v3023_v57, %s2330_s22 }
 0x8bd   : > { %1111 = vrot.lane.b32.xlu0 %v3021_v54, %s2329_s21 }
 0x8bf   : > { %1113 = vrot.lane.b32.xlu1 %v3023_v57, %s2329_s21 }
 0x8c1   : > { %1127 = vrot.lane.b32.xlu0 %v3021_v54, %s2331_s23 }
 0x8c3   : > { %1129 = vrot.lane.b32.xlu1 %v3023_v57, %s2331_s23 }
 0x8c5   : > { %1143 = vrot.lane.b32.xlu0 %v3021_v54, %s2332_s24 }
 0x8c7   : > { %1145 = vrot.lane.b32.xlu1 %v3023_v57, %s2332_s24 }
 0x8c9   : > { %1159 = vrot.lane.b32.xlu0 %v3021_v54, %s2333_s25 }
 0x8cb   : > { %1161 = vrot.lane.b32.xlu1 %v3023_v57, %s2333_s25 }
 0x8cd   : > { %1175 = vrot.lane.b32.xlu0 %v3021_v54, %s2334_s26 }
 0x8cf   : > { %1177 = vrot.lane.b32.xlu1 %v3023_v57, %s2334_s26 }
 0x8d1   : > { %1191 = vrot.lane.b32.xlu0 %v3021_v54, %s2336_s27 }
 0x8d3   : > { %1193 = vrot.lane.b32.xlu1 %v3023_v57, %s2336_s27 }
 0x8d5   : > { %1099 = vrot.lane.b32.xlu0 %v3051_v60, %s2330_s22 }
 0x8d7   : > { %1101 = vrot.lane.b32.xlu1 %v3055_v61, %s2330_s22 }
 0x8d9   : > { %1115 = vrot.lane.b32.xlu0 %v3051_v60, %s2329_s21 }
 0x8db   : > { %1117 = vrot.lane.b32.xlu1 %v3055_v61, %s2329_s21 }
 0x8dd   : > { %1131 = vrot.lane.b32.xlu0 %v3051_v60, %s2331_s23 }
 0x8df   : > { %1133 = vrot.lane.b32.xlu1 %v3055_v61, %s2331_s23 }
 0x8e1   : > { %1147 = vrot.lane.b32.xlu0 %v3051_v60, %s2332_s24 }
 0x8e3   : > { %1149 = vrot.lane.b32.xlu1 %v3055_v61, %s2332_s24 }
 0x8e5   : > { %1207 = vrot.lane.b32.xlu0 %v3021_v54, %s2337_s28 }
 0x8e7   : > { %1209 = vrot.lane.b32.xlu1 %v3023_v57, %s2337_s28 }
 0x8e9   : > { %1163 = vrot.lane.b32.xlu0 %v3051_v60, %s2333_s25 }
 0x8eb   : > { %1165 = vrot.lane.b32.xlu1 %v3055_v61, %s2333_s25 }
 0x8ed   : > { %1179 = vrot.lane.b32.xlu0 %v3051_v60, %s2334_s26 }
 0x8ef   : > { %1181 = vrot.lane.b32.xlu1 %v3055_v61, %s2334_s26 }
 0x8f1   : > { %1195 = vrot.lane.b32.xlu0 %v3051_v60, %s2336_s27 }
 0x8f3   : > { %1197 = vrot.lane.b32.xlu1 %v3055_v61, %s2336_s27 }
 0x8f5   : > { %1211 = vrot.lane.b32.xlu0 %v3051_v60, %s2337_s28 }
 0x8f7   : > { %1213 = vrot.lane.b32.xlu1 %v3055_v61, %s2337_s28 }
 0x8f9   : > { %1243 = vperm.xlu0 %2304, %v1093_v3  }
 0x8fb   : > { %1248 = vperm.xlu1 %2305, %v1094_v48  }
 0x92b   : > { %v1096_v51 = vpop.permute.xlu0 %1095 }
 0x92d   : > { %v1098_v1 = vpop.permute.xlu1 %1097 }
 0x92f   : > { %v1112_v17 = vpop.permute.xlu0 %1111 }
 0x931   : > { %v1114_v18 = vpop.permute.xlu1 %1113 }
 0x933   : > { %v1128_v19 = vpop.permute.xlu0 %1127 }
 0x935   : > { %v1130_v20 = vpop.permute.xlu1 %1129 }
 0x937   : > { %v1144_v23 = vpop.permute.xlu0 %1143 }
 0x939   : > { %v1146_v24 = vpop.permute.xlu1 %1145 }
 0x93b   : > { %v3103_v26 = vpop.permute.xlu0 %1159 }
 0x93d   : > { %v3105_v63 = vpop.permute.xlu1 %1161 }
 0x93f   : > { %v3107_v0 = vpop.permute.xlu0 %1175 }
 0x941   : > { %v3109_v28 = vpop.permute.xlu1 %1177 }
 0x943   : > { %v3111_v25 = vpop.permute.xlu0 %1191 }
 0x945   : > { %v3113_v27 = vpop.permute.xlu1 %1193 }
 0x947   : > { %v1100_v30 = vpop.permute.xlu0 %1099 }
 0x948   : > { %v1103_v10 = vsel %vm209_vm1, %v1096_v51, %v1100_v30  ;;  %v1105_v9 = vsel %vm209_vm1, %v1100_v30, %v1096_v51 }
 0x949   : > { %v1102_v32 = vpop.permute.xlu1 %1101  ;;  %v1107_v31 = vmul.f32 %v1105_v9, %v2448_v15  ;;  %v1108_v29 = vmul.f32 %v1103_v10, %v2442_v13 }
 0x94a   : > { %v1104_v33 = vsel %vm209_vm1, %v1098_v1, %v1102_v32  ;;  %v1106_v38 = vsel %vm209_vm1, %v1102_v32, %v1098_v1 }
 0x94b   : > { %v1109_v39 = vmul.f32 %v1106_v38, %v2448_v15  ;;  %v1110_v40 = vmul.f32 %v1104_v33, %v2442_v13  ;;  %v1116_v41 = vpop.permute.xlu0 %1115 }
 0x94c   : > { %v1119_v42 = vsel %vm226_vm0, %v1112_v17, %v1116_v41  ;;  %v1121_v46 = vsel %vm226_vm0, %v1116_v41, %v1112_v17 }
 0x94d   : > { %v1223_v2 = vpack.c.bf16 %v1109_v39, %v1107_v31  ;;  %v1118_v49 = vpop.permute.xlu1 %1117  ;;  %v1224_v50 = vpack.c.bf16 %v1110_v40, %v1108_v29  ;;  %v1123_v47 = vmul.f32 %v1121_v46, %v2451_v16  ;;  %v1124_v53 = vmul.f32 %v1119_v42, %v2445_v14 }
 0x94e   : > { %v1120_v52 = vsel %vm226_vm0, %v1114_v18, %v1118_v49  ;;  %v1122_v43 = vsel %vm226_vm0, %v1118_v49, %v1114_v18 }
 0x94f   : > { %v1125_v55 = vmul.f32 %v1122_v43, %v2451_v16  ;;  %v1126_v56 = vmul.f32 %v1120_v52, %v2445_v14  ;;  %1264 = vmatprep.subr.bf16.mxu0 %v1224_v50  ;;  %v1132_v58 = vpop.permute.xlu0 %1131  ;;  %v1232_v43 = vpack.c.bf16 %v3055_v61, %v3051_v60 }
 0x950   : > { %v1135_v59 = vsel %vm243_vm2, %v1128_v19, %v1132_v58  ;;  %v1137_v62 = vsel %vm243_vm2, %v1132_v58, %v1128_v19  ;;  %1265 = vmatpush1.bf16.msra.mxu0 %v1223_v2  ;;  %v1231_v58 = vpack.c.bf16 %v3023_v57, %v3021_v54 }
 0x951   : > { %v1225_v3 = vpack.c.bf16 %v1125_v55, %v1123_v47  ;;  %v1134_v48 = vpop.permute.xlu1 %1133  ;;  %v1226_v51 = vpack.c.bf16 %v1126_v56, %v1124_v53  ;;  %v1139_v18 = vmul.f32 %v1137_v62, %v2471_v34  ;;  %v1140_v30 = vmul.f32 %v1135_v59, %v2474_v35 }
 0x952   : > { %v1136_v1 = vsel %vm243_vm2, %v1130_v20, %v1134_v48  ;;  %v1138_v17 = vsel %vm243_vm2, %v1134_v48, %v1130_v20 }
 0x953   : > { %v1141_v10 = vmul.f32 %v1138_v17, %v2471_v34  ;;  %v1142_v9 = vmul.f32 %v1136_v1, %v2474_v35  ;;  %1266 = vmatprep.subr.bf16.mxu0 %v1226_v51  ;;  %v1148_v19 = vpop.permute.xlu0 %1147 }
 0x954   : > { %v1151_v32 = vsel %vm260_vm3, %v1144_v23, %v1148_v19  ;;  %v1153_v33 = vsel %vm260_vm3, %v1148_v19, %v1144_v23  ;;  %1267 = vmatpush1.bf16.msra.mxu0 %v1225_v3 }
 0x955   : > { %v1227_v38 = vpack.c.bf16 %v1141_v10, %v1139_v18  ;;  %v1150_v31 = vpop.permute.xlu1 %1149  ;;  %v1228_v20 = vpack.c.bf16 %v1142_v9, %v1140_v30  ;;  %v1155_v40 = vmul.f32 %v1153_v33, %v2477_v36  ;;  %v1156_v41 = vmul.f32 %v1151_v32, %v2480_v37 }
 0x956   : > { %v1152_v29 = vsel %vm260_vm3, %v1146_v24, %v1150_v31  ;;  %v1154_v39 = vsel %vm260_vm3, %v1150_v31, %v1146_v24 }
 0x957   : > { %v1157_v42 = vmul.f32 %v1154_v39, %v2477_v36  ;;  %v1158_v46 = vmul.f32 %v1152_v29, %v2480_v37  ;;  %1268 = vmatprep.subr.bf16.mxu0 %v1228_v20  ;;  %v1208_v23 = vpop.permute.xlu0 %1207 }
 0x958   : > { %1269 = vmatpush1.bf16.msra.mxu0 %v1227_v38 }
 0x959   : > { %v1229_v2 = vpack.c.bf16 %v1157_v42, %v1155_v40  ;;  %v1210_v49 = vpop.permute.xlu1 %1209  ;;  %v1230_v50 = vpack.c.bf16 %v1158_v46, %v1156_v41 }
 0x95b   : > { %1270 = vmatprep.subr.bf16.mxu0 %v1230_v50  ;;  %v1164_v52 = vpop.permute.xlu0 %1163 }
 0x95c   : > { %v1167_v24 = vsel %vm277_vm4, %v3103_v26, %v1164_v52  ;;  %v1169_v47 = vsel %vm277_vm4, %v1164_v52, %v3103_v26  ;;  %1271 = vmatpush1.bf16.msra.mxu0 %v1229_v2 }
 0x95d   : > { %v1166_v53 = vpop.permute.xlu1 %1165  ;;  %1272 = vmatprep.subr.bf16.mxu0 %v1232_v43  ;;  %v1171_v59 = vmul.f32 %v1167_v24, %v2492_v44  ;;  %v1172_v62 = vmul.f32 %v1169_v47, %v2495_v45 }
 0x95e   : > { %v1168_v55 = vsel %vm277_vm4, %v3105_v63, %v1166_v53  ;;  %v1170_v56 = vsel %vm277_vm4, %v1166_v53, %v3105_v63 }
 0x95f   : > { %v1173_v26 = vmul.f32 %v1168_v55, %v2492_v44  ;;  %v1174_v3 = vmul.f32 %v1170_v56, %v2495_v45  ;;  %v1180_v48 = vpop.permute.xlu0 %1179 }
 0x960   : > { %v1183_v51 = vsel %vm294_vm5, %v3107_v0, %v1180_v48  ;;  %v1185_v63 = vsel %vm294_vm5, %v1180_v48, %v3107_v0  ;;  %1273 = vmatpush1.bf16.msra.mxu0 %v1231_v58 }
 0x961   : > { %v1233_v1 = vpack.c.bf16 %v1173_v26, %v1171_v59  ;;  %v1182_v17 = vpop.permute.xlu1 %1181  ;;  %v1234_v18 = vpack.c.bf16 %v1174_v3, %v1172_v62  ;;  %v1187_v9 = vmul.f32 %v1183_v51, %v2515_v7  ;;  %v1188_v19 = vmul.f32 %v1185_v63, %v2518_v8  ;;  %v2309_v26 = vld [vmem:[%s4103_s2 + $0x38] ss:$8 sps:$4 sm:$0xff]  }
 0x962   : > { %v1184_v30 = vsel %vm294_vm5, %v3109_v28, %v1182_v17  ;;  %v1186_v10 = vsel %vm294_vm5, %v1182_v17, %v3109_v28 }
 0x963   : > { %v1189_v32 = vmul.f32 %v1184_v30, %v2515_v7  ;;  %v1190_v0 = vmul.f32 %v1186_v10, %v2518_v8  ;;  %v1196_v33 = vpop.permute.xlu0 %1195  ;;  %1274 = vmatprep.subr.bf16.mxu0 %v1234_v18 }
 0x964   : > { %v1199_v38 = vsel %vm311_vm6, %v3111_v25, %v1196_v33  ;;  %v1201_v31 = vsel %vm311_vm6, %v1196_v33, %v3111_v25  ;;  %1275 = vmatpush1.bf16.msra.mxu0 %v1233_v1 }
 0x965   : > { %v1235_v28 = vpack.c.bf16 %v1189_v32, %v1187_v9  ;;  %v1198_v20 = vpop.permute.xlu1 %1197  ;;  %v1236_v29 = vpack.c.bf16 %v1190_v0, %v1188_v19  ;;  %v1203_v41 = vmul.f32 %v1199_v38, %v2521_v11  ;;  %v1204_v42 = vmul.f32 %v1201_v31, %v2524_v12  ;;  %v2310_v31 = vld [vmem:[%s4103_s2 + $0x4c] ss:$8 sps:$4 sm:$0xff]  }
 0x966   : > { %v1200_v39 = vsel %vm311_vm6, %v3113_v27, %v1198_v20  ;;  %v1202_v40 = vsel %vm311_vm6, %v1198_v20, %v3113_v27  ;;  %2273 = vmatprep.mubr.msk.bf16.mxu1 %vm1260_vm10, %v2310_v31  ;;  %v1314_v20 = vld [vmem:[%s4104_s3 + $0x50] sm:$0xff] }
 0x967   : > { %v1205_v46 = vmul.f32 %v1200_v39, %v2521_v11  ;;  %v1206_v25 = vmul.f32 %v1202_v40, %v2524_v12  ;;  %v1212_v2 = vpop.permute.xlu0 %1211  ;;  %1276 = vmatprep.subr.bf16.mxu0 %v1236_v29 }
 0x968   : > { %v1215_v50 = vsel %vm328_vm7, %v1208_v23, %v1212_v2  ;;  %v1217_v52 = vsel %vm328_vm7, %v1212_v2, %v1208_v23  ;;  %1277 = vmatpush1.bf16.msra.mxu0 %v1235_v28  ;;  %v1313_v28 = vld [vmem:[%s4104_s3 + $0x48] sm:$0xff] }
 0x969   : > { %v1237_v43 = vpack.c.bf16 %v1205_v46, %v1203_v41  ;;  %v1214_v24 = vpop.permute.xlu1 %1213  ;;  %v1238_v27 = vpack.c.bf16 %v1206_v25, %v1204_v42  ;;  %v1219_v55 = vmul.f32 %v1215_v50, %v2539_v22  ;;  %v1220_v56 = vmul.f32 %v1217_v52, %v2536_v21 }
 0x96a   : > { %v1216_v47 = vsel %vm328_vm7, %v1210_v49, %v1214_v24  ;;  %v1218_v53 = vsel %vm328_vm7, %v1214_v24, %v1210_v49 }
 0x96b   : > { %v1221_v58 = vmul.f32 %v1216_v47, %v2539_v22  ;;  %v1222_v59 = vmul.f32 %v1218_v53, %v2536_v21  ;;  %1278 = vmatprep.subr.bf16.mxu0 %v1238_v27 }
 0x96c   : > { %1279 = vmatpush1.bf16.msra.mxu0 %v1237_v43 }
 0x96d   : > { %v1239_v23 = vpack.c.bf16 %v1221_v58, %v1219_v55  ;;  %v1240_v62 = vpack.c.bf16 %v1222_v59, %v1220_v56 }
 0x96f   : > { %1280 = vmatprep.subr.bf16.mxu0 %v1240_v62 }
 0x970   : > { %1281 = vmatpush1.bf16.msra.mxu0 %v1239_v23 }
 0x973   : > { %1297 = vmatmul.mubr.bf16.vlgmr.msra.gmra.mrb[8].mxu0 %v2309_v26 }
 0x978   : > { %v1244_v49 = vpop.permute.xlu0 %1243 }
 0x97a   : > { %v1249_v63 = vpop.permute.xlu1 %1248 }
 0xa46   : > { %v1298_v3 = vpop.f32.mrb[8].mxu0 }
 0xa47   : > { %v1299_v48 = vadd.f32 %v1298_v3, %v1244_v49  ;;  %v1300_v51 = vpop.f32.mrb[9].mxu0 }
 0xa48   : > { %v1301_v1 = vadd.f32 %v1300_v51, %v1244_v49  ;;  %v1302_v17 = vpop.f32.mrb[10].mxu0 }
 0xa49   : > { %v3230_v18 = vmax.f32 %v1299_v48, 0.0  ;;  %v1303_v30 = vadd.f32 %v1302_v17, %v1249_v63  ;;  %v1304_v10 = vpop.f32.mrb[11].mxu0 }
 0xa4a   : > { %v1305_v9 = vadd.f32 %v1304_v10, %v1249_v63  ;;  %v3236_v32 = vmax.f32 %v1301_v1, 0.0 }
 0xa4b   : > { %v3232_v19 = vmax.f32 %v1303_v30, 0.0  ;;  %1315 = vrot.lane.b32.xlu0 %v3230_v18, %s2330_s22 }
 0xa4c   : > { %v3238_v0 = vmax.f32 %v1305_v9, 0.0 }
 0xa4d   : > { %1317 = vrot.lane.b32.xlu1 %v3232_v19, %s2330_s22  ;;  %v1451_v33 = vpack.c.bf16 %v3232_v19, %v3230_v18 }
 0xa4e   : > { %v1452_v38 = vpack.c.bf16 %v3238_v0, %v3236_v32 }
 0xa4f   : > { %1331 = vrot.lane.b32.xlu0 %v3230_v18, %s2329_s21 }
 0xa51   : > { %1333 = vrot.lane.b32.xlu1 %v3232_v19, %s2329_s21 }
 0xa53   : > { %1347 = vrot.lane.b32.xlu0 %v3230_v18, %s2331_s23 }
 0xa55   : > { %1349 = vrot.lane.b32.xlu1 %v3232_v19, %s2331_s23 }
 0xa57   : > { %1363 = vrot.lane.b32.xlu0 %v3230_v18, %s2332_s24 }
 0xa59   : > { %1365 = vrot.lane.b32.xlu1 %v3232_v19, %s2332_s24 }
 0xa5b   : > { %1379 = vrot.lane.b32.xlu0 %v3230_v18, %s2333_s25 }
 0xa5d   : > { %1381 = vrot.lane.b32.xlu1 %v3232_v19, %s2333_s25 }
 0xa5f   : > { %1395 = vrot.lane.b32.xlu0 %v3230_v18, %s2334_s26 }
 0xa61   : > { %1397 = vrot.lane.b32.xlu1 %v3232_v19, %s2334_s26 }
 0xa63   : > { %1411 = vrot.lane.b32.xlu0 %v3230_v18, %s2336_s27 }
 0xa65   : > { %1413 = vrot.lane.b32.xlu1 %v3232_v19, %s2336_s27 }
 0xa67   : > { %1319 = vrot.lane.b32.xlu0 %v3236_v32, %s2330_s22 }
 0xa69   : > { %1321 = vrot.lane.b32.xlu1 %v3238_v0, %s2330_s22 }
 0xa6b   : > { %1335 = vrot.lane.b32.xlu0 %v3236_v32, %s2329_s21 }
 0xa6d   : > { %1337 = vrot.lane.b32.xlu1 %v3238_v0, %s2329_s21 }
 0xa6f   : > { %1351 = vrot.lane.b32.xlu0 %v3236_v32, %s2331_s23 }
 0xa71   : > { %1353 = vrot.lane.b32.xlu1 %v3238_v0, %s2331_s23 }
 0xa73   : > { %1367 = vrot.lane.b32.xlu0 %v3236_v32, %s2332_s24 }
 0xa75   : > { %1369 = vrot.lane.b32.xlu1 %v3238_v0, %s2332_s24 }
 0xa77   : > { %1427 = vrot.lane.b32.xlu0 %v3230_v18, %s2337_s28 }
 0xa79   : > { %1429 = vrot.lane.b32.xlu1 %v3232_v19, %s2337_s28 }
 0xa7b   : > { %1383 = vrot.lane.b32.xlu0 %v3236_v32, %s2333_s25 }
 0xa7d   : > { %1385 = vrot.lane.b32.xlu1 %v3238_v0, %s2333_s25 }
 0xa7f   : > { %1399 = vrot.lane.b32.xlu0 %v3236_v32, %s2334_s26 }
 0xa81   : > { %1401 = vrot.lane.b32.xlu1 %v3238_v0, %s2334_s26 }
 0xa83   : > { %1415 = vrot.lane.b32.xlu0 %v3236_v32, %s2336_s27 }
 0xa85   : > { %1417 = vrot.lane.b32.xlu1 %v3238_v0, %s2336_s27 }
 0xa87   : > { %1431 = vrot.lane.b32.xlu0 %v3236_v32, %s2337_s28 }
 0xa89   : > { %1433 = vrot.lane.b32.xlu1 %v3238_v0, %s2337_s28 }
 0xa8b   : > { %1463 = vperm.xlu0 %2304, %v1313_v28  }
 0xa8d   : > { %1468 = vperm.xlu1 %2305, %v1314_v20  }
 0xabd   : > { %v1316_v29 = vpop.permute.xlu0 %1315 }
 0xabf   : > { %v1318_v39 = vpop.permute.xlu1 %1317 }
 0xac1   : > { %v1332_v40 = vpop.permute.xlu0 %1331 }
 0xac3   : > { %v1334_v41 = vpop.permute.xlu1 %1333 }
 0xac5   : > { %v1348_v42 = vpop.permute.xlu0 %1347 }
 0xac7   : > { %v1350_v46 = vpop.permute.xlu1 %1349 }
 0xac9   : > { %v1364_v25 = vpop.permute.xlu0 %1363 }
 0xacb   : > { %v1366_v2 = vpop.permute.xlu1 %1365 }
 0xacd   : > { %v3316_v50 = vpop.permute.xlu0 %1379 }
 0xacf   : > { %v3318_v52 = vpop.permute.xlu1 %1381 }
 0xad1   : > { %v3320_v43 = vpop.permute.xlu0 %1395 }
 0xad3   : > { %v3322_v24 = vpop.permute.xlu1 %1397 }
 0xad5   : > { %v3324_v27 = vpop.permute.xlu0 %1411 }
 0xad7   : > { %v3326_v47 = vpop.permute.xlu1 %1413 }
 0xad9   : > { %v1320_v53 = vpop.permute.xlu0 %1319 }
 0xada   : > { %v1323_v55 = vsel %vm209_vm1, %v1316_v29, %v1320_v53  ;;  %v1325_v56 = vsel %vm209_vm1, %v1320_v53, %v1316_v29 }
 0xadb   : > { %v1322_v58 = vpop.permute.xlu1 %1321  ;;  %v1327_v62 = vmul.f32 %v1325_v56, %v2448_v15  ;;  %v1328_v26 = vmul.f32 %v1323_v55, %v2442_v13 }
 0xadc   : > { %v1324_v59 = vsel %vm209_vm1, %v1318_v39, %v1322_v58  ;;  %v1326_v23 = vsel %vm209_vm1, %v1322_v58, %v1318_v39 }
 0xadd   : > { %v1329_v49 = vmul.f32 %v1326_v23, %v2448_v15  ;;  %v1330_v3 = vmul.f32 %v1324_v59, %v2442_v13  ;;  %v1336_v48 = vpop.permute.xlu0 %1335 }
 0xade   : > { %v1339_v51 = vsel %vm226_vm0, %v1332_v40, %v1336_v48  ;;  %v1341_v63 = vsel %vm226_vm0, %v1336_v48, %v1332_v40 }
 0xadf   : > { %v1443_v1 = vpack.c.bf16 %v1329_v49, %v1327_v62  ;;  %v1338_v17 = vpop.permute.xlu1 %1337  ;;  %v1444_v30 = vpack.c.bf16 %v1330_v3, %v1328_v26  ;;  %v1343_v31 = vmul.f32 %v1341_v63, %v2451_v16  ;;  %v1344_v28 = vmul.f32 %v1339_v51, %v2445_v14 }
 0xae0   : > { %v1340_v10 = vsel %vm226_vm0, %v1334_v41, %v1338_v17  ;;  %v1342_v9 = vsel %vm226_vm0, %v1338_v17, %v1334_v41 }
 0xae1   : > { %v1345_v20 = vmul.f32 %v1342_v9, %v2451_v16  ;;  %v1346_v29 = vmul.f32 %v1340_v10, %v2445_v14  ;;  %1483 = vmatprep.subr.bf16.mxu1 %v1444_v30  ;;  %v1352_v39 = vpop.permute.xlu0 %1351 }
 0xae2   : > { %v1355_v40 = vsel %vm243_vm2, %v1348_v42, %v1352_v39  ;;  %v1357_v53 = vsel %vm243_vm2, %v1352_v39, %v1348_v42  ;;  %1484 = vmatpush1.bf16.msra.mxu1 %v1443_v1 }
 0xae3   : > { %v1445_v55 = vpack.c.bf16 %v1345_v20, %v1343_v31  ;;  %v1354_v56 = vpop.permute.xlu1 %1353  ;;  %v1446_v41 = vpack.c.bf16 %v1346_v29, %v1344_v28  ;;  %v1359_v23 = vmul.f32 %v1357_v53, %v2471_v34  ;;  %v1360_v62 = vmul.f32 %v1355_v40, %v2474_v35 }
 0xae4   : > { %v1356_v58 = vsel %vm243_vm2, %v1350_v46, %v1354_v56  ;;  %v1358_v59 = vsel %vm243_vm2, %v1354_v56, %v1350_v46 }
 0xae5   : > { %v1361_v26 = vmul.f32 %v1358_v59, %v2471_v34  ;;  %v1362_v49 = vmul.f32 %v1356_v58, %v2474_v35  ;;  %1485 = vmatprep.subr.bf16.mxu1 %v1446_v41  ;;  %v1368_v42 = vpop.permute.xlu0 %1367 }
 0xae6   : > { %v1371_v3 = vsel %vm260_vm3, %v1364_v25, %v1368_v42  ;;  %v1373_v48 = vsel %vm260_vm3, %v1368_v42, %v1364_v25  ;;  %1486 = vmatpush1.bf16.msra.mxu1 %v1445_v55 }
 0xae7   : > { %v1447_v51 = vpack.c.bf16 %v1361_v26, %v1359_v23  ;;  %v1370_v63 = vpop.permute.xlu1 %1369  ;;  %v1448_v46 = vpack.c.bf16 %v1362_v49, %v1360_v62  ;;  %v1375_v30 = vmul.f32 %v1373_v48, %v2477_v36  ;;  %v1376_v10 = vmul.f32 %v1371_v3, %v2480_v37 }
 0xae8   : > { %v1372_v1 = vsel %vm260_vm3, %v1366_v2, %v1370_v63  ;;  %v1374_v17 = vsel %vm260_vm3, %v1370_v63, %v1366_v2 }
 0xae9   : > { %v1377_v9 = vmul.f32 %v1374_v17, %v2477_v36  ;;  %v1378_v31 = vmul.f32 %v1372_v1, %v2480_v37  ;;  %1487 = vmatprep.subr.bf16.mxu1 %v1448_v46  ;;  %v1428_v25 = vpop.permute.xlu0 %1427 }
 0xaea   : > { %1488 = vmatpush1.bf16.msra.mxu1 %v1447_v51 }
 0xaeb   : > { %v1449_v28 = vpack.c.bf16 %v1377_v9, %v1375_v30  ;;  %v1430_v20 = vpop.permute.xlu1 %1429  ;;  %v1450_v29 = vpack.c.bf16 %v1378_v31, %v1376_v10 }
 0xaed   : > { %1489 = vmatprep.subr.bf16.mxu1 %v1450_v29  ;;  %v1384_v39 = vpop.permute.xlu0 %1383 }
 0xaee   : > { %v1387_v2 = vsel %vm277_vm4, %v3316_v50, %v1384_v39  ;;  %v1389_v40 = vsel %vm277_vm4, %v1384_v39, %v3316_v50  ;;  %1490 = vmatpush1.bf16.msra.mxu1 %v1449_v28 }
 0xaef   : > { %v1386_v53 = vpop.permute.xlu1 %1385  ;;  %1491 = vmatprep.subr.bf16.mxu1 %v1452_v38  ;;  %v1391_v41 = vmul.f32 %v1387_v2, %v2492_v44  ;;  %v1392_v58 = vmul.f32 %v1389_v40, %v2495_v45 }
 0xaf0   : > { %v1388_v55 = vsel %vm277_vm4, %v3318_v52, %v1386_v53  ;;  %v1390_v56 = vsel %vm277_vm4, %v1386_v53, %v3318_v52 }
 0xaf1   : > { %v1393_v50 = vmul.f32 %v1388_v55, %v2492_v44  ;;  %v1394_v59 = vmul.f32 %v1390_v56, %v2495_v45  ;;  %v1400_v23 = vpop.permute.xlu0 %1399 }
 0xaf2   : > { %v1403_v32 = vsel %vm294_vm5, %v3320_v43, %v1400_v23  ;;  %v1405_v0 = vsel %vm294_vm5, %v1400_v23, %v3320_v43  ;;  %1492 = vmatpush1.bf16.msra.mxu1 %v1451_v33 }
 0xaf3   : > { %v1453_v38 = vpack.c.bf16 %v1393_v50, %v1391_v41  ;;  %v1402_v52 = vpop.permute.xlu1 %1401  ;;  %v1454_v62 = vpack.c.bf16 %v1394_v59, %v1392_v58  ;;  %v1407_v42 = vmul.f32 %v1403_v32, %v2515_v7  ;;  %v1408_v3 = vmul.f32 %v1405_v0, %v2518_v8  ;;  %v2312_v50 = vld [vmem:[%s4103_s2 + $0x48] ss:$8 sps:$4 sm:$0xff]  }
 0xaf4   : > { %v1404_v26 = vsel %vm294_vm5, %v3322_v24, %v1402_v52  ;;  %v1406_v49 = vsel %vm294_vm5, %v1402_v52, %v3322_v24 }
 0xaf5   : > { %v1409_v43 = vmul.f32 %v1404_v26, %v2515_v7  ;;  %v1410_v18 = vmul.f32 %v1406_v49, %v2518_v8  ;;  %v1416_v19 = vpop.permute.xlu0 %1415  ;;  %1493 = vmatprep.subr.bf16.mxu1 %v1454_v62 }
 0xaf6   : > { %v1419_v33 = vsel %vm311_vm6, %v3324_v27, %v1416_v19  ;;  %v1421_v48 = vsel %vm311_vm6, %v1416_v19, %v3324_v27  ;;  %1494 = vmatpush1.bf16.msra.mxu1 %v1453_v38 }
 0xaf7   : > { %v1455_v24 = vpack.c.bf16 %v1409_v43, %v1407_v42  ;;  %v1418_v51 = vpop.permute.xlu1 %1417  ;;  %v1456_v63 = vpack.c.bf16 %v1410_v18, %v1408_v3  ;;  %v1423_v17 = vmul.f32 %v1419_v33, %v2521_v11  ;;  %v1424_v30 = vmul.f32 %v1421_v48, %v2524_v12  ;;  %v1533_v43 = vld [vmem:[%s4104_s3 + $0x60] sm:$0xff] }
 0xaf8   : > { %v1420_v46 = vsel %vm311_vm6, %v3326_v47, %v1418_v51  ;;  %v1422_v1 = vsel %vm311_vm6, %v1418_v51, %v3326_v47 }
 0xaf9   : > { %v1425_v10 = vmul.f32 %v1420_v46, %v2521_v11  ;;  %v1426_v27 = vmul.f32 %v1422_v1, %v2524_v12  ;;  %v1432_v9 = vpop.permute.xlu0 %1431  ;;  %1495 = vmatprep.subr.bf16.mxu1 %v1456_v63 }
 0xafa   : > { %v1435_v31 = vsel %vm328_vm7, %v1428_v25, %v1432_v9  ;;  %v1437_v28 = vsel %vm328_vm7, %v1432_v9, %v1428_v25  ;;  %1496 = vmatpush1.bf16.msra.mxu1 %v1455_v24 }
 0xafb   : > { %v1457_v29 = vpack.c.bf16 %v1425_v10, %v1423_v17  ;;  %v1434_v39 = vpop.permute.xlu1 %1433  ;;  %v1458_v47 = vpack.c.bf16 %v1426_v27, %v1424_v30  ;;  %v1439_v53 = vmul.f32 %v1435_v31, %v2539_v22  ;;  %v1440_v55 = vmul.f32 %v1437_v28, %v2536_v21 }
 0xafc   : > { %v1436_v2 = vsel %vm328_vm7, %v1430_v20, %v1434_v39  ;;  %v1438_v40 = vsel %vm328_vm7, %v1434_v39, %v1430_v20 }
 0xafd   : > { %v1441_v56 = vmul.f32 %v1436_v2, %v2539_v22  ;;  %v1442_v41 = vmul.f32 %v1438_v40, %v2536_v21  ;;  %1497 = vmatprep.subr.bf16.mxu1 %v1458_v47 }
 0xafe   : > { %1498 = vmatpush1.bf16.msra.mxu1 %v1457_v29 }
 0xaff   : > { %v1459_v25 = vpack.c.bf16 %v1441_v56, %v1439_v53  ;;  %v1460_v58 = vpack.c.bf16 %v1442_v41, %v1440_v55 }
 0xb01   : > { %1499 = vmatprep.subr.bf16.mxu1 %v1460_v58 }
 0xb02   : > { %1500 = vmatpush1.bf16.msra.mxu1 %v1459_v25 }
 0xb05   : > { %1516 = vmatmul.mubr.bf16.vlgmr.msra.gmra.mrb[16].mxu1 %v2312_v50 }
 0xb0a   : > { %v1464_v20 = vpop.permute.xlu0 %1463 }
 0xb0c   : > { %v1469_v0 = vpop.permute.xlu1 %1468 }
 0xbd8   : > { %v1517_v59 = vpop.f32.mrb[16].mxu1 }
 0xbd9   : > { %v1518_v23 = vadd.f32 %v1517_v59, %v1464_v20  ;;  %v1519_v32 = vpop.f32.mrb[17].mxu1 }
 0xbda   : > { %v1521_v38 = vpop.f32.mrb[18].mxu1 }
 0xbdb   : > { %v3446_v52 = vadd.f32 %v1518_v23, %v3021_v54  ;;  %v1522_v62 = vadd.f32 %v1521_v38, %v1469_v0  ;;  %v1523_v26 = vpop.f32.mrb[19].mxu1  ;;  %v1520_v54 = vadd.f32 %v1519_v32, %v1464_v20 }
 0xbdd   : > { %v3449_v49 = vadd.f32 %v1522_v62, %v3023_v57  ;;  %1534 = vrot.lane.b32.xlu0 %v3446_v52, %s2330_s22  ;;  %v1524_v57 = vadd.f32 %v1523_v26, %v1469_v0  ;;  %v3478_v42 = vadd.f32 %v1520_v54, %v3051_v60  ;;  %v2313_v60 = vld [vmem:[%s4103_s2 + $0x5c] ss:$8 sps:$4 sm:$0xff]  }
 0xbde   : > { %2276 = vmatprep.mubr.msk.bf16.mxu0 %vm1260_vm10, %v2313_v60 }
 0xbdf   : > { %1536 = vrot.lane.b32.xlu1 %v3449_v49, %s2330_s22  ;;  %v3483_v3 = vadd.f32 %v1524_v57, %v3055_v61  ;;  %v1532_v61 = vld [vmem:[%s4104_s3 + $0x58] sm:$0xff] }
 0xbe1   : > { %1550 = vrot.lane.b32.xlu0 %v3446_v52, %s2329_s21 }
 0xbe3   : > { %1552 = vrot.lane.b32.xlu1 %v3449_v49, %s2329_s21 }
 0xbe5   : > { %1566 = vrot.lane.b32.xlu0 %v3446_v52, %s2331_s23 }
 0xbe7   : > { %1568 = vrot.lane.b32.xlu1 %v3449_v49, %s2331_s23 }
 0xbe9   : > { %1582 = vrot.lane.b32.xlu0 %v3446_v52, %s2332_s24 }
 0xbeb   : > { %1584 = vrot.lane.b32.xlu1 %v3449_v49, %s2332_s24 }
 0xbed   : > { %1598 = vrot.lane.b32.xlu0 %v3446_v52, %s2333_s25 }
 0xbef   : > { %1600 = vrot.lane.b32.xlu1 %v3449_v49, %s2333_s25 }
 0xbf1   : > { %1614 = vrot.lane.b32.xlu0 %v3446_v52, %s2334_s26 }
 0xbf3   : > { %1616 = vrot.lane.b32.xlu1 %v3449_v49, %s2334_s26 }
 0xbf5   : > { %1630 = vrot.lane.b32.xlu0 %v3446_v52, %s2336_s27 }
 0xbf7   : > { %1632 = vrot.lane.b32.xlu1 %v3449_v49, %s2336_s27 }
 0xbf9   : > { %1538 = vrot.lane.b32.xlu0 %v3478_v42, %s2330_s22 }
 0xbfb   : > { %1540 = vrot.lane.b32.xlu1 %v3483_v3, %s2330_s22 }
 0xbfd   : > { %1554 = vrot.lane.b32.xlu0 %v3478_v42, %s2329_s21 }
 0xbff   : > { %1556 = vrot.lane.b32.xlu1 %v3483_v3, %s2329_s21 }
 0xc01   : > { %1570 = vrot.lane.b32.xlu0 %v3478_v42, %s2331_s23 }
 0xc03   : > { %1572 = vrot.lane.b32.xlu1 %v3483_v3, %s2331_s23 }
 0xc05   : > { %1586 = vrot.lane.b32.xlu0 %v3478_v42, %s2332_s24 }
 0xc07   : > { %1588 = vrot.lane.b32.xlu1 %v3483_v3, %s2332_s24 }
 0xc09   : > { %1646 = vrot.lane.b32.xlu0 %v3446_v52, %s2337_s28 }
 0xc0b   : > { %1648 = vrot.lane.b32.xlu1 %v3449_v49, %s2337_s28 }
 0xc0d   : > { %1602 = vrot.lane.b32.xlu0 %v3478_v42, %s2333_s25 }
 0xc0f   : > { %1604 = vrot.lane.b32.xlu1 %v3483_v3, %s2333_s25 }
 0xc11   : > { %1618 = vrot.lane.b32.xlu0 %v3478_v42, %s2334_s26 }
 0xc13   : > { %1620 = vrot.lane.b32.xlu1 %v3483_v3, %s2334_s26 }
 0xc15   : > { %1634 = vrot.lane.b32.xlu0 %v3478_v42, %s2336_s27 }
 0xc17   : > { %1636 = vrot.lane.b32.xlu1 %v3483_v3, %s2336_s27 }
 0xc19   : > { %1650 = vrot.lane.b32.xlu0 %v3478_v42, %s2337_s28 }
 0xc1b   : > { %1652 = vrot.lane.b32.xlu1 %v3483_v3, %s2337_s28 }
 0xc1d   : > { %1682 = vperm.xlu0 %2304, %v1532_v61  }
 0xc1f   : > { %1687 = vperm.xlu1 %2305, %v1533_v43  }
 0xc4f   : > { %v1535_v18 = vpop.permute.xlu0 %1534 }
 0xc51   : > { %v1537_v19 = vpop.permute.xlu1 %1536 }
 0xc53   : > { %v1551_v33 = vpop.permute.xlu0 %1550 }
 0xc55   : > { %v1553_v48 = vpop.permute.xlu1 %1552 }
 0xc57   : > { %v1567_v24 = vpop.permute.xlu0 %1566 }
 0xc59   : > { %v1569_v51 = vpop.permute.xlu1 %1568 }
 0xc5b   : > { %v1583_v63 = vpop.permute.xlu0 %1582 }
 0xc5d   : > { %v1585_v46 = vpop.permute.xlu1 %1584 }
 0xc5f   : > { %v3531_v1 = vpop.permute.xlu0 %1598 }
 0xc61   : > { %v3533_v17 = vpop.permute.xlu1 %1600 }
 0xc63   : > { %v3535_v30 = vpop.permute.xlu0 %1614 }
 0xc65   : > { %v3537_v10 = vpop.permute.xlu1 %1616 }
 0xc67   : > { %v3539_v27 = vpop.permute.xlu0 %1630 }
 0xc69   : > { %v3541_v9 = vpop.permute.xlu1 %1632 }
 0xc6b   : > { %v1539_v31 = vpop.permute.xlu0 %1538 }
 0xc6c   : > { %v1542_v28 = vsel %vm209_vm1, %v1535_v18, %v1539_v31  ;;  %v1544_v29 = vsel %vm209_vm1, %v1539_v31, %v1535_v18 }
 0xc6d   : > { %v1541_v39 = vpop.permute.xlu1 %1540  ;;  %v1546_v40 = vmul.f32 %v1544_v29, %v2448_v15  ;;  %v1547_v53 = vmul.f32 %v1542_v28, %v2442_v13 }
 0xc6e   : > { %v1543_v47 = vsel %vm209_vm1, %v1537_v19, %v1541_v39  ;;  %v1545_v2 = vsel %vm209_vm1, %v1541_v39, %v1537_v19 }
 0xc6f   : > { %v1548_v55 = vmul.f32 %v1545_v2, %v2448_v15  ;;  %v1549_v56 = vmul.f32 %v1543_v47, %v2442_v13  ;;  %v1555_v41 = vpop.permute.xlu0 %1554 }
 0xc70   : > { %v1558_v25 = vsel %vm226_vm0, %v1551_v33, %v1555_v41  ;;  %v1560_v58 = vsel %vm226_vm0, %v1555_v41, %v1551_v33 }
 0xc71   : > { %v1662_v50 = vpack.c.bf16 %v1548_v55, %v1546_v40  ;;  %v1557_v20 = vpop.permute.xlu1 %1556  ;;  %v1663_v59 = vpack.c.bf16 %v1549_v56, %v1547_v53  ;;  %v1562_v0 = vmul.f32 %v1560_v58, %v2451_v16  ;;  %v1563_v38 = vmul.f32 %v1558_v25, %v2445_v14 }
 0xc72   : > { %v1559_v23 = vsel %vm226_vm0, %v1553_v48, %v1557_v20  ;;  %v1561_v32 = vsel %vm226_vm0, %v1557_v20, %v1553_v48 }
 0xc73   : > { %v1564_v62 = vmul.f32 %v1561_v32, %v2451_v16  ;;  %v1565_v26 = vmul.f32 %v1559_v23, %v2445_v14  ;;  %1702 = vmatprep.subr.bf16.mxu0 %v1663_v59  ;;  %v1571_v54 = vpop.permute.xlu0 %1570  ;;  %v1671_v32 = vpack.c.bf16 %v3483_v3, %v3478_v42 }
 0xc74   : > { %v1574_v57 = vsel %vm243_vm2, %v1567_v24, %v1571_v54  ;;  %v1576_v60 = vsel %vm243_vm2, %v1571_v54, %v1567_v24  ;;  %1703 = vmatpush1.bf16.msra.mxu0 %v1662_v50  ;;  %v1670_v54 = vpack.c.bf16 %v3449_v49, %v3446_v52 }
 0xc75   : > { %v1664_v61 = vpack.c.bf16 %v1564_v62, %v1562_v0  ;;  %v1573_v43 = vpop.permute.xlu1 %1572  ;;  %v1665_v18 = vpack.c.bf16 %v1565_v26, %v1563_v38  ;;  %v1578_v48 = vmul.f32 %v1576_v60, %v2471_v34  ;;  %v1579_v31 = vmul.f32 %v1574_v57, %v2474_v35 }
 0xc76   : > { %v1575_v19 = vsel %vm243_vm2, %v1569_v51, %v1573_v43  ;;  %v1577_v33 = vsel %vm243_vm2, %v1573_v43, %v1569_v51 }
 0xc77   : > { %v1580_v28 = vmul.f32 %v1577_v33, %v2471_v34  ;;  %v1581_v29 = vmul.f32 %v1575_v19, %v2474_v35  ;;  %1704 = vmatprep.subr.bf16.mxu0 %v1665_v18  ;;  %v1587_v24 = vpop.permute.xlu0 %1586 }
 0xc78   : > { %v1590_v39 = vsel %vm260_vm3, %v1583_v63, %v1587_v24  ;;  %v1592_v47 = vsel %vm260_vm3, %v1587_v24, %v1583_v63  ;;  %1705 = vmatpush1.bf16.msra.mxu0 %v1664_v61 }
 0xc79   : > { %v1666_v2 = vpack.c.bf16 %v1580_v28, %v1578_v48  ;;  %v1589_v40 = vpop.permute.xlu1 %1588  ;;  %v1667_v51 = vpack.c.bf16 %v1581_v29, %v1579_v31  ;;  %v1594_v56 = vmul.f32 %v1592_v47, %v2477_v36  ;;  %v1595_v41 = vmul.f32 %v1590_v39, %v2480_v37 }
 0xc7a   : > { %v1591_v53 = vsel %vm260_vm3, %v1585_v46, %v1589_v40  ;;  %v1593_v55 = vsel %vm260_vm3, %v1589_v40, %v1585_v46 }
 0xc7b   : > { %v1596_v25 = vmul.f32 %v1593_v55, %v2477_v36  ;;  %v1597_v58 = vmul.f32 %v1591_v53, %v2480_v37  ;;  %1706 = vmatprep.subr.bf16.mxu0 %v1667_v51  ;;  %v1647_v63 = vpop.permute.xlu0 %1646 }
 0xc7c   : > { %1707 = vmatpush1.bf16.msra.mxu0 %v1666_v2 }
 0xc7d   : > { %v1668_v50 = vpack.c.bf16 %v1596_v25, %v1594_v56  ;;  %v1649_v20 = vpop.permute.xlu1 %1648  ;;  %v1669_v59 = vpack.c.bf16 %v1597_v58, %v1595_v41 }
 0xc7f   : > { %1708 = vmatprep.subr.bf16.mxu0 %v1669_v59  ;;  %v1603_v23 = vpop.permute.xlu0 %1602 }
 0xc80   : > { %v1606_v46 = vsel %vm277_vm4, %v3531_v1, %v1603_v23  ;;  %v1608_v0 = vsel %vm277_vm4, %v1603_v23, %v3531_v1  ;;  %1709 = vmatpush1.bf16.msra.mxu0 %v1668_v50 }
 0xc81   : > { %v1605_v38 = vpop.permute.xlu1 %1604  ;;  %1710 = vmatprep.subr.bf16.mxu0 %v1671_v32  ;;  %v1610_v57 = vmul.f32 %v1606_v46, %v2492_v44  ;;  %v1611_v60 = vmul.f32 %v1608_v0, %v2495_v45 }
 0xc82   : > { %v1607_v62 = vsel %vm277_vm4, %v3533_v17, %v1605_v38  ;;  %v1609_v26 = vsel %vm277_vm4, %v1605_v38, %v3533_v17 }
 0xc83   : > { %v1612_v1 = vmul.f32 %v1607_v62, %v2492_v44  ;;  %v1613_v61 = vmul.f32 %v1609_v26, %v2495_v45  ;;  %v1619_v43 = vpop.permute.xlu0 %1618 }
 0xc84   : > { %v1622_v18 = vsel %vm294_vm5, %v3535_v30, %v1619_v43  ;;  %v1624_v17 = vsel %vm294_vm5, %v1619_v43, %v3535_v30  ;;  %1711 = vmatpush1.bf16.msra.mxu0 %v1670_v54 }
 0xc85   : > { %v1672_v19 = vpack.c.bf16 %v1612_v1, %v1610_v57  ;;  %v1621_v33 = vpop.permute.xlu1 %1620  ;;  %v1673_v48 = vpack.c.bf16 %v1613_v61, %v1611_v60  ;;  %v1626_v29 = vmul.f32 %v1622_v18, %v2515_v7  ;;  %v1627_v24 = vmul.f32 %v1624_v17, %v2518_v8  ;;  %v2315_v1 = vld [vmem:[%s4103_s2 + $0x58] ss:$8 sps:$4 sm:$0xff]  }
 0xc86   : > { %v1623_v31 = vsel %vm294_vm5, %v3537_v10, %v1621_v33  ;;  %v1625_v28 = vsel %vm294_vm5, %v1621_v33, %v3537_v10 }
 0xc87   : > { %v1628_v39 = vmul.f32 %v1623_v31, %v2515_v7  ;;  %v1629_v30 = vmul.f32 %v1625_v28, %v2518_v8  ;;  %v1635_v47 = vpop.permute.xlu0 %1634  ;;  %1712 = vmatprep.subr.bf16.mxu0 %v1673_v48 }
 0xc88   : > { %v1638_v2 = vsel %vm311_vm6, %v3539_v27, %v1635_v47  ;;  %v1640_v40 = vsel %vm311_vm6, %v1635_v47, %v3539_v27  ;;  %1713 = vmatpush1.bf16.msra.mxu0 %v1672_v19 }
 0xc89   : > { %v1674_v10 = vpack.c.bf16 %v1628_v39, %v1626_v29  ;;  %v1637_v51 = vpop.permute.xlu1 %1636  ;;  %v1675_v53 = vpack.c.bf16 %v1629_v30, %v1627_v24  ;;  %v1642_v41 = vmul.f32 %v1638_v2, %v2521_v11  ;;  %v1643_v25 = vmul.f32 %v1640_v40, %v2524_v12  ;;  %v2316_v40 = vld [vmem:[%s4103_s2 + $0x6c] ss:$8 sps:$4 sm:$0xff]  }
 0xc8a   : > { %v1639_v55 = vsel %vm311_vm6, %v3541_v9, %v1637_v51  ;;  %v1641_v56 = vsel %vm311_vm6, %v1637_v51, %v3541_v9  ;;  %2279 = vmatprep.mubr.msk.bf16.mxu1 %vm1260_vm10, %v2316_v40  ;;  %v1752_v51 = vld [vmem:[%s4104_s3 + $0x70] sm:$0xff] }
 0xc8b   : > { %v1644_v58 = vmul.f32 %v1639_v55, %v2521_v11  ;;  %v1645_v27 = vmul.f32 %v1641_v56, %v2524_v12  ;;  %v1651_v50 = vpop.permute.xlu0 %1650  ;;  %1714 = vmatprep.subr.bf16.mxu0 %v1675_v53 }
 0xc8c   : > { %v1654_v59 = vsel %vm328_vm7, %v1647_v63, %v1651_v50  ;;  %v1656_v23 = vsel %vm328_vm7, %v1651_v50, %v1647_v63  ;;  %1715 = vmatpush1.bf16.msra.mxu0 %v1674_v10  ;;  %v1751_v10 = vld [vmem:[%s4104_s3 + $0x68] sm:$0xff] }
 0xc8d   : > { %v1676_v32 = vpack.c.bf16 %v1644_v58, %v1642_v41  ;;  %v1653_v46 = vpop.permute.xlu1 %1652  ;;  %v1677_v9 = vpack.c.bf16 %v1645_v27, %v1643_v25  ;;  %v1658_v62 = vmul.f32 %v1654_v59, %v2539_v22  ;;  %v1659_v26 = vmul.f32 %v1656_v23, %v2536_v21 }
 0xc8e   : > { %v1655_v0 = vsel %vm328_vm7, %v1649_v20, %v1653_v46  ;;  %v1657_v38 = vsel %vm328_vm7, %v1653_v46, %v1649_v20 }
 0xc8f   : > { %v1660_v54 = vmul.f32 %v1655_v0, %v2539_v22  ;;  %v1661_v57 = vmul.f32 %v1657_v38, %v2536_v21  ;;  %1716 = vmatprep.subr.bf16.mxu0 %v1677_v9 }
 0xc90   : > { %1717 = vmatpush1.bf16.msra.mxu0 %v1676_v32 }
 0xc91   : > { %v1678_v63 = vpack.c.bf16 %v1660_v54, %v1658_v62  ;;  %v1679_v60 = vpack.c.bf16 %v1661_v57, %v1659_v26 }
 0xc93   : > { %1718 = vmatprep.subr.bf16.mxu0 %v1679_v60 }
 0xc94   : > { %1719 = vmatpush1.bf16.msra.mxu0 %v1678_v63 }
 0xc97   : > { %1735 = vmatmul.mubr.bf16.vlgmr.msra.gmra.mrb[12].mxu0 %v2315_v1 }
 0xc9c   : > { %v1683_v20 = vpop.permute.xlu0 %1682 }
 0xc9e   : > { %v1688_v17 = vpop.permute.xlu1 %1687 }
 0xd6a   : > { %v1736_v61 = vpop.f32.mrb[12].mxu0 }
 0xd6b   : > { %v1737_v43 = vadd.f32 %v1736_v61, %v1683_v20  ;;  %v1738_v18 = vpop.f32.mrb[13].mxu0 }
 0xd6c   : > { %v1739_v19 = vadd.f32 %v1738_v18, %v1683_v20  ;;  %v1740_v33 = vpop.f32.mrb[14].mxu0 }
 0xd6d   : > { %v3658_v48 = vmax.f32 %v1737_v43, 0.0  ;;  %v1741_v31 = vadd.f32 %v1740_v33, %v1688_v17  ;;  %v1742_v28 = vpop.f32.mrb[15].mxu0 }
 0xd6e   : > { %v1743_v29 = vadd.f32 %v1742_v28, %v1688_v17  ;;  %v3664_v39 = vmax.f32 %v1739_v19, 0.0 }
 0xd6f   : > { %v3660_v24 = vmax.f32 %v1741_v31, 0.0  ;;  %1753 = vrot.lane.b32.xlu0 %v3658_v48, %s2330_s22 }
 0xd70   : > { %v3666_v30 = vmax.f32 %v1743_v29, 0.0 }
 0xd71   : > { %1755 = vrot.lane.b32.xlu1 %v3660_v24, %s2330_s22  ;;  %v1889_v47 = vpack.c.bf16 %v3660_v24, %v3658_v48 }
 0xd72   : > { %v1890_v2 = vpack.c.bf16 %v3666_v30, %v3664_v39 }
 0xd73   : > { %1769 = vrot.lane.b32.xlu0 %v3658_v48, %s2329_s21 }
 0xd75   : > { %1771 = vrot.lane.b32.xlu1 %v3660_v24, %s2329_s21 }
 0xd77   : > { %1785 = vrot.lane.b32.xlu0 %v3658_v48, %s2331_s23 }
 0xd79   : > { %1787 = vrot.lane.b32.xlu1 %v3660_v24, %s2331_s23 }
 0xd7b   : > { %1801 = vrot.lane.b32.xlu0 %v3658_v48, %s2332_s24 }
 0xd7d   : > { %1803 = vrot.lane.b32.xlu1 %v3660_v24, %s2332_s24 }
 0xd7f   : > { %1817 = vrot.lane.b32.xlu0 %v3658_v48, %s2333_s25 }
 0xd81   : > { %1819 = vrot.lane.b32.xlu1 %v3660_v24, %s2333_s25 }
 0xd83   : > { %1833 = vrot.lane.b32.xlu0 %v3658_v48, %s2334_s26 }
 0xd85   : > { %1835 = vrot.lane.b32.xlu1 %v3660_v24, %s2334_s26 }
 0xd87   : > { %1849 = vrot.lane.b32.xlu0 %v3658_v48, %s2336_s27 }
 0xd89   : > { %1851 = vrot.lane.b32.xlu1 %v3660_v24, %s2336_s27 }
 0xd8b   : > { %1757 = vrot.lane.b32.xlu0 %v3664_v39, %s2330_s22 }
 0xd8d   : > { %1759 = vrot.lane.b32.xlu1 %v3666_v30, %s2330_s22 }
 0xd8f   : > { %1773 = vrot.lane.b32.xlu0 %v3664_v39, %s2329_s21 }
 0xd91   : > { %1775 = vrot.lane.b32.xlu1 %v3666_v30, %s2329_s21 }
 0xd93   : > { %1789 = vrot.lane.b32.xlu0 %v3664_v39, %s2331_s23 }
 0xd95   : > { %1791 = vrot.lane.b32.xlu1 %v3666_v30, %s2331_s23 }
 0xd97   : > { %1805 = vrot.lane.b32.xlu0 %v3664_v39, %s2332_s24 }
 0xd99   : > { %1807 = vrot.lane.b32.xlu1 %v3666_v30, %s2332_s24 }
 0xd9b   : > { %1865 = vrot.lane.b32.xlu0 %v3658_v48, %s2337_s28 }
 0xd9d   : > { %1867 = vrot.lane.b32.xlu1 %v3660_v24, %s2337_s28 }
 0xd9f   : > { %1821 = vrot.lane.b32.xlu0 %v3664_v39, %s2333_s25 }
 0xda1   : > { %1823 = vrot.lane.b32.xlu1 %v3666_v30, %s2333_s25 }
 0xda3   : > { %1837 = vrot.lane.b32.xlu0 %v3664_v39, %s2334_s26 }
 0xda5   : > { %1839 = vrot.lane.b32.xlu1 %v3666_v30, %s2334_s26 }
 0xda7   : > { %1853 = vrot.lane.b32.xlu0 %v3664_v39, %s2336_s27 }
 0xda9   : > { %1855 = vrot.lane.b32.xlu1 %v3666_v30, %s2336_s27 }
 0xdab   : > { %1869 = vrot.lane.b32.xlu0 %v3664_v39, %s2337_s28 }
 0xdad   : > { %1871 = vrot.lane.b32.xlu1 %v3666_v30, %s2337_s28 }
 0xdaf   : > { %1901 = vperm.xlu0 %2304, %v1751_v10  }
 0xdb1   : > { %1906 = vperm.xlu1 %2305, %v1752_v51  }
 0xde1   : > { %v1754_v53 = vpop.permute.xlu0 %1753 }
 0xde3   : > { %v1756_v55 = vpop.permute.xlu1 %1755 }
 0xde5   : > { %v1770_v56 = vpop.permute.xlu0 %1769 }
 0xde7   : > { %v1772_v41 = vpop.permute.xlu1 %1771 }
 0xde9   : > { %v1786_v25 = vpop.permute.xlu0 %1785 }
 0xdeb   : > { %v1788_v58 = vpop.permute.xlu1 %1787 }
 0xded   : > { %v1802_v27 = vpop.permute.xlu0 %1801 }
 0xdef   : > { %v1804_v50 = vpop.permute.xlu1 %1803 }
 0xdf1   : > { %v3744_v59 = vpop.permute.xlu0 %1817 }
 0xdf3   : > { %v3746_v23 = vpop.permute.xlu1 %1819 }
 0xdf5   : > { %v3748_v32 = vpop.permute.xlu0 %1833 }
 0xdf7   : > { %v3750_v46 = vpop.permute.xlu1 %1835 }
 0xdf9   : > { %v3752_v9 = vpop.permute.xlu0 %1849 }
 0xdfb   : > { %v3754_v0 = vpop.permute.xlu1 %1851 }
 0xdfd   : > { %v1758_v38 = vpop.permute.xlu0 %1757 }
 0xdfe   : > { %v1761_v62 = vsel %vm209_vm1, %v1754_v53, %v1758_v38  ;;  %v1763_v26 = vsel %vm209_vm1, %v1758_v38, %v1754_v53 }
 0xdff   : > { %v1760_v54 = vpop.permute.xlu1 %1759  ;;  %v1765_v60 = vmul.f32 %v1763_v26, %v2448_v15  ;;  %v1766_v1 = vmul.f32 %v1761_v62, %v2442_v13 }
 0xe00   : > { %v1762_v57 = vsel %vm209_vm1, %v1756_v55, %v1760_v54  ;;  %v1764_v63 = vsel %vm209_vm1, %v1760_v54, %v1756_v55 }
 0xe01   : > { %v1767_v20 = vmul.f32 %v1764_v63, %v2448_v15  ;;  %v1768_v61 = vmul.f32 %v1762_v57, %v2442_v13  ;;  %v1774_v43 = vpop.permute.xlu0 %1773 }
 0xe02   : > { %v1777_v18 = vsel %vm226_vm0, %v1770_v56, %v1774_v43  ;;  %v1779_v17 = vsel %vm226_vm0, %v1774_v43, %v1770_v56 }
 0xe03   : > { %v1881_v19 = vpack.c.bf16 %v1767_v20, %v1765_v60  ;;  %v1776_v33 = vpop.permute.xlu1 %1775  ;;  %v1882_v31 = vpack.c.bf16 %v1768_v61, %v1766_v1  ;;  %v1781_v40 = vmul.f32 %v1779_v17, %v2451_v16  ;;  %v1782_v10 = vmul.f32 %v1777_v18, %v2445_v14 }
 0xe04   : > { %v1778_v28 = vsel %vm226_vm0, %v1772_v41, %v1776_v33  ;;  %v1780_v29 = vsel %vm226_vm0, %v1776_v33, %v1772_v41 }
 0xe05   : > { %v1783_v51 = vmul.f32 %v1780_v29, %v2451_v16  ;;  %v1784_v53 = vmul.f32 %v1778_v28, %v2445_v14  ;;  %1921 = vmatprep.subr.bf16.mxu1 %v1882_v31  ;;  %v1790_v55 = vpop.permute.xlu0 %1789 }
 0xe06   : > { %v1793_v56 = vsel %vm243_vm2, %v1786_v25, %v1790_v55  ;;  %v1795_v38 = vsel %vm243_vm2, %v1790_v55, %v1786_v25  ;;  %1922 = vmatpush1.bf16.msra.mxu1 %v1881_v19 }
 0xe07   : > { %v1883_v62 = vpack.c.bf16 %v1783_v51, %v1781_v40  ;;  %v1792_v26 = vpop.permute.xlu1 %1791  ;;  %v1884_v41 = vpack.c.bf16 %v1784_v53, %v1782_v10  ;;  %v1797_v63 = vmul.f32 %v1795_v38, %v2471_v34  ;;  %v1798_v60 = vmul.f32 %v1793_v56, %v2474_v35 }
 0xe08   : > { %v1794_v54 = vsel %vm243_vm2, %v1788_v58, %v1792_v26  ;;  %v1796_v57 = vsel %vm243_vm2, %v1792_v26, %v1788_v58 }
 0xe09   : > { %v1799_v1 = vmul.f32 %v1796_v57, %v2471_v34  ;;  %v1800_v20 = vmul.f32 %v1794_v54, %v2474_v35  ;;  %1923 = vmatprep.subr.bf16.mxu1 %v1884_v41  ;;  %v1806_v25 = vpop.permute.xlu0 %1805 }
 0xe0a   : > { %v1809_v61 = vsel %vm260_vm3, %v1802_v27, %v1806_v25  ;;  %v1811_v43 = vsel %vm260_vm3, %v1806_v25, %v1802_v27  ;;  %1924 = vmatpush1.bf16.msra.mxu1 %v1883_v62 }
 0xe0b   : > { %v1885_v18 = vpack.c.bf16 %v1799_v1, %v1797_v63  ;;  %v1808_v17 = vpop.permute.xlu1 %1807  ;;  %v1886_v58 = vpack.c.bf16 %v1800_v20, %v1798_v60  ;;  %v1813_v31 = vmul.f32 %v1811_v43, %v2477_v36  ;;  %v1814_v28 = vmul.f32 %v1809_v61, %v2480_v37 }
 0xe0c   : > { %v1810_v19 = vsel %vm260_vm3, %v1804_v50, %v1808_v17  ;;  %v1812_v33 = vsel %vm260_vm3, %v1808_v17, %v1804_v50 }
 0xe0d   : > { %v1815_v29 = vmul.f32 %v1812_v33, %v2477_v36  ;;  %v1816_v40 = vmul.f32 %v1810_v19, %v2480_v37  ;;  %1925 = vmatprep.subr.bf16.mxu1 %v1886_v58  ;;  %v1866_v27 = vpop.permute.xlu0 %1865 }
 0xe0e   : > { %1926 = vmatpush1.bf16.msra.mxu1 %v1885_v18 }
 0xe0f   : > { %v1887_v10 = vpack.c.bf16 %v1815_v29, %v1813_v31  ;;  %v1868_v51 = vpop.permute.xlu1 %1867  ;;  %v1888_v53 = vpack.c.bf16 %v1816_v40, %v1814_v28 }
 0xe11   : > { %1927 = vmatprep.subr.bf16.mxu1 %v1888_v53  ;;  %v1822_v55 = vpop.permute.xlu0 %1821 }
 0xe12   : > { %v1825_v50 = vsel %vm277_vm4, %v3744_v59, %v1822_v55  ;;  %v1827_v56 = vsel %vm277_vm4, %v1822_v55, %v3744_v59  ;;  %1928 = vmatpush1.bf16.msra.mxu1 %v1887_v10 }
 0xe13   : > { %v1824_v38 = vpop.permute.xlu1 %1823  ;;  %1929 = vmatprep.subr.bf16.mxu1 %v1890_v2  ;;  %v1829_v41 = vmul.f32 %v1825_v50, %v2492_v44  ;;  %v1830_v54 = vmul.f32 %v1827_v56, %v2495_v45 }
 0xe14   : > { %v1826_v62 = vsel %vm277_vm4, %v3746_v23, %v1824_v38  ;;  %v1828_v26 = vsel %vm277_vm4, %v1824_v38, %v3746_v23 }
 0xe15   : > { %v1831_v59 = vmul.f32 %v1826_v62, %v2492_v44  ;;  %v1832_v57 = vmul.f32 %v1828_v26, %v2495_v45  ;;  %v1838_v63 = vpop.permute.xlu0 %1837 }
 0xe16   : > { %v1841_v39 = vsel %vm294_vm5, %v3748_v32, %v1838_v63  ;;  %v1843_v30 = vsel %vm294_vm5, %v1838_v63, %v3748_v32  ;;  %1930 = vmatpush1.bf16.msra.mxu1 %v1889_v47 }
 0xe17   : > { %v1891_v2 = vpack.c.bf16 %v1831_v59, %v1829_v41  ;;  %v1840_v23 = vpop.permute.xlu1 %1839  ;;  %v1892_v60 = vpack.c.bf16 %v1832_v57, %v1830_v54  ;;  %v1845_v25 = vmul.f32 %v1841_v39, %v2515_v7  ;;  %v1846_v61 = vmul.f32 %v1843_v30, %v2518_v8  ;;  %v2318_v59 = vld [vmem:[%s4103_s2 + $0x68] ss:$8 sps:$4 sm:$0xff]  }
 0xe18   : > { %v1842_v1 = vsel %vm294_vm5, %v3750_v46, %v1840_v23  ;;  %v1844_v20 = vsel %vm294_vm5, %v1840_v23, %v3750_v46 }
 0xe19   : > { %v1847_v32 = vmul.f32 %v1842_v1, %v2515_v7  ;;  %v1848_v48 = vmul.f32 %v1844_v20, %v2518_v8  ;;  %v1854_v24 = vpop.permute.xlu0 %1853  ;;  %1931 = vmatprep.subr.bf16.mxu1 %v1892_v60 }
 0xe1a   : > { %v1857_v47 = vsel %vm311_vm6, %v3752_v9, %v1854_v24  ;;  %v1859_v43 = vsel %vm311_vm6, %v1854_v24, %v3752_v9  ;;  %1932 = vmatpush1.bf16.msra.mxu1 %v1891_v2 }
 0xe1b   : > { %v1893_v46 = vpack.c.bf16 %v1847_v32, %v1845_v25  ;;  %v1856_v18 = vpop.permute.xlu1 %1855  ;;  %v1894_v17 = vpack.c.bf16 %v1848_v48, %v1846_v61  ;;  %v1861_v33 = vmul.f32 %v1857_v47, %v2521_v11  ;;  %v1862_v31 = vmul.f32 %v1859_v43, %v2524_v12 }
 0xe1c   : > { %v1858_v58 = vsel %vm311_vm6, %v3754_v0, %v1856_v18  ;;  %v1860_v19 = vsel %vm311_vm6, %v1856_v18, %v3754_v0 }
 0xe1d   : > { %v1863_v28 = vmul.f32 %v1858_v58, %v2521_v11  ;;  %v1864_v9 = vmul.f32 %v1860_v19, %v2524_v12  ;;  %v1870_v29 = vpop.permute.xlu0 %1869  ;;  %1933 = vmatprep.subr.bf16.mxu1 %v1894_v17 }
 0xe1e   : > { %v1873_v40 = vsel %vm328_vm7, %v1866_v27, %v1870_v29  ;;  %v1875_v10 = vsel %vm328_vm7, %v1870_v29, %v1866_v27  ;;  %1934 = vmatpush1.bf16.msra.mxu1 %v1893_v46 }
 0xe1f   : > { %v1895_v53 = vpack.c.bf16 %v1863_v28, %v1861_v33  ;;  %v1872_v55 = vpop.permute.xlu1 %1871  ;;  %v1896_v0 = vpack.c.bf16 %v1864_v9, %v1862_v31  ;;  %v1877_v38 = vmul.f32 %v1873_v40, %v2539_v22  ;;  %v1878_v62 = vmul.f32 %v1875_v10, %v2536_v21 }
 0xe20   : > { %v1874_v50 = vsel %vm328_vm7, %v1868_v51, %v1872_v55  ;;  %v1876_v56 = vsel %vm328_vm7, %v1872_v55, %v1868_v51 }
 0xe21   : > { %v1879_v26 = vmul.f32 %v1874_v50, %v2539_v22  ;;  %v1880_v41 = vmul.f32 %v1876_v56, %v2536_v21  ;;  %1935 = vmatprep.subr.bf16.mxu1 %v1896_v0 }
 0xe22   : > { %1936 = vmatpush1.bf16.msra.mxu1 %v1895_v53 }
 0xe23   : > { %v1897_v27 = vpack.c.bf16 %v1879_v26, %v1877_v38  ;;  %v1898_v54 = vpack.c.bf16 %v1880_v41, %v1878_v62 }
 0xe25   : > { %1937 = vmatprep.subr.bf16.mxu1 %v1898_v54 }
 0xe26   : > { %1938 = vmatpush1.bf16.msra.mxu1 %v1897_v27 }
 0xe29   : > { %1954 = vmatmul.mubr.bf16.vlgmr.msra.gmra.mrb[20].mxu1 %v2318_v59 }
 0xe2e   : > { %v1902_v51 = vpop.permute.xlu0 %1901 }
 0xe30   : > { %v1907_v30 = vpop.permute.xlu1 %1906 }
 0xefc   : > { %v1955_v57 = vpop.f32.mrb[20].mxu1 }
 0xefd   : > { %v1956_v63 = vadd.f32 %v1955_v57, %v1902_v51  ;;  %v1957_v39 = vpop.f32.mrb[21].mxu1 }
 0xefe   : > { %v1958_v2 = vadd.f32 %v1957_v39, %v1902_v51  ;;  %v1959_v23 = vpop.f32.mrb[22].mxu1 }
 0xeff   : > { %v3874_v60 = vadd.f32 %v1956_v63, %v3446_v52  ;;  %v1960_v1 = vadd.f32 %v1959_v23, %v1907_v30  ;;  %v1961_v20 = vpop.f32.mrb[23].mxu1 }
 0xf00   : > { %v1962_v25 = vadd.f32 %v1961_v20, %v1907_v30  ;;  %v3882_v32 = vadd.f32 %v1958_v2, %v3478_v42 }
 0xf01   : > { %v3877_v61 = vadd.f32 %v1960_v1, %v3449_v49  ;;  %1970 = vrot.lane.b32.xlu0 %v3874_v60, %s2330_s22  ;;  %v3948_v49 = vld [vmem:[%s4103_s2 + $0x78] sm:$0x11] }
 0xf02   : > { %v3885_v48 = vadd.f32 %v1962_v25, %v3483_v3  ;;  %v2281_v42 = vcombine.high %v3948_v49, %v3948_v49  ;;  %v1969_v3 = vld [vmem:[%s4104_s3 + $0x78] sm:$0x1] }
 0xf03   : > { %1972 = vrot.lane.b32.xlu1 %v3877_v61, %s2330_s22  ;;  %v2106_v52 = vpack.c.bf16 %v3877_v61, %v3874_v60 }
 0xf04   : > { %v2107_v24 = vpack.c.bf16 %v3885_v48, %v3882_v32  ;;  %2282 = vmatprep.mubr.msk.bf16.mxu0 %vm1260_vm10, %v2281_v42 }
 0xf05   : > { %1986 = vrot.lane.b32.xlu0 %v3874_v60, %s2329_s21 }
 0xf07   : > { %1988 = vrot.lane.b32.xlu1 %v3877_v61, %s2329_s21 }
 0xf09   : > { %2002 = vrot.lane.b32.xlu0 %v3874_v60, %s2331_s23 }
 0xf0b   : > { %2004 = vrot.lane.b32.xlu1 %v3877_v61, %s2331_s23 }
 0xf0d   : > { %2018 = vrot.lane.b32.xlu0 %v3874_v60, %s2332_s24 }
 0xf0f   : > { %2020 = vrot.lane.b32.xlu1 %v3877_v61, %s2332_s24 }
 0xf11   : > { %2034 = vrot.lane.b32.xlu0 %v3874_v60, %s2333_s25 }
 0xf13   : > { %2036 = vrot.lane.b32.xlu1 %v3877_v61, %s2333_s25 }
 0xf15   : > { %2050 = vrot.lane.b32.xlu0 %v3874_v60, %s2334_s26 }
 0xf17   : > { %2052 = vrot.lane.b32.xlu1 %v3877_v61, %s2334_s26 }
 0xf19   : > { %2066 = vrot.lane.b32.xlu0 %v3874_v60, %s2336_s27 }
 0xf1b   : > { %2068 = vrot.lane.b32.xlu1 %v3877_v61, %s2336_s27 }
 0xf1d   : > { %1974 = vrot.lane.b32.xlu0 %v3882_v32, %s2330_s22 }
 0xf1f   : > { %1976 = vrot.lane.b32.xlu1 %v3885_v48, %s2330_s22 }
 0xf21   : > { %1990 = vrot.lane.b32.xlu0 %v3882_v32, %s2329_s21 }
 0xf23   : > { %1992 = vrot.lane.b32.xlu1 %v3885_v48, %s2329_s21 }
 0xf25   : > { %2006 = vrot.lane.b32.xlu0 %v3882_v32, %s2331_s23 }
 0xf27   : > { %2008 = vrot.lane.b32.xlu1 %v3885_v48, %s2331_s23 }
 0xf29   : > { %2022 = vrot.lane.b32.xlu0 %v3882_v32, %s2332_s24 }
 0xf2b   : > { %2024 = vrot.lane.b32.xlu1 %v3885_v48, %s2332_s24 }
 0xf2d   : > { %2082 = vrot.lane.b32.xlu0 %v3874_v60, %s2337_s28 }
 0xf2f   : > { %2084 = vrot.lane.b32.xlu1 %v3877_v61, %s2337_s28 }
 0xf31   : > { %2038 = vrot.lane.b32.xlu0 %v3882_v32, %s2333_s25 }
 0xf33   : > { %2040 = vrot.lane.b32.xlu1 %v3885_v48, %s2333_s25  ;;  %s2254_s25 = sshll.u32 %s4107_s16, 1 }
 0xf35   : > { %2054 = vrot.lane.b32.xlu0 %v3882_v32, %s2334_s26 }
 0xf37   : > { %2056 = vrot.lane.b32.xlu1 %v3885_v48, %s2334_s26 }
 0xf39   : > { %2070 = vrot.lane.b32.xlu0 %v3882_v32, %s2336_s27 }
 0xf3b   : > { %2072 = vrot.lane.b32.xlu1 %v3885_v48, %s2336_s27 }
 0xf3d   : > { %2086 = vrot.lane.b32.xlu0 %v3882_v32, %s2337_s28 }
 0xf3f   : > { %2088 = vrot.lane.b32.xlu1 %v3885_v48, %s2337_s28  ;;  %s195_s28 = scalar_lea.vmem %s4105_s4, %s2254_s25 }
 0xf41   : > { %2118 = vperm.xlu0 %2304, %v1969_v3  }
 0xf73   : > { %v1971_v47 = vpop.permute.xlu0 %1970 }
 0xf75   : > { %v1973_v43 = vpop.permute.xlu1 %1972 }
 0xf77   : > { %v1987_v46 = vpop.permute.xlu0 %1986 }
 0xf79   : > { %v1989_v18 = vpop.permute.xlu1 %1988 }
 0xf7b   : > { %v2003_v17 = vpop.permute.xlu0 %2002 }
 0xf7d   : > { %v2005_v58 = vpop.permute.xlu1 %2004 }
 0xf7f   : > { %v2019_v19 = vpop.permute.xlu0 %2018 }
 0xf81   : > { %v2021_v33 = vpop.permute.xlu1 %2020 }
 0xf83   : > { %v3964_v31 = vpop.permute.xlu0 %2034 }
 0xf85   : > { %v3966_v28 = vpop.permute.xlu1 %2036 }
 0xf87   : > { %v3968_v9 = vpop.permute.xlu0 %2050 }
 0xf89   : > { %v3970_v29 = vpop.permute.xlu1 %2052 }
 0xf8b   : > { %v3972_v40 = vpop.permute.xlu0 %2066 }
 0xf8d   : > { %v3974_v10 = vpop.permute.xlu1 %2068 }
 0xf8f   : > { %v1975_v53 = vpop.permute.xlu0 %1974 }
 0xf90   : > { %v1978_v55 = vsel %vm209_vm1, %v1971_v47, %v1975_v53  ;;  %v1980_v0 = vsel %vm209_vm1, %v1975_v53, %v1971_v47 }
 0xf91   : > { %v1977_v50 = vpop.permute.xlu1 %1976  ;;  %v1982_v62 = vmul.f32 %v1980_v0, %v2448_v15  ;;  %v1983_v26 = vmul.f32 %v1978_v55, %v2442_v13 }
 0xf92   : > { %v1979_v56 = vsel %vm209_vm1, %v1973_v43, %v1977_v50  ;;  %v1981_v38 = vsel %vm209_vm1, %v1977_v50, %v1973_v43 }
 0xf93   : > { %v1984_v41 = vmul.f32 %v1981_v38, %v2448_v15  ;;  %v1985_v27 = vmul.f32 %v1979_v56, %v2442_v13  ;;  %v1991_v54 = vpop.permute.xlu0 %1990 }
 0xf94   : > { %v1994_v59 = vsel %vm226_vm0, %v1987_v46, %v1991_v54  ;;  %v1996_v51 = vsel %vm226_vm0, %v1991_v54, %v1987_v46 }
 0xf95   : > { %v2098_v57 = vpack.c.bf16 %v1984_v41, %v1982_v62  ;;  %v1993_v63 = vpop.permute.xlu1 %1992  ;;  %v2099_v39 = vpack.c.bf16 %v1985_v27, %v1983_v26  ;;  %v1998_v15 = vmul.f32 %v1996_v51, %v2451_v16  ;;  %v1999_v13 = vmul.f32 %v1994_v59, %v2445_v14 }
 0xf96   : > { %v1995_v30 = vsel %vm226_vm0, %v1989_v18, %v1993_v63  ;;  %v1997_v2 = vsel %vm226_vm0, %v1993_v63, %v1989_v18 }
 0xf97   : > { %v2000_v23 = vmul.f32 %v1997_v2, %v2451_v16  ;;  %v2001_v1 = vmul.f32 %v1995_v30, %v2445_v14  ;;  %2130 = vmatprep.subr.bf16.mxu0 %v2099_v39  ;;  %v2007_v20 = vpop.permute.xlu0 %2006 }
 0xf98   : > { %v2010_v25 = vsel %vm243_vm2, %v2003_v17, %v2007_v20  ;;  %v2012_v42 = vsel %vm243_vm2, %v2007_v20, %v2003_v17  ;;  %2131 = vmatpush1.bf16.msra.mxu0 %v2098_v57 }
 0xf99   : > { %v2100_v3 = vpack.c.bf16 %v2000_v23, %v1998_v15  ;;  %v2009_v47 = vpop.permute.xlu1 %2008  ;;  %v2101_v43 = vpack.c.bf16 %v2001_v1, %v1999_v13  ;;  %v2014_v14 = vmul.f32 %v2012_v42, %v2471_v34  ;;  %v2015_v18 = vmul.f32 %v2010_v25, %v2474_v35 }
 0xf9a   : > { %v2011_v46 = vsel %vm243_vm2, %v2005_v58, %v2009_v47  ;;  %v2013_v16 = vsel %vm243_vm2, %v2009_v47, %v2005_v58 }
 0xf9b   : > { %v2016_v53 = vmul.f32 %v2013_v16, %v2471_v34  ;;  %v2017_v55 = vmul.f32 %v2011_v46, %v2474_v35  ;;  %2132 = vmatprep.subr.bf16.mxu0 %v2101_v43  ;;  %v2023_v17 = vpop.permute.xlu0 %2022 }
 0xf9c   : > { %v2026_v0 = vsel %vm260_vm3, %v2019_v19, %v2023_v17  ;;  %v2028_v50 = vsel %vm260_vm3, %v2023_v17, %v2019_v19  ;;  %2133 = vmatpush1.bf16.msra.mxu0 %v2100_v3 }
 0xf9d   : > { %v2102_v56 = vpack.c.bf16 %v2016_v53, %v2014_v14  ;;  %v2025_v38 = vpop.permute.xlu1 %2024  ;;  %v2103_v58 = vpack.c.bf16 %v2017_v55, %v2015_v18  ;;  %v2030_v35 = vmul.f32 %v2028_v50, %v2477_v36  ;;  %v2031_v26 = vmul.f32 %v2026_v0, %v2480_v37 }
 0xf9e   : > { %v2027_v62 = vsel %vm260_vm3, %v2021_v33, %v2025_v38  ;;  %v2029_v34 = vsel %vm260_vm3, %v2025_v38, %v2021_v33 }
 0xf9f   : > { %v2032_v41 = vmul.f32 %v2029_v34, %v2477_v36  ;;  %v2033_v27 = vmul.f32 %v2027_v62, %v2480_v37  ;;  %2134 = vmatprep.subr.bf16.mxu0 %v2103_v58  ;;  %v2083_v19 = vpop.permute.xlu0 %2082  ;;  %v2280_v62 = vcombine.low %v3948_v49, %v3948_v49  ;;  %v2175_v34 = vunpack.c.l.s4 %v2338_v6 }
 0xfa0   : > { %2135 = vmatpush1.bf16.msra.mxu0 %v2102_v56 }
 0xfa1   : > { %v2104_v54 = vpack.c.bf16 %v2032_v41, %v2030_v35  ;;  %v2085_v59 = vpop.permute.xlu1 %2084  ;;  %v2105_v51 = vpack.c.bf16 %v2033_v27, %v2031_v26  ;;  %v2176_v35 = vunpack.c.0.s8 %v2175_v34 }
 0xfa3   : > { %2136 = vmatprep.subr.bf16.mxu0 %v2105_v51  ;;  %v2039_v57 = vpop.permute.xlu0 %2038 }
 0xfa4   : > { %v2042_v33 = vsel %vm277_vm4, %v3964_v31, %v2039_v57  ;;  %v2044_v63 = vsel %vm277_vm4, %v2039_v57, %v3964_v31  ;;  %2137 = vmatpush1.bf16.msra.mxu0 %v2104_v54 }
 0xfa5   : > { %v2041_v36 = vpop.permute.xlu1 %2040  ;;  %2138 = vmatprep.subr.bf16.mxu0 %v2107_v24  ;;  %v2046_v30 = vmul.f32 %v2042_v33, %v2492_v44  ;;  %v2047_v2 = vmul.f32 %v2044_v63, %v2495_v45 }
 0xfa6   : > { %v2043_v37 = vsel %vm277_vm4, %v3966_v28, %v2041_v36  ;;  %v2045_v39 = vsel %vm277_vm4, %v2041_v36, %v3966_v28 }
 0xfa7   : > { %v2048_v31 = vmul.f32 %v2043_v37, %v2492_v44  ;;  %v2049_v15 = vmul.f32 %v2045_v39, %v2495_v45  ;;  %v2055_v13 = vpop.permute.xlu0 %2054 }
 0xfa8   : > { %v2058_v32 = vsel %vm294_vm5, %v3968_v9, %v2055_v13  ;;  %v2060_v48 = vsel %vm294_vm5, %v2055_v13, %v3968_v9  ;;  %2139 = vmatpush1.bf16.msra.mxu0 %v2106_v52 }
 0xfa9   : > { %v2108_v24 = vpack.c.bf16 %v2048_v31, %v2046_v30  ;;  %v2057_v28 = vpop.permute.xlu1 %2056  ;;  %v2109_v23 = vpack.c.bf16 %v2049_v15, %v2047_v2  ;;  %v2062_v1 = vmul.f32 %v2058_v32, %v2515_v7  ;;  %v2063_v20 = vmul.f32 %v2060_v48, %v2518_v8 }
 0xfaa   : > { %v2059_v44 = vsel %vm294_vm5, %v3970_v29, %v2057_v28  ;;  %v2061_v45 = vsel %vm294_vm5, %v2057_v28, %v3970_v29 }
 0xfab   : > { %v2064_v9 = vmul.f32 %v2059_v44, %v2515_v7  ;;  %v2065_v60 = vmul.f32 %v2061_v45, %v2518_v8  ;;  %v2071_v61 = vpop.permute.xlu0 %2070  ;;  %2140 = vmatprep.subr.bf16.mxu0 %v2109_v23 }
 0xfac   : > { %v2074_v52 = vsel %vm311_vm6, %v3972_v40, %v2071_v61  ;;  %v2076_v25 = vsel %vm311_vm6, %v2071_v61, %v3972_v40  ;;  %2141 = vmatpush1.bf16.msra.mxu0 %v2108_v24 }
 0xfad   : > { %v2110_v29 = vpack.c.bf16 %v2064_v9, %v2062_v1  ;;  %v2073_v42 = vpop.permute.xlu1 %2072  ;;  %v2111_v3 = vpack.c.bf16 %v2065_v60, %v2063_v20  ;;  %v2078_v47 = vmul.f32 %v2074_v52, %v2521_v11  ;;  %v2079_v43 = vmul.f32 %v2076_v25, %v2524_v12 }
 0xfae   : > { %v2075_v7 = vsel %vm311_vm6, %v3974_v10, %v2073_v42  ;;  %v2077_v8 = vsel %vm311_vm6, %v2073_v42, %v3974_v10 }
 0xfaf   : > { %v2080_v46 = vmul.f32 %v2075_v7, %v2521_v11  ;;  %v2081_v40 = vmul.f32 %v2077_v8, %v2524_v12  ;;  %v2087_v16 = vpop.permute.xlu0 %2086  ;;  %2142 = vmatprep.subr.bf16.mxu0 %v2111_v3 }
 0xfb0   : > { %v2090_v14 = vsel %vm328_vm7, %v2083_v19, %v2087_v16  ;;  %v2092_v18 = vsel %vm328_vm7, %v2087_v16, %v2083_v19  ;;  %2143 = vmatpush1.bf16.msra.mxu0 %v2110_v29 }
 0xfb1   : > { %v2112_v53 = vpack.c.bf16 %v2080_v46, %v2078_v47  ;;  %v2089_v55 = vpop.permute.xlu1 %2088  ;;  %v2113_v10 = vpack.c.bf16 %v2081_v40, %v2079_v43  ;;  %v2094_v12 = vmul.f32 %v2090_v14, %v2539_v22  ;;  %v2095_v0 = vmul.f32 %v2092_v18, %v2536_v21 }
 0xfb2   : > { %v2091_v17 = vsel %vm328_vm7, %v2085_v59, %v2089_v55  ;;  %v2093_v11 = vsel %vm328_vm7, %v2089_v55, %v2085_v59 }
 0xfb3   : > { %v2096_v50 = vmul.f32 %v2091_v17, %v2539_v22  ;;  %v2097_v56 = vmul.f32 %v2093_v11, %v2536_v21  ;;  %2144 = vmatprep.subr.bf16.mxu0 %v2113_v10  ;;  %v2179_v21 = vsub.s32 %v2176_v35, %v2422_v5 }
 0xfb4   : > { %2145 = vmatpush1.bf16.msra.mxu0 %v2112_v53 }
 0xfb5   : > { %v2114_v38 = vpack.c.bf16 %v2096_v50, %v2094_v12  ;;  %v2115_v58 = vpack.c.bf16 %v2097_v56, %v2095_v0 }
 0xfb7   : > { %2146 = vmatprep.subr.bf16.mxu0 %v2115_v58 }
 0xfb8   : > { %2147 = vmatpush1.bf16.msra.mxu0 %v2114_v38 }
 0xfbb   : > { %2163 = vmatmul.mubr.bf16.vlgmr.msra.gmra.mrb[16].mxu0 %v2280_v62 }
 0xfc0   : > { %v2119_v26 = vpop.permute.xlu0 %2118 }
0x108e   : > { %v2164_v41 = vpop.f32.mrb[16].mxu0 }
0x108f   : > { %v2165_v27 = vadd.f32 %v2164_v41, %v2119_v26  ;;  %v2166_v22 = vpop.f32.mrb[17].mxu0 }
0x1090   : > { %v2167_v19 = vadd.f32 %v2166_v22, %v2119_v26  ;;  %v2168_v54 = vpop.f32.mrb[18].mxu0 }
0x1091   : > { %v2169_v59 = vpop.f32.mrb[19].mxu0 }
0x1092   : > { %v2173_v51 = vcombine.low %v2165_v27, %v2167_v19 }
0x1094   : > { %v2180_v57 = vrot.slane %v2173_v51, %v2179_v21 }
0x1096   : > { %v2187_v49 = vrot.slane %v2180_v57, %v2179_v21 }
0x1098   : > { %2193 = vst.msk [vmem:[%s195_s28] sm:$0x3] %vm2191_vm11, %v2187_v49 }
0x1099 PF: > { %s14_s15 = sadd.s32 1, %s2327_s15  }
0x109a   : > { %p11_p4 = scmp.ge.s32.totalorder %s14_s15, 4  }
0x109c   :  { %13 = sbr.rel (!%p11_p4) target bundleno = 1 (0x1), region = 66 }

</bundles_post_ra>
